<compile_context>
chip_gen: v7x
topology: tpu7x:2x2x1
jax: 0.10.0
libtpu: 0.0.40
codegen_flags: <defaults>
</compile_context>

<pallas_src>
import jax
import jax.numpy as jnp
from jax.experimental import pallas as pl
from jax.experimental.pallas import tpu as pltpu


_K_PAD = 128     # padded contraction dim for the stem conv (c*k*k = 27 -> 128)
_CLS_PAD = 128   # lane-dense padded class dim for the head output

_VMEM = pl.BlockSpec(memory_space=pltpu.MemorySpace.VMEM)


# ----------------------------------------------------------------------------
# im2col glue (wrapper-side): NCHW frame -> (N, Ho*Wo, C*k*k) channels-last
# patch matrix.  Single NHWC transpose + concat (no 5-D stack/transpose).
# ----------------------------------------------------------------------------
def _im2col(x_nchw, ksize=3, stride=2, padding=1):
    N, C, H, W = x_nchw.shape
    Ho = (H + 2 * padding - ksize) // stride + 1
    Wo = (W + 2 * padding - ksize) // stride + 1
    x = jnp.pad(x_nchw, ((0, 0), (0, 0), (padding, padding), (padding, padding)))
    x = x.transpose(0, 2, 3, 1)                                  # NHWC once
    cols = []
    for i in range(ksize):
        for j in range(ksize):
            cols.append(x[:, i:i + stride * Ho:stride, j:j + stride * Wo:stride, :])
    patches = jnp.concatenate(cols, axis=-1)                     # (N, Ho, Wo, k*k*C)
    return patches.reshape(N, Ho * Wo, ksize * ksize * C)


def _pick_tile_p(p, cap=128):
    """Largest divisor of P that is <= cap and sublane friendly."""
    cap = min(p, cap)
    for t in range(cap, 0, -1):
        if p % t == 0 and (t % 8 == 0 or t == p):
            return t
    return p


# ----------------------------------------------------------------------------
# Kernel 2: fc head on temporally-pooled features (whole-array VMEM, tiny).
#   pooled: (Bp, 2048) f32, w1: (2048, 512) bf16, b1: (1, 512) f32,
#   w2: (512, Cp) bf16, b2: (1, Cp) f32  ->  logits (Bp, Cp) f32
# ----------------------------------------------------------------------------
def _head_kernel(pooled_ref, w1_ref, b1_ref, w2_ref, b2_ref, out_ref):
    pooled = pooled_ref[...].astype(jnp.bfloat16)
    h = jnp.dot(pooled, w1_ref[...], preferred_element_type=jnp.float32)
    h = jnp.maximum(h + b1_ref[...], 0.0)                        # Linear + ReLU (f32)
    # Dropout(p=0.5): identity in eval mode.
    o = jnp.dot(h.astype(jnp.bfloat16), w2_ref[...],
                preferred_element_type=jnp.float32)
    out_ref[...] = o + b2_ref[...]                               # final Linear


def fused_resnext_temppool_forward(x, params, *, tile_p_cap=128):
    """x: (batch, segment, C, H, W) float32 -> logits (batch, num_classes)."""
    batch_size, segment_size, c, h, w = x.shape
    feat_dim = params["w1"].shape[0]                             # 2048
    hidden = params["w1"].shape[1]                               # 512
    num_classes = params["w2"].shape[1]

    # x = x.view(batch_size * segment_size, c, h, w)
    frames = x.reshape(batch_size * segment_size, c, h, w)

    # ---- features(.) : stand-in backbone (conv-as-matmul + ReLU + GAP),
    #      fused with the temporal max over the segment axis ----
    patches = _im2col(frames)                                    # (N, P, K)
    _, P, K = patches.shape
    patches = jnp.pad(patches, ((0, 0), (0, 0), (0, _K_PAD - K)))
    patches = patches.astype(jnp.bfloat16).reshape(
        batch_size, segment_size, P, _K_PAD)                     # (B, T, P, Kp) bf16

    tile_p = _pick_tile_p(P, tile_p_cap)
    n_p_tiles = P // tile_p
    inv_p = 1.0 / P                                              # true P, not padded

    w_stem = params["w_stem"].astype(jnp.bfloat16)               # (Kp, F) bf16
    b_stem = params["b_stem"]                                    # (1, F)  f32

    def stem_kernel(p_ref, w_ref, b_ref, out_ref, acc_ref):
        t = pl.program_id(1)
        pidx = pl.program_id(2)

        @pl.when(pidx == 0)
        def _():                                                 # new frame: zero mean-sum
            acc_ref[...] = jnp.zeros_like(acc_ref)

        # (tileP, Kp) bf16 @ (Kp, F) bf16 -> (tileP, F) f32 on the MXU
        acts = jnp.dot(p_ref[...], w_ref[...],
                       preferred_element_type=jnp.float32)
        acts = jnp.maximum(acts + b_ref[...], 0.0)               # bias + ReLU (f32)
        acc_ref[...] += jnp.sum(acts, axis=0, keepdims=True)     # partial GAP sum

        last_p = pidx == pl.num_programs(2) - 1

        @pl.when(jnp.logical_and(last_p, t == 0))
        def _():                                                 # first frame of the clip
            out_ref[...] = acc_ref[...] * inv_p

        @pl.when(jnp.logical_and(last_p, t > 0))
        def _():                                                 # fused temporal max
            out_ref[...] = jnp.maximum(out_ref[...], acc_ref[...] * inv_p)

    cost = pl.CostEstimate(
        flops=2 * batch_size * segment_size * P * _K_PAD * feat_dim,
        transcendentals=0,
        bytes_accessed=(patches.size * 2 + w_stem.size * 2
                        + b_stem.size * 4 + batch_size * feat_dim * 4),
    )

    pooled = pl.pallas_call(
        stem_kernel,
        out_shape=jax.ShapeDtypeStruct((batch_size, 1, feat_dim), jnp.float32),
        grid_spec=pltpu.PrefetchScalarGridSpec(
            num_scalar_prefetch=0,
            grid=(batch_size, segment_size, n_p_tiles),          # reduction axes last
            in_specs=[
                pl.BlockSpec((None, None, tile_p, _K_PAD),
                             lambda b, t, p: (b, t, p, 0)),      # patches tile
                pl.BlockSpec((_K_PAD, feat_dim),
                             lambda b, t, p: (0, 0)),            # w_stem: resident
                pl.BlockSpec((1, feat_dim),
                             lambda b, t, p: (0, 0)),            # b_stem: resident
            ],
            out_specs=pl.BlockSpec((None, 1, feat_dim),
                                   lambda b, t, p: (b, 0, 0)),   # resident across (t, p)
            scratch_shapes=[pltpu.VMEM((1, feat_dim), jnp.float32)],
        ),
        compiler_params=pltpu.CompilerParams(
            dimension_semantics=("parallel", "arbitrary", "arbitrary"),
            vmem_limit_bytes=48 * 1024 * 1024,   # stays under v7x 64 MiB physical VMEM
        ),
        cost_estimate=cost,
    )(patches, w_stem, b_stem)

    # x = x.view(B, T, 2048); x = x.max(dim=1).values   (already fused above)
    pooled = pooled.reshape(batch_size, feat_dim)                # (B, 2048) f32

    # ---- fc head: Linear(2048,512) -> ReLU -> Dropout(id) -> Linear(512,C) ----
    b_pad = -(-batch_size // 8) * 8                              # sublane-dense batch
    c_pad = _CLS_PAD if num_classes <= _CLS_PAD else -(-num_classes // 128) * 128

    pooled_p = jnp.pad(pooled, ((0, b_pad - batch_size), (0, 0)))
    w1 = params["w1"].astype(jnp.bfloat16)
    b1 = params["b1"]
    w2 = jnp.pad(params["w2"],
                 ((0, 0), (0, c_pad - num_classes))).astype(jnp.bfloat16)
    b2 = jnp.pad(params["b2"], ((0, 0), (0, c_pad - num_classes)))

    logits_p = pl.pallas_call(
        _head_kernel,
        out_shape=jax.ShapeDtypeStruct((b_pad, c_pad), jnp.float32),
        in_specs=[_VMEM] * 5,
        out_specs=_VMEM,
    )(pooled_p, w1, b1, w2, b2)

    return logits_p[:batch_size, :num_classes]


def init_params(key, c=3, ksize=3, feat_dim=2048, hidden=512, num_classes=51):
    assert c * ksize * ksize <= _K_PAD
    k0, k1, k2, k3, k4, k5 = jax.random.split(key, 6)
    s = 0.02
    return {
        # rows >= c*k*k multiply zero-padded patch columns -> never contribute
        "w_stem": s * jax.random.normal(k0, (_K_PAD, feat_dim), jnp.float32),
        "b_stem": s * jax.random.normal(k1, (1, feat_dim), jnp.float32),
        "w1": s * jax.random.normal(k2, (feat_dim, hidden), jnp.float32),
        "b1": s * jax.random.normal(k3, (1, hidden), jnp.float32),
        "w2": s * jax.random.normal(k4, (hidden, num_classes), jnp.float32),
        "b2": s * jax.random.normal(k5, (1, num_classes), jnp.float32),
    }


def _reference_forward(x, params):
    """Pure-JAX reference with the same bf16-operand / f32-accumulate precision."""
    B, T, c, h, w = x.shape
    frames = x.reshape(B * T, c, h, w)
    patches = _im2col(frames)                                    # (N, P, K)
    K = patches.shape[-1]
    patches = jnp.pad(patches, ((0, 0), (0, 0), (0, _K_PAD - K))).astype(jnp.bfloat16)
    acts = jnp.einsum("npk,kf->npf", patches,
                      params["w_stem"].astype(jnp.bfloat16),
                      preferred_element_type=jnp.float32)
    acts = jnp.maximum(acts + params["b_stem"][None], 0.0)
    feats = jnp.mean(acts, axis=1).reshape(B, T, -1)
    pooled = jnp.max(feats, axis=1)
    h1 = jnp.dot(pooled.astype(jnp.bfloat16),
                 params["w1"].astype(jnp.bfloat16),
                 preferred_element_type=jnp.float32) + params["b1"]
    h1 = jnp.maximum(h1, 0.0)
    return jnp.dot(h1.astype(jnp.bfloat16),
                   params["w2"].astype(jnp.bfloat16),
                   preferred_element_type=jnp.float32) + params["b2"]


if __name__ == "__main__":
    key = jax.random.PRNGKey(0)
    kx, kp = jax.random.split(key)

    # Small shapes consistent with the module's forward:
    # (batch, segment, channels, H, W) -> logits (batch, num_classes)
    batch, segment, c, h, w = 2, 4, 3, 32, 32
    num_classes = 51  # HMDB51

    x = jax.random.normal(kx, (batch, segment, c, h, w), jnp.float32)
    params = init_params(kp, c=c, num_classes=num_classes)

    fwd = jax.jit(fused_resnext_temppool_forward)
    out = jax.block_until_ready(fwd(x, params))

    ref = _reference_forward(x, params)
    assert out.shape == (batch, num_classes), out.shape
    assert out.dtype == jnp.float32
    max_err = float(jnp.max(jnp.abs(out - ref)))
    assert jnp.allclose(out, ref, atol=5e-4, rtol=1e-3), f"mismatch vs reference: {max_err}"

    print("KERNEL_OK")
</pallas_src>

<mosaic_0001>
module attributes {stable_mosaic.version = 11 : i64} {
  func.func @stem_kernel(%arg0: i32, %arg1: i32, %arg2: i32, %arg3: memref<1x1x128x128xbf16, #tpu.memory_space<vmem>>, %arg4: memref<128x2048xbf16, #tpu.memory_space<vmem>>, %arg5: memref<1x2048xf32, #tpu.memory_space<vmem>>, %arg6: memref<1x1x2048xf32, #tpu.memory_space<vmem>>, %arg7: memref<1x2048xf32, #tpu.memory_space<vmem>>) attributes {dimension_semantics = [#tpu.dimension_semantics<parallel>, #tpu.dimension_semantics<arbitrary>, #tpu.dimension_semantics<arbitrary>], iteration_bounds = array<i64: 2, 4, 2>, scalar_prefetch = 0 : i64, scratch_operands = 1 : i64, tpu.core_type = #tpu.core_type<tc>, window_params = [{transform_indices = @transform_0, window_bounds = array<i64: 1, 1, 128, 128>}, {pipeline_mode = #tpu.pipeline_mode<synchronous>, transform_indices = @transform_1, window_bounds = array<i64: 128, 2048>}, {pipeline_mode = #tpu.pipeline_mode<synchronous>, transform_indices = @transform_2, window_bounds = array<i64: 1, 2048>}, {transform_indices = @transform_3, window_bounds = array<i64: 1, 1, 2048>}]} {
    %c0_i32 = arith.constant 0 : i32
    %0 = arith.cmpi eq, %arg2, %c0_i32 : i32
    %1 = arith.extui %0 : i1 to i32
    %c0_i32_0 = arith.constant 0 : i32
    %2 = arith.cmpi ne, %1, %c0_i32_0 : i32
    scf.if %2 {
      %cst_18 = arith.constant 0.000000e+00 : f32
      %26 = vector.broadcast %cst_18 : f32 to vector<1x2048xf32>
      %c0_19 = arith.constant 0 : index
      %c0_20 = arith.constant 0 : index
      %27 = vector.load %arg7[%c0_19, %c0_20] : memref<1x2048xf32, #tpu.memory_space<vmem>>, vector<1x2048xf32>
      tpu.vector_store %arg7[%c0_19, %c0_20], %26 {strides = array<i32>} : memref<1x2048xf32, #tpu.memory_space<vmem>>, vector<1x2048xf32>,
    } else {
    }
    %c0 = arith.constant 0 : index
    %c0_1 = arith.constant 0 : index
    %c0_2 = arith.constant 0 : index
    %c0_3 = arith.constant 0 : index
    %3 = vector.load %arg3[%c0, %c0_1, %c0_2, %c0_3] : memref<1x1x128x128xbf16, #tpu.memory_space<vmem>>, vector<1x1x128x128xbf16>
    %4 = vector.shape_cast %3 : vector<1x1x128x128xbf16> to vector<128x128xbf16>
    %c0_4 = arith.constant 0 : index
    %c0_5 = arith.constant 0 : index
    %5 = vector.load %arg4[%c0_4, %c0_5] : memref<128x2048xbf16, #tpu.memory_space<vmem>>, vector<128x2048xbf16>
    %cst = arith.constant dense<0.000000e+00> : vector<128x2048xf32>
    %6 = tpu.matmul %4, %5, %cst {dimension_numbers = #tpu.dot_dimension_numbers<[1], [0], [0], [1], [0, 0, 1, 1], [], []>} : vector<128x128xbf16>, vector<128x2048xbf16>, vector<128x2048xf32> -> vector<128x2048xf32>
    %c0_6 = arith.constant 0 : index
    %c0_7 = arith.constant 0 : index
    %7 = vector.load %arg5[%c0_6, %c0_7] : memref<1x2048xf32, #tpu.memory_space<vmem>>, vector<1x2048xf32>
    %8 = vector.broadcast %7 : vector<1x2048xf32> to vector<128x2048xf32>
    %9 = arith.addf %6, %8 : vector<128x2048xf32>
    %cst_8 = arith.constant 0.000000e+00 : f32
    %10 = vector.broadcast %cst_8 : f32 to vector<128x2048xf32>
    %11 = arith.maximumf %9, %10 : vector<128x2048xf32>
    %c0_9 = arith.constant 0 : index
    %c0_10 = arith.constant 0 : index
    %12 = vector.load %arg7[%c0_9, %c0_10] : memref<1x2048xf32, #tpu.memory_space<vmem>>, vector<1x2048xf32>
    %cst_11 = arith.constant dense<0.000000e+00> : vector<2048xf32>
    %13 = vector.multi_reduction <add>, %11, %cst_11 [0] : vector<128x2048xf32> to vector<2048xf32>
    %14 = vector.shape_cast %13 : vector<2048xf32> to vector<1x2048xf32>
    %15 = arith.addf %12, %14 : vector<1x2048xf32>
    %c0_12 = arith.constant 0 : index
    %c0_13 = arith.constant 0 : index
    %16 = vector.load %arg7[%c0_12, %c0_13] : memref<1x2048xf32, #tpu.memory_space<vmem>>, vector<1x2048xf32>
    tpu.vector_store %arg7[%c0_12, %c0_13], %15 {strides = array<i32>} : memref<1x2048xf32, #tpu.memory_space<vmem>>, vector<1x2048xf32>,
    %c1_i32 = arith.constant 1 : i32
    %17 = arith.cmpi eq, %arg2, %c1_i32 : i32
    %c0_i32_14 = arith.constant 0 : i32
    %18 = arith.cmpi eq, %arg1, %c0_i32_14 : i32
    %19 = arith.andi %17, %18 : i1
    %20 = arith.extui %19 : i1 to i32
    %c0_i32_15 = arith.constant 0 : i32
    %21 = arith.cmpi ne, %20, %c0_i32_15 : i32
    scf.if %21 {
      %c0_18 = arith.constant 0 : index
      %c0_19 = arith.constant 0 : index
      %26 = vector.load %arg7[%c0_18, %c0_19] : memref<1x2048xf32, #tpu.memory_space<vmem>>, vector<1x2048xf32>
      %cst_20 = arith.constant 3.906250e-03 : f32
      %27 = vector.broadcast %cst_20 : f32 to vector<1x2048xf32>
      %28 = arith.mulf %26, %27 : vector<1x2048xf32>
      %c0_21 = arith.constant 0 : index
      %c0_22 = arith.constant 0 : index
      %c0_23 = arith.constant 0 : index
      %29 = vector.load %arg6[%c0_21, %c0_22, %c0_23] : memref<1x1x2048xf32, #tpu.memory_space<vmem>>, vector<1x1x2048xf32>
      %30 = vector.shape_cast %29 : vector<1x1x2048xf32> to vector<1x2048xf32>
      %31 = vector.shape_cast %28 : vector<1x2048xf32> to vector<1x1x2048xf32>
      tpu.vector_store %arg6[%c0_21, %c0_22, %c0_23], %31 {strides = array<i32>} : memref<1x1x2048xf32, #tpu.memory_space<vmem>>, vector<1x1x2048xf32>,
    } else {
    }
    %c0_i32_16 = arith.constant 0 : i32
    %22 = arith.cmpi sgt, %arg1, %c0_i32_16 : i32
    %23 = arith.andi %17, %22 : i1
    %24 = arith.extui %23 : i1 to i32
    %c0_i32_17 = arith.constant 0 : i32
    %25 = arith.cmpi ne, %24, %c0_i32_17 : i32
    scf.if %25 {
      %c0_18 = arith.constant 0 : index
      %c0_19 = arith.constant 0 : index
      %c0_20 = arith.constant 0 : index
      %26 = vector.load %arg6[%c0_18, %c0_19, %c0_20] : memref<1x1x2048xf32, #tpu.memory_space<vmem>>, vector<1x1x2048xf32>
      %27 = vector.shape_cast %26 : vector<1x1x2048xf32> to vector<1x2048xf32>
      %c0_21 = arith.constant 0 : index
      %c0_22 = arith.constant 0 : index
      %28 = vector.load %arg7[%c0_21, %c0_22] : memref<1x2048xf32, #tpu.memory_space<vmem>>, vector<1x2048xf32>
      %cst_23 = arith.constant 3.906250e-03 : f32
      %29 = vector.broadcast %cst_23 : f32 to vector<1x2048xf32>
      %30 = arith.mulf %28, %29 : vector<1x2048xf32>
      %31 = arith.maximumf %27, %30 : vector<1x2048xf32>
      %c0_24 = arith.constant 0 : index
      %c0_25 = arith.constant 0 : index
      %c0_26 = arith.constant 0 : index
      %32 = vector.load %arg6[%c0_24, %c0_25, %c0_26] : memref<1x1x2048xf32, #tpu.memory_space<vmem>>, vector<1x1x2048xf32>
      %33 = vector.shape_cast %32 : vector<1x1x2048xf32> to vector<1x2048xf32>
      %34 = vector.shape_cast %31 : vector<1x2048xf32> to vector<1x1x2048xf32>
      tpu.vector_store %arg6[%c0_24, %c0_25, %c0_26], %34 {strides = array<i32>} : memref<1x1x2048xf32, #tpu.memory_space<vmem>>, vector<1x1x2048xf32>,
    } else {
    }
    return
  }
  func.func @transform_0(%arg0: i32, %arg1: i32, %arg2: i32) -> (i32, i32, i32, i32) {
    %c0_i32 = arith.constant 0 : i32
    %c0_i32_0 = arith.constant 0 : i32
    return %arg0, %arg1, %arg2, %c0_i32 : i32, i32, i32, i32
  }
  func.func @transform_1(%arg0: i32, %arg1: i32, %arg2: i32) -> (i32, i32) {
    %c0_i32 = arith.constant 0 : i32
    %c0_i32_0 = arith.constant 0 : i32
    %c0_i32_1 = arith.constant 0 : i32
    return %c0_i32, %c0_i32_0 : i32, i32
  }
  func.func @transform_2(%arg0: i32, %arg1: i32, %arg2: i32) -> (i32, i32) {
    %c0_i32 = arith.constant 0 : i32
    %c0_i32_0 = arith.constant 0 : i32
    %c0_i32_1 = arith.constant 0 : i32
    return %c0_i32, %c0_i32_0 : i32, i32
  }
  func.func @transform_3(%arg0: i32, %arg1: i32, %arg2: i32) -> (i32, i32, i32) {
    %c0_i32 = arith.constant 0 : i32
    %c0_i32_0 = arith.constant 0 : i32
    %c0_i32_1 = arith.constant 0 : i32
    return %arg0, %c0_i32, %c0_i32_0 : i32, i32, i32
  }
}

module attributes {stable_mosaic.version = 11 : i64} {
  func.func @_head_kernel(%arg0: memref<8x2048xf32, #tpu.memory_space<vmem>>, %arg1: memref<2048x512xbf16, #tpu.memory_space<vmem>>, %arg2: memref<1x512xf32, #tpu.memory_space<vmem>>, %arg3: memref<512x128xbf16, #tpu.memory_space<vmem>>, %arg4: memref<1x128xf32, #tpu.memory_space<vmem>>, %arg5: memref<8x128xf32, #tpu.memory_space<vmem>>) attributes {dimension_semantics = [], scalar_prefetch = 0 : i64, scratch_operands = 0 : i64, tpu.core_type = #tpu.core_type<tc>} {
    %c0 = arith.constant 0 : index
    %c0_0 = arith.constant 0 : index
    %0 = vector.load %arg0[%c0, %c0_0] : memref<8x2048xf32, #tpu.memory_space<vmem>>, vector<8x2048xf32>
    %1 = arith.truncf %0 : vector<8x2048xf32> to vector<8x2048xbf16>
    %c0_1 = arith.constant 0 : index
    %c0_2 = arith.constant 0 : index
    %2 = vector.load %arg1[%c0_1, %c0_2] : memref<2048x512xbf16, #tpu.memory_space<vmem>>, vector<2048x512xbf16>
    %cst = arith.constant dense<0.000000e+00> : vector<8x512xf32>
    %3 = tpu.matmul %1, %2, %cst {dimension_numbers = #tpu.dot_dimension_numbers<[1], [0], [0], [1], [0, 0, 1, 1], [], []>} : vector<8x2048xbf16>, vector<2048x512xbf16>, vector<8x512xf32> -> vector<8x512xf32>
    %c0_3 = arith.constant 0 : index
    %c0_4 = arith.constant 0 : index
    %4 = vector.load %arg2[%c0_3, %c0_4] : memref<1x512xf32, #tpu.memory_space<vmem>>, vector<1x512xf32>
    %5 = vector.broadcast %4 : vector<1x512xf32> to vector<8x512xf32>
    %6 = arith.addf %3, %5 : vector<8x512xf32>
    %cst_5 = arith.constant 0.000000e+00 : f32
    %7 = vector.broadcast %cst_5 : f32 to vector<8x512xf32>
    %8 = arith.maximumf %6, %7 : vector<8x512xf32>
    %9 = arith.truncf %8 : vector<8x512xf32> to vector<8x512xbf16>
    %c0_6 = arith.constant 0 : index
    %c0_7 = arith.constant 0 : index
    %10 = vector.load %arg3[%c0_6, %c0_7] : memref<512x128xbf16, #tpu.memory_space<vmem>>, vector<512x128xbf16>
    %cst_8 = arith.constant dense<0.000000e+00> : vector<8x128xf32>
    %11 = tpu.matmul %9, %10, %cst_8 {dimension_numbers = #tpu.dot_dimension_numbers<[1], [0], [0], [1], [0, 0, 1, 1], [], []>} : vector<8x512xbf16>, vector<512x128xbf16>, vector<8x128xf32> -> vector<8x128xf32>
    %c0_9 = arith.constant 0 : index
    %c0_10 = arith.constant 0 : index
    %12 = vector.load %arg4[%c0_9, %c0_10] : memref<1x128xf32, #tpu.memory_space<vmem>>, vector<1x128xf32>
    %13 = vector.broadcast %12 : vector<1x128xf32> to vector<8x128xf32>
    %14 = arith.addf %11, %13 : vector<8x128xf32>
    %c0_11 = arith.constant 0 : index
    %c0_12 = arith.constant 0 : index
    %15 = vector.load %arg5[%c0_11, %c0_12] : memref<8x128xf32, #tpu.memory_space<vmem>>, vector<8x128xf32>
    tpu.vector_store %arg5[%c0_11, %c0_12], %14 {strides = array<i32>} : memref<8x128xf32, #tpu.memory_space<vmem>>, vector<8x128xf32>,
    return
  }
}

</mosaic_0001>

<bundles_post_ra>
// kernel: fused_resnext_temppool_forward.2
= control target key start
LH: loop header
LB: loop body
LE: loop exit
PB: predicated region body
PF: predicated region fallthrough
CT: control target
= control target key end

     0   :  { %s3163_s12 = smov 0   ;;  %s3165_s13 = smov 0   ;;  %s4191_s0 = inlined_call_operand.vmem [shape: bf16[2,4,256,128], index: 0, kind: input, shape index: {}]   ;;  %s4192_s1 = inlined_call_operand.vmem [shape: bf16[128,2048], index: 1, kind: input, shape index: {}]   ;;  %s4193_s2 = inlined_call_operand.vmem [shape: f32[1,2048], index: 2, kind: input, shape index: {}]   ;;  %s4194_s3 = inlined_call_operand.vmem [shape: f32[2,1,2048], index: 3, kind: output, shape index: {}]  }
   0x1   :  { %s3167_s14 = smov 0   ;;  %s3169_s15 = smov 0  }
   0x2   :  { %s3171_s16 = smov 0   ;;  %s3173_s17 = smov 0  }
   0x3   :  { %s3175_s18 = smov 0  }
   0x4 LB: > { %s25_s19 = sadd.s32 1, %s3126_s15  ;;  %s28_s20 = sadd.s32 1, %s3130_s16  ;;  %s3138_s18 = sphi %s3175_s18, %s13_s18   ;;  %s3134_s17 = sphi %s3173_s17, %s4201_s17   ;;  %s3130_s16 = sphi %s3171_s16, %s4200_s16   ;;  %s3126_s15 = sphi %s3169_s15, %s4199_s15   ;;  %s3122_s14 = sphi %s3167_s14, %s4198_s14   ;;  %s3118_s13 = sphi %s3165_s13, %s4197_s13   ;;  %s3114_s12 = sphi %s3163_s12, %s4196_s12  }
   0x5   : > { %p26_p0 = scmp.ge.s32.totalorder %s25_s19, 2  ;;  %p2872_p1 = scmp.ge.s32.totalorder %s3138_s18, 1 }
   0x6   : > { %p169_p2 = scmp.lt.s32.totalorder %s3138_s18, 17  ;;  %s32_s21 = sadd.s32 1, %s3134_s17 }
   0x7   : > { %s4203_s19 = smov (%p26_p0, %s25_s19), 0  ;;  %s4205_s20 = smov (!%p26_p0, %s28_s20), %s3130_s16 }
   0x8   : > { %p170_p3 = pnand %p2872_p1, %p169_p2  ;;  %p30_p4 = scmp.ge.s32.totalorder %s4205_s20, 4 }
   0x9   : > { %s2873_s22 = sshll.u32 (!%p170_p3), %s3114_s12, 4  ;;  %p201_p6 = scmp.lt.s32.totalorder (!%p170_p3), %s3122_s14, 1 }
   0xa   : > { %s4207_s20 = smov (%p30_p4, %s4205_s20), 0  ;;  %s4209_s21 = smov (!%p30_p4, %s32_s21), %s3134_s17 }
   0xb   : > { %p34_p5 = scmp.ge.s32.totalorder %s4209_s21, 2  ;;  %173 = sbr.rel (%p170_p3) target bundleno = 582 (0x246), region = 32 }
   0xc   : > { %p203_p7 = scmp.lt.s32.totalorder (!%p170_p3), %s3118_s13, 3  ;;  %p205_p8 = scmp.lt.s32.totalorder (!%p170_p3), %s2873_s22, 31 }
   0xd   : > { %s4211_s21 = smov (%p34_p5, %s4209_s21), 0  ;;  %p2878_p9 = scmp.ne.s32.totalorder (!%p170_p3), %s3114_s12, 0 }
  0x12   : > { %s4213_s14 = smov (!%p201_p6, %s3122_s14), 1  ;;  %s4215_s22 = smov (!%p205_p8, %s2873_s22), 31 }
  0x13   : > { %s204_s23 = scalar_select %p203_p7, %s3118_s13, 3 }
  0x14   : > { %s2875_s25 = sshll.u32 %s4213_s14, 7  ;;  %s2877_s27 = sshll.u32 %s4213_s14, 4  ;;  %v3140_v0 = vmov (!%p2878_p9), 0.0  }
  0x15   : > { %s2874_s24 = sshll.u32 %s204_s23, 5  ;;  %s3215_s4 = scalar_lea.vmem %s4194_s3, %s2877_s27  ;;  %223 = vst [vmem:[#allocation2] sm:$0xff] (!%p2878_p9), %v3140_v0  ;;  %224 = vst [vmem:[#allocation2 + $0x8] sm:$0xff] (!%p2878_p9), %v3140_v0 }
  0x16   : > { %s208_s26 = sadd.s32 %s2874_s24, %s4215_s22  ;;  %222 = sbr.rel (%p2878_p9) target bundleno = 29 (0x1d), region = 36 }
  0x17   : > { %s210_s28 = sadd.s32 %s2875_s25, %s208_s26 }
  0x18   : > { %s2876_s5 = sshll.u32 %s210_s28, 2 }
  0x19   : > { %s3220_s8 = scalar_lea.vmem %s4191_s0, %s2876_s5 }
  0x1d PF: > { %v241_v1 = vld [vmem:[%s4192_s1] sm:$0xff]  ;;  %v242_v3 = vld [vmem:[%s4192_s1 + $0x8] sm:$0xff]  ;;  %v3141_v9 = vmov 0   ;;  %v243_v0 = vld [vmem:[%s4192_s1 + $0x10] sm:$0xff]  ;;  %p2759_p10 = scmp.eq.s32.totalorder %s3114_s12, 1  ;;  %p2760_p11 = scmp.eq.s32.totalorder %s3118_s13, 0 }
  0x1e   : > { %v249_v2 = vld [vmem:[%s4192_s1 + $0x40] sm:$0xff]  ;;  %v250_v5 = vld [vmem:[%s4192_s1 + $0x48] sm:$0xff]  ;;  %1173 = vmatprep.mubr.bf16.mxu0 %v3141_v9  ;;  %1286 = vmatprep.mubr.bf16.mxu1 %v3141_v9 }
  0x1f   : > { %v2888_v4 = vcombine.high %v241_v1, %v249_v2  ;;  %v2887_v6 = vcombine.low %v241_v1, %v249_v2  ;;  %v257_v7 = vld [vmem:[%s4192_s1 + $0x80] sm:$0xff]  ;;  %v2890_v10 = vcombine.high %v242_v3, %v250_v5  ;;  %v2889_v11 = vcombine.low %v242_v3, %v250_v5  ;;  %v258_v13 = vld [vmem:[%s4192_s1 + $0x88] sm:$0xff]  ;;  %v251_v1 = vld [vmem:[%s4192_s1 + $0x50] sm:$0xff]  ;;  %p4023_p12 = pnand %p2760_p11, %p2759_p10 }
  0x20   : > { %v265_v8 = vld [vmem:[%s4192_s1 + $0xc0] sm:$0xff]  ;;  %v266_v14 = vld [vmem:[%s4192_s1 + $0xc8] sm:$0xff]  ;;  %v244_v2 = vld [vmem:[%s4192_s1 + $0x18] sm:$0xff] }
  0x21   : > { %v2904_v12 = vcombine.high %v257_v7, %v265_v8  ;;  %v273_v15 = vld [vmem:[%s4192_s1 + $0x100] sm:$0xff]  ;;  %1141 = vmatprep.subr.bf16.mxu0 %v2888_v4  ;;  %v2906_v16 = vcombine.high %v258_v13, %v266_v14  ;;  %v274_v18 = vld [vmem:[%s4192_s1 + $0x108] sm:$0xff]  ;;  %1254 = vmatprep.subr.bf16.mxu1 %v2890_v10  ;;  %v2903_v20 = vcombine.low %v257_v7, %v265_v8  ;;  %v252_v3 = vld [vmem:[%s4192_s1 + $0x58] sm:$0xff] }
  0x22   : > { %v281_v17 = vld [vmem:[%s4192_s1 + $0x140] sm:$0xff]  ;;  %v282_v19 = vld [vmem:[%s4192_s1 + $0x148] sm:$0xff]  ;;  %1142 = vmatpush1.bf16.msra.mxu0 %v2887_v6  ;;  %1255 = vmatpush1.bf16.msra.mxu1 %v2889_v11  ;;  %v2905_v21 = vcombine.low %v258_v13, %v266_v14  ;;  %v2892_v6 = vcombine.high %v243_v0, %v251_v1  ;;  %v2894_v7 = vcombine.high %v244_v2, %v252_v3  ;;  %v259_v10 = vld [vmem:[%s4192_s1 + $0x90] sm:$0xff] }
  0x23   : > { %1143 = vmatprep.subr.bf16.mxu0 %v2904_v12  ;;  %v2920_v22 = vcombine.high %v273_v15, %v281_v17  ;;  %1256 = vmatprep.subr.bf16.mxu1 %v2906_v16  ;;  %v2922_v23 = vcombine.high %v274_v18, %v282_v19  ;;  %v289_v24 = vld [vmem:[%s4192_s1 + $0x180] sm:$0xff]  ;;  %v290_v26 = vld [vmem:[%s4192_s1 + $0x188] sm:$0xff]  ;;  %v2919_v28 = vcombine.low %v273_v15, %v281_v17  ;;  %v267_v11 = vld [vmem:[%s4192_s1 + $0xd0] sm:$0xff] }
  0x24   : > { %v297_v25 = vld [vmem:[%s4192_s1 + $0x1c0] sm:$0xff]  ;;  %v298_v27 = vld [vmem:[%s4192_s1 + $0x1c8] sm:$0xff]  ;;  %v2921_v29 = vcombine.low %v274_v18, %v282_v19  ;;  %v2891_v12 = vcombine.low %v243_v0, %v251_v1  ;;  %v260_v13 = vld [vmem:[%s4192_s1 + $0x98] sm:$0xff]  ;;  %v2893_v15 = vcombine.low %v244_v2, %v252_v3  ;;  %v2908_v16 = vcombine.high %v259_v10, %v267_v11 }
  0x25   : > { %v2936_v30 = vcombine.high %v289_v24, %v297_v25  ;;  %v2938_v31 = vcombine.high %v290_v26, %v298_v27  ;;  %v305_v32 = vld [vmem:[%s4192_s1 + $0x200] sm:$0xff]  ;;  %v306_v34 = vld [vmem:[%s4192_s1 + $0x208] sm:$0xff]  ;;  %v2935_v36 = vcombine.low %v289_v24, %v297_v25  ;;  %v2937_v37 = vcombine.low %v290_v26, %v298_v27  ;;  %v268_v14 = vld [vmem:[%s4192_s1 + $0xd8] sm:$0xff] }
  0x26   : > { %1144 = vmatpush1.bf16.msra.mxu0 %v2903_v20  ;;  %1257 = vmatpush1.bf16.msra.mxu1 %v2905_v21  ;;  %v313_v33 = vld [vmem:[%s4192_s1 + $0x240] sm:$0xff]  ;;  %v314_v35 = vld [vmem:[%s4192_s1 + $0x248] sm:$0xff]  ;;  %v275_v17 = vld [vmem:[%s4192_s1 + $0x110] sm:$0xff]  ;;  %v2910_v19 = vcombine.high %v260_v13, %v268_v14 }
  0x27   : > { %1145 = vmatprep.subr.bf16.mxu0 %v2920_v22  ;;  %1258 = vmatprep.subr.bf16.mxu1 %v2922_v23  ;;  %v2952_v38 = vcombine.high %v305_v32, %v313_v33  ;;  %v2954_v39 = vcombine.high %v306_v34, %v314_v35  ;;  %v321_v40 = vld [vmem:[%s4192_s1 + $0x280] sm:$0xff]  ;;  %v322_v42 = vld [vmem:[%s4192_s1 + $0x288] sm:$0xff]  ;;  %v2951_v44 = vcombine.low %v305_v32, %v313_v33  ;;  %v283_v18 = vld [vmem:[%s4192_s1 + $0x150] sm:$0xff] }
  0x28   : > { %v329_v41 = vld [vmem:[%s4192_s1 + $0x2c0] sm:$0xff]  ;;  %v330_v43 = vld [vmem:[%s4192_s1 + $0x2c8] sm:$0xff]  ;;  %v2953_v45 = vcombine.low %v306_v34, %v314_v35  ;;  %v276_v20 = vld [vmem:[%s4192_s1 + $0x118] sm:$0xff]  ;;  %v2907_v22 = vcombine.low %v259_v10, %v267_v11  ;;  %v2909_v23 = vcombine.low %v260_v13, %v268_v14  ;;  %v2924_v24 = vcombine.high %v275_v17, %v283_v18 }
  0x29   : > { %v2968_v46 = vcombine.high %v321_v40, %v329_v41  ;;  %v2970_v47 = vcombine.high %v322_v42, %v330_v43  ;;  %v337_v48 = vld [vmem:[%s4192_s1 + $0x300] sm:$0xff]  ;;  %v338_v50 = vld [vmem:[%s4192_s1 + $0x308] sm:$0xff]  ;;  %v2967_v52 = vcombine.low %v321_v40, %v329_v41  ;;  %v2969_v53 = vcombine.low %v322_v42, %v330_v43  ;;  %v284_v21 = vld [vmem:[%s4192_s1 + $0x158] sm:$0xff] }
  0x2a   : > { %1146 = vmatpush1.bf16.msra.mxu0 %v2919_v28  ;;  %1259 = vmatpush1.bf16.msra.mxu1 %v2921_v29  ;;  %v345_v49 = vld [vmem:[%s4192_s1 + $0x340] sm:$0xff]  ;;  %v346_v51 = vld [vmem:[%s4192_s1 + $0x348] sm:$0xff]  ;;  %v2926_v25 = vcombine.high %v276_v20, %v284_v21  ;;  %v291_v27 = vld [vmem:[%s4192_s1 + $0x190] sm:$0xff]  ;;  %v2925_v32 = vcombine.low %v276_v20, %v284_v21 }
  0x2b   : > { %1147 = vmatprep.subr.bf16.mxu0 %v2936_v30  ;;  %1260 = vmatprep.subr.bf16.mxu1 %v2938_v31  ;;  %v2984_v54 = vcombine.high %v337_v48, %v345_v49  ;;  %v353_v55 = vld [vmem:[%s4192_s1 + $0x380] sm:$0xff]  ;;  %v2986_v56 = vcombine.high %v338_v50, %v346_v51  ;;  %v354_v58 = vld [vmem:[%s4192_s1 + $0x388] sm:$0xff]  ;;  %v2983_v60 = vcombine.low %v337_v48, %v345_v49  ;;  %v299_v28 = vld [vmem:[%s4192_s1 + $0x1d0] sm:$0xff] }
  0x2c   : > { %v361_v57 = vld [vmem:[%s4192_s1 + $0x3c0] sm:$0xff]  ;;  %v362_v59 = vld [vmem:[%s4192_s1 + $0x3c8] sm:$0xff]  ;;  %v2985_v61 = vcombine.low %v338_v50, %v346_v51  ;;  %v292_v29 = vld [vmem:[%s4192_s1 + $0x198] sm:$0xff]  ;;  %v2923_v31 = vcombine.low %v275_v17, %v283_v18  ;;  %v2940_v33 = vcombine.high %v291_v27, %v299_v28 }
  0x2d   : > { %v3000_v62 = vcombine.high %v353_v55, %v361_v57  ;;  %v3002_v63 = vcombine.high %v354_v58, %v362_v59  ;;  %v2999_v4 = vcombine.low %v353_v55, %v361_v57  ;;  %v3001_v5 = vcombine.low %v354_v58, %v362_v59  ;;  %v3334_v8 = vld [vmem:[%s3220_s8] sm:$0xff]   ;;  %v3365_v26 = vld [vmem:[%s3220_s8 + $0x8] sm:$0xff]   ;;  %v300_v30 = vld [vmem:[%s4192_s1 + $0x1d8] sm:$0xff] }
  0x2e   : > { %1148 = vmatpush1.bf16.msra.mxu0 %v2935_v36  ;;  %1261 = vmatpush1.bf16.msra.mxu1 %v2937_v37  ;;  %v2942_v34 = vcombine.high %v292_v29, %v300_v30  ;;  %v307_v35 = vld [vmem:[%s4192_s1 + $0x210] sm:$0xff]  ;;  %v308_v37 = vld [vmem:[%s4192_s1 + $0x218] sm:$0xff]  ;;  %v2941_v40 = vcombine.low %v292_v29, %v300_v30  ;;  %v254_v10 = vld [vmem:[%s4192_s1 + $0x68] sm:$0xff] }
  0x2f   : > { %1149 = vmatprep.subr.bf16.mxu0 %v2952_v38  ;;  %1262 = vmatprep.subr.bf16.mxu1 %v2954_v39  ;;  %v315_v36 = vld [vmem:[%s4192_s1 + $0x250] sm:$0xff]  ;;  %v316_v38 = vld [vmem:[%s4192_s1 + $0x258] sm:$0xff]  ;;  %v2939_v39 = vcombine.low %v291_v27, %v299_v28  ;;  %v3458_v14 = vld [vmem:[%s3220_s8 + $0x20] sm:$0xff]  }
  0x30   : > { %v2956_v41 = vcombine.high %v307_v35, %v315_v36  ;;  %v3396_v42 = vld [vmem:[%s3220_s8 + $0x10] sm:$0xff]   ;;  %v2958_v43 = vcombine.high %v308_v37, %v316_v38  ;;  %v2955_v48 = vcombine.low %v307_v35, %v315_v36  ;;  %v2957_v49 = vcombine.low %v308_v37, %v316_v38  ;;  %v348_v55 = vld [vmem:[%s4192_s1 + $0x358] sm:$0xff]  ;;  %v269_v20 = vld [vmem:[%s4192_s1 + $0xe0] sm:$0xff] }
  0x31   : > { %v3427_v59 = vld [vmem:[%s3220_s8 + $0x18] sm:$0xff]   ;;  %v3472_v17 = vld [vmem:[%s3220_s8 + $0x30] sm:$0xff]   ;;  %v277_v27 = vld [vmem:[%s4192_s1 + $0x120] sm:$0xff] }
  0x32   : > { %1150 = vmatpush1.bf16.msra.mxu0 %v2951_v44  ;;  %1263 = vmatpush1.bf16.msra.mxu1 %v2953_v45  ;;  %v323_v44 = vld [vmem:[%s4192_s1 + $0x290] sm:$0xff]  ;;  %v364_v0 = vld [vmem:[%s4192_s1 + $0x3d8] sm:$0xff]  ;;  %v285_v28 = vld [vmem:[%s4192_s1 + $0x160] sm:$0xff] }
  0x33   : > { %1151 = vmatprep.subr.bf16.mxu0 %v2968_v46  ;;  %1264 = vmatprep.subr.bf16.mxu1 %v2970_v47  ;;  %v331_v45 = vld [vmem:[%s4192_s1 + $0x2d0] sm:$0xff]  ;;  %v324_v46 = vld [vmem:[%s4192_s1 + $0x298] sm:$0xff]  ;;  %v278_v30 = vld [vmem:[%s4192_s1 + $0x128] sm:$0xff] }
  0x34   : > { %v332_v47 = vld [vmem:[%s4192_s1 + $0x2d8] sm:$0xff]  ;;  %v2972_v50 = vcombine.high %v323_v44, %v331_v45  ;;  %v293_v36 = vld [vmem:[%s4192_s1 + $0x1a0] sm:$0xff]  ;;  %v294_v38 = vld [vmem:[%s4192_s1 + $0x1a8] sm:$0xff] }
  0x35   : > { %v2974_v51 = vcombine.high %v324_v46, %v332_v47  ;;  %v2973_v57 = vcombine.low %v324_v46, %v332_v47  ;;  %v3479_v18 = vld [vmem:[%s3220_s8 + $0x38] sm:$0xff]   ;;  %v301_v37 = vld [vmem:[%s4192_s1 + $0x1e0] sm:$0xff]  ;;  %v310_v47 = vld [vmem:[%s4192_s1 + $0x228] sm:$0xff] }
  0x36   : > { %1152 = vmatpush1.bf16.msra.mxu0 %v2967_v52  ;;  %1265 = vmatpush1.bf16.msra.mxu1 %v2969_v53  ;;  %v339_v52 = vld [vmem:[%s4192_s1 + $0x310] sm:$0xff]  ;;  %v317_v46 = vld [vmem:[%s4192_s1 + $0x260] sm:$0xff] }
  0x37   : > { %1153 = vmatprep.subr.bf16.mxu0 %v2984_v54  ;;  %1266 = vmatprep.subr.bf16.mxu1 %v2986_v56  ;;  %v347_v53 = vld [vmem:[%s4192_s1 + $0x350] sm:$0xff]  ;;  %v340_v54 = vld [vmem:[%s4192_s1 + $0x318] sm:$0xff]  ;;  %v2971_v56 = vcombine.low %v323_v44, %v331_v45  ;;  %v309_v45 = vld [vmem:[%s4192_s1 + $0x220] sm:$0xff] }
  0x38   : > { %v2988_v58 = vcombine.high %v339_v52, %v347_v53  ;;  %v2987_v1 = vcombine.low %v339_v52, %v347_v53  ;;  %v2989_v2 = vcombine.low %v340_v54, %v348_v55  ;;  %v325_v53 = vld [vmem:[%s4192_s1 + $0x2a0] sm:$0xff] }
  0x3a   : > { %1154 = vmatpush1.bf16.msra.mxu0 %v2983_v60  ;;  %1267 = vmatpush1.bf16.msra.mxu1 %v2985_v61  ;;  %v2990_v60 = vcombine.high %v340_v54, %v348_v55  ;;  %v355_v61 = vld [vmem:[%s4192_s1 + $0x390] sm:$0xff]  ;;  %v333_v54 = vld [vmem:[%s4192_s1 + $0x2e0] sm:$0xff]  ;;  %v326_v55 = vld [vmem:[%s4192_s1 + $0x2a8] sm:$0xff] }
  0x3b   : > { %1155 = vmatprep.subr.bf16.mxu0 %v3000_v62  ;;  %1268 = vmatprep.subr.bf16.mxu1 %v3002_v63  ;;  %v363_v62 = vld [vmem:[%s4192_s1 + $0x3d0] sm:$0xff]  ;;  %v356_v63 = vld [vmem:[%s4192_s1 + $0x398] sm:$0xff] }
  0x3c   : > { %v3004_v3 = vcombine.high %v355_v61, %v363_v62  ;;  %v3003_v11 = vcombine.low %v355_v61, %v363_v62  ;;  %v341_v62 = vld [vmem:[%s4192_s1 + $0x320] sm:$0xff] }
  0x3e   : > { %1156 = vmatpush1.bf16.msra.mxu0 %v2999_v4  ;;  %1269 = vmatpush1.bf16.msra.mxu1 %v3001_v5  ;;  %v3006_v4 = vcombine.high %v356_v63, %v364_v0  ;;  %v245_v5 = vld [vmem:[%s4192_s1 + $0x20] sm:$0xff] }
  0x3f   : > { %1367 = vmatprep.subr.bf16.mxu0 %v2892_v6  ;;  %1480 = vmatprep.subr.bf16.mxu1 %v2894_v7  ;;  %v253_v6 = vld [vmem:[%s4192_s1 + $0x60] sm:$0xff]  ;;  %v246_v7 = vld [vmem:[%s4192_s1 + $0x28] sm:$0xff] }
  0x40   : > { %v2896_v13 = vcombine.high %v245_v5, %v253_v6  ;;  %v2895_v21 = vcombine.low %v245_v5, %v253_v6  ;;  %v357_v6 = vld [vmem:[%s4192_s1 + $0x3a0] sm:$0xff] }
  0x41   : > { %1174 = vmatmul.mubr.bf16.vlgmr.msra.gmra.mrb[0].mxu0 %v3334_v8  ;;  %1287 = vmatmul.mubr.bf16.vlgmr.msra.gmra.mrb[0].mxu1 %v3334_v8 }
  0x42   : > { %1368 = vmatpush1.bf16.msra.mxu0 %v2891_v12  ;;  %1481 = vmatpush1.bf16.msra.mxu1 %v2893_v15  ;;  %v3005_v12 = vcombine.low %v356_v63, %v364_v0  ;;  %v2898_v15 = vcombine.high %v246_v7, %v254_v10  ;;  %v349_v63 = vld [vmem:[%s4192_s1 + $0x360] sm:$0xff]  ;;  %v342_v0 = vld [vmem:[%s4192_s1 + $0x328] sm:$0xff] }
  0x43   : > { %1183 = vmatprep.mubr.bf16.mxu0 %v3141_v9  ;;  %1296 = vmatprep.mubr.bf16.mxu1 %v3141_v9 }
  0x44   : > { %1369 = vmatprep.subr.bf16.mxu0 %v2908_v16  ;;  %1482 = vmatprep.subr.bf16.mxu1 %v2910_v19  ;;  %v3465_v16 = vld [vmem:[%s3220_s8 + $0x28] sm:$0xff]   ;;  %v261_v19 = vld [vmem:[%s4192_s1 + $0xa0] sm:$0xff] }
  0x46   : > { %1370 = vmatpush1.bf16.msra.mxu0 %v2907_v22  ;;  %1483 = vmatpush1.bf16.msra.mxu1 %v2909_v23  ;;  %v262_v22 = vld [vmem:[%s4192_s1 + $0xa8] sm:$0xff] }
  0x47   : > { %1371 = vmatprep.subr.bf16.mxu0 %v2924_v24  ;;  %1484 = vmatprep.subr.bf16.mxu1 %v2926_v25  ;;  %v270_v23 = vld [vmem:[%s4192_s1 + $0xe8] sm:$0xff]  ;;  %v2897_v24 = vcombine.low %v246_v7, %v254_v10  ;;  %v2912_v25 = vcombine.high %v261_v19, %v269_v20  ;;  %v365_v7 = vld [vmem:[%s4192_s1 + $0x3e0] sm:$0xff] }
  0x48   : > { %v2914_v29 = vcombine.high %v262_v22, %v270_v23  ;;  %v358_v10 = vld [vmem:[%s4192_s1 + $0x3a8] sm:$0xff] }
  0x49   : > { %1184 = vmatmul.mubr.bf16.gmra.mrb[4].mxu0 %v3365_v26  ;;  %1297 = vmatmul.mubr.bf16.gmra.mrb[4].mxu1 %v3365_v26 }
  0x4a   : > { %1193 = vmatprep.mubr.bf16.mxu0 %v3141_v9  ;;  %1306 = vmatprep.mubr.bf16.mxu1 %v3141_v9 }
  0x4b   : > { %1372 = vmatpush1.bf16.msra.mxu0 %v2923_v31  ;;  %1485 = vmatpush1.bf16.msra.mxu1 %v2925_v32  ;;  %v286_v31 = vld [vmem:[%s4192_s1 + $0x168] sm:$0xff]  ;;  %v2911_v32 = vcombine.low %v261_v19, %v269_v20  ;;  %v247_v20 = vld [vmem:[%s4192_s1 + $0x30] sm:$0xff] }
  0x4c   : > { %1373 = vmatprep.subr.bf16.mxu0 %v2940_v33  ;;  %1486 = vmatprep.subr.bf16.mxu1 %v2942_v34  ;;  %v2913_v33 = vcombine.low %v262_v22, %v270_v23  ;;  %v2928_v34 = vcombine.high %v277_v27, %v285_v28  ;;  %v2930_v35 = vcombine.high %v278_v30, %v286_v31  ;;  %v248_v22 = vld [vmem:[%s4192_s1 + $0x38] sm:$0xff] }
  0x4d   : > { %v256_v23 = vld [vmem:[%s4192_s1 + $0x78] sm:$0xff] }
  0x4f   : > { %1374 = vmatpush1.bf16.msra.mxu0 %v2939_v39  ;;  %1487 = vmatpush1.bf16.msra.mxu1 %v2941_v40  ;;  %v302_v39 = vld [vmem:[%s4192_s1 + $0x1e8] sm:$0xff]  ;;  %v2927_v40 = vcombine.low %v277_v27, %v285_v28  ;;  %v2902_v28 = vcombine.high %v248_v22, %v256_v23 }
  0x50   : > { %1375 = vmatprep.subr.bf16.mxu0 %v2956_v41  ;;  %1488 = vmatprep.subr.bf16.mxu1 %v2958_v43  ;;  %v2929_v41 = vcombine.low %v278_v30, %v286_v31  ;;  %v2944_v43 = vcombine.high %v293_v36, %v301_v37  ;;  %v2946_v44 = vcombine.high %v294_v38, %v302_v39  ;;  %v271_v30 = vld [vmem:[%s4192_s1 + $0xf0] sm:$0xff] }
  0x51   : > { %1194 = vmatmul.mubr.bf16.gmra.mrb[8].mxu0 %v3396_v42  ;;  %1307 = vmatmul.mubr.bf16.gmra.mrb[8].mxu1 %v3396_v42 }
  0x52   : > { %1203 = vmatprep.mubr.bf16.mxu0 %v3141_v9  ;;  %1316 = vmatprep.mubr.bf16.mxu1 %v3141_v9 }
  0x53   : > { %1376 = vmatpush1.bf16.msra.mxu0 %v2955_v48  ;;  %1489 = vmatpush1.bf16.msra.mxu1 %v2957_v49  ;;  %v318_v48 = vld [vmem:[%s4192_s1 + $0x268] sm:$0xff]  ;;  %v2943_v49 = vcombine.low %v293_v36, %v301_v37  ;;  %v279_v36 = vld [vmem:[%s4192_s1 + $0x130] sm:$0xff] }
  0x54   : > { %1377 = vmatprep.subr.bf16.mxu0 %v2972_v50  ;;  %1490 = vmatprep.subr.bf16.mxu1 %v2974_v51  ;;  %v2945_v50 = vcombine.low %v294_v38, %v302_v39  ;;  %v2960_v51 = vcombine.high %v309_v45, %v317_v46  ;;  %v2962_v52 = vcombine.high %v310_v47, %v318_v48  ;;  %v287_v37 = vld [vmem:[%s4192_s1 + $0x170] sm:$0xff]  ;;  %v280_v39 = vld [vmem:[%s4192_s1 + $0x138] sm:$0xff] }
  0x57   : > { %1378 = vmatpush1.bf16.msra.mxu0 %v2971_v56  ;;  %1491 = vmatpush1.bf16.msra.mxu1 %v2973_v57  ;;  %v334_v56 = vld [vmem:[%s4192_s1 + $0x2e8] sm:$0xff]  ;;  %v2959_v57 = vcombine.low %v309_v45, %v317_v46  ;;  %v295_v46 = vld [vmem:[%s4192_s1 + $0x1b0] sm:$0xff] }
  0x58   : > { %1379 = vmatprep.subr.bf16.mxu0 %v2988_v58  ;;  %1492 = vmatprep.subr.bf16.mxu1 %v2990_v60  ;;  %v2961_v58 = vcombine.low %v310_v47, %v318_v48  ;;  %v2976_v60 = vcombine.high %v325_v53, %v333_v54  ;;  %v2978_v61 = vcombine.high %v326_v55, %v334_v56  ;;  %v303_v47 = vld [vmem:[%s4192_s1 + $0x1f0] sm:$0xff]  ;;  %v296_v48 = vld [vmem:[%s4192_s1 + $0x1b8] sm:$0xff] }
  0x59   : > { %1204 = vmatmul.mubr.bf16.gmra.mrb[12].mxu0 %v3427_v59  ;;  %1317 = vmatmul.mubr.bf16.gmra.mrb[12].mxu1 %v3427_v59 }
  0x5a   : > { %1213 = vmatprep.mubr.bf16.mxu0 %v3141_v9  ;;  %1326 = vmatprep.mubr.bf16.mxu1 %v3141_v9 }
  0x5b   : > { %1380 = vmatpush1.bf16.msra.mxu0 %v2987_v1  ;;  %1493 = vmatpush1.bf16.msra.mxu1 %v2989_v2  ;;  %v350_v1 = vld [vmem:[%s4192_s1 + $0x368] sm:$0xff]  ;;  %v2975_v2 = vcombine.low %v325_v53, %v333_v54  ;;  %v311_v54 = vld [vmem:[%s4192_s1 + $0x230] sm:$0xff] }
  0x5c   : > { %1381 = vmatprep.subr.bf16.mxu0 %v3004_v3  ;;  %1494 = vmatprep.subr.bf16.mxu1 %v3006_v4  ;;  %v2977_v3 = vcombine.low %v326_v55, %v334_v56  ;;  %v2992_v4 = vcombine.high %v341_v62, %v349_v63  ;;  %v2994_v5 = vcombine.high %v342_v0, %v350_v1  ;;  %v319_v55 = vld [vmem:[%s4192_s1 + $0x270] sm:$0xff]  ;;  %v312_v56 = vld [vmem:[%s4192_s1 + $0x238] sm:$0xff] }
  0x5f   : > { %1382 = vmatpush1.bf16.msra.mxu0 %v3003_v11  ;;  %1495 = vmatpush1.bf16.msra.mxu1 %v3005_v12  ;;  %v366_v11 = vld [vmem:[%s4192_s1 + $0x3e8] sm:$0xff]  ;;  %v2991_v12 = vcombine.low %v341_v62, %v349_v63  ;;  %v327_v63 = vld [vmem:[%s4192_s1 + $0x2b0] sm:$0xff] }
  0x60   : > { %1593 = vmatprep.subr.bf16.mxu0 %v2896_v13  ;;  %1706 = vmatprep.subr.bf16.mxu1 %v2898_v15  ;;  %v2993_v13 = vcombine.low %v342_v0, %v350_v1  ;;  %v3008_v15 = vcombine.high %v357_v6, %v365_v7  ;;  %v3010_v19 = vcombine.high %v358_v10, %v366_v11  ;;  %v335_v0 = vld [vmem:[%s4192_s1 + $0x2f0] sm:$0xff]  ;;  %v328_v1 = vld [vmem:[%s4192_s1 + $0x2b8] sm:$0xff] }
  0x61   : > { %1214 = vmatmul.mubr.bf16.gmra.mrb[16].mxu0 %v3458_v14  ;;  %1327 = vmatmul.mubr.bf16.gmra.mrb[16].mxu1 %v3458_v14 }
  0x62   : > { %1223 = vmatprep.mubr.bf16.mxu0 %v3141_v9  ;;  %1336 = vmatprep.mubr.bf16.mxu1 %v3141_v9 }
  0x69   : > { %1224 = vmatmul.mubr.bf16.gmra.mrb[20].mxu0 %v3465_v16  ;;  %1337 = vmatmul.mubr.bf16.gmra.mrb[20].mxu1 %v3465_v16 }
  0x6a   : > { %1233 = vmatprep.mubr.bf16.mxu0 %v3141_v9  ;;  %1346 = vmatprep.mubr.bf16.mxu1 %v3141_v9 }
  0x71   : > { %1234 = vmatmul.mubr.bf16.gmra.mrb[24].mxu0 %v3472_v17  ;;  %1347 = vmatmul.mubr.bf16.gmra.mrb[24].mxu1 %v3472_v17 }
  0x72   : > { %1243 = vmatprep.mubr.bf16.mxu0 %v3141_v9  ;;  %1356 = vmatprep.mubr.bf16.mxu1 %v3141_v9 }
  0x79   : > { %1244 = vmatmul.mubr.bf16.gmra.mrb[28].mxu0 %v3479_v18  ;;  %1357 = vmatmul.mubr.bf16.gmra.mrb[28].mxu1 %v3479_v18 }
  0x7a   : > { %1399 = vmatprep.mubr.bf16.mxu0 %v3141_v9  ;;  %1512 = vmatprep.mubr.bf16.mxu1 %v3141_v9 }
  0x81   : > { %1400 = vmatmul.mubr.bf16.vlgmr.msra.gmra.mrb[32].mxu0 %v3334_v8  ;;  %1513 = vmatmul.mubr.bf16.vlgmr.msra.gmra.mrb[32].mxu1 %v3334_v8 }
  0x82   : > { %1594 = vmatpush1.bf16.msra.mxu0 %v2895_v21  ;;  %1707 = vmatpush1.bf16.msra.mxu1 %v2897_v24  ;;  %v255_v21 = vld [vmem:[%s4192_s1 + $0x70] sm:$0xff]  ;;  %v3007_v24 = vcombine.low %v357_v6, %v365_v7 }
  0x83   : > { %1409 = vmatprep.mubr.bf16.mxu0 %v3141_v9  ;;  %1522 = vmatprep.mubr.bf16.mxu1 %v3141_v9  ;;  %v2900_v27 = vcombine.high %v247_v20, %v255_v21  ;;  %v2899_v31 = vcombine.low %v247_v20, %v255_v21  ;;  %v343_v7 = vld [vmem:[%s4192_s1 + $0x330] sm:$0xff] }
  0x84   : > { %1595 = vmatprep.subr.bf16.mxu0 %v2912_v25  ;;  %1708 = vmatprep.subr.bf16.mxu1 %v2914_v29  ;;  %v3009_v25 = vcombine.low %v358_v10, %v366_v11  ;;  %v263_v29 = vld [vmem:[%s4192_s1 + $0xb0] sm:$0xff]  ;;  %v344_v11 = vld [vmem:[%s4192_s1 + $0x338] sm:$0xff] }
  0x85   : > { %v351_v10 = vld [vmem:[%s4192_s1 + $0x370] sm:$0xff] }
  0x86   : > { %1596 = vmatpush1.bf16.msra.mxu0 %v2911_v32  ;;  %1709 = vmatpush1.bf16.msra.mxu1 %v2913_v33  ;;  %v264_v32 = vld [vmem:[%s4192_s1 + $0xb8] sm:$0xff]  ;;  %v359_v21 = vld [vmem:[%s4192_s1 + $0x3b0] sm:$0xff] }
  0x87   : > { %1597 = vmatprep.subr.bf16.mxu0 %v2928_v34  ;;  %1710 = vmatprep.subr.bf16.mxu1 %v2930_v35  ;;  %v272_v33 = vld [vmem:[%s4192_s1 + $0xf8] sm:$0xff]  ;;  %v2901_v34 = vcombine.low %v248_v22, %v256_v23  ;;  %v2916_v35 = vcombine.high %v263_v29, %v271_v30  ;;  %v367_v22 = vld [vmem:[%s4192_s1 + $0x3f0] sm:$0xff] }
  0x88   : > { %v2918_v38 = vcombine.high %v264_v32, %v272_v33  ;;  %v360_v23 = vld [vmem:[%s4192_s1 + $0x3b8] sm:$0xff] }
  0x89   : > { %1410 = vmatmul.mubr.bf16.gmra.mrb[36].mxu0 %v3365_v26  ;;  %1523 = vmatmul.mubr.bf16.gmra.mrb[36].mxu1 %v3365_v26 }
  0x8a   : > { %1419 = vmatprep.mubr.bf16.mxu0 %v3141_v9  ;;  %1532 = vmatprep.mubr.bf16.mxu1 %v3141_v9 }
  0x8b   : > { %1598 = vmatpush1.bf16.msra.mxu0 %v2927_v40  ;;  %1711 = vmatpush1.bf16.msra.mxu1 %v2929_v41  ;;  %v288_v40 = vld [vmem:[%s4192_s1 + $0x178] sm:$0xff]  ;;  %v2915_v41 = vcombine.low %v263_v29, %v271_v30  ;;  %v3011_v30 = vcombine.low %v359_v21, %v367_v22 }
  0x8c   : > { %1599 = vmatprep.subr.bf16.mxu0 %v2944_v43  ;;  %1712 = vmatprep.subr.bf16.mxu1 %v2946_v44  ;;  %v2917_v43 = vcombine.low %v264_v32, %v272_v33  ;;  %v2932_v44 = vcombine.high %v279_v36, %v287_v37  ;;  %v2934_v45 = vcombine.high %v280_v39, %v288_v40  ;;  %v373_v32 = vlaneseq }
  0x8e   : > { %v3734_v33 = vshrl.u32 %v373_v32, 7 }
  0x8f   : > { %1600 = vmatpush1.bf16.msra.mxu0 %v2943_v49  ;;  %1713 = vmatpush1.bf16.msra.mxu1 %v2945_v50  ;;  %v304_v49 = vld [vmem:[%s4192_s1 + $0x1f8] sm:$0xff]  ;;  %v2931_v50 = vcombine.low %v279_v36, %v287_v37 }
  0x90   : > { %1601 = vmatprep.subr.bf16.mxu0 %v2960_v51  ;;  %1714 = vmatprep.subr.bf16.mxu1 %v2962_v52  ;;  %v2933_v51 = vcombine.low %v280_v39, %v288_v40  ;;  %v2948_v52 = vcombine.high %v295_v46, %v303_v47  ;;  %v2950_v53 = vcombine.high %v296_v48, %v304_v49  ;;  %v379_v36 = vsub.s32 1, %v3734_v33 }
  0x91   : > { %1420 = vmatmul.mubr.bf16.gmra.mrb[40].mxu0 %v3396_v42  ;;  %1533 = vmatmul.mubr.bf16.gmra.mrb[40].mxu1 %v3396_v42  ;;  %v387_v37 = vsub.s32 3, %v3734_v33 }
  0x92   : > { %1429 = vmatprep.mubr.bf16.mxu0 %v3141_v9  ;;  %1542 = vmatprep.mubr.bf16.mxu1 %v3141_v9 }
  0x93   : > { %1602 = vmatpush1.bf16.msra.mxu0 %v2959_v57  ;;  %1715 = vmatpush1.bf16.msra.mxu1 %v2961_v58  ;;  %v320_v57 = vld [vmem:[%s4192_s1 + $0x278] sm:$0xff]  ;;  %v2947_v58 = vcombine.low %v295_v46, %v303_v47 }
  0x94   : > { %1603 = vmatprep.subr.bf16.mxu0 %v2976_v60  ;;  %1716 = vmatprep.subr.bf16.mxu1 %v2978_v61  ;;  %v2949_v60 = vcombine.low %v296_v48, %v304_v49  ;;  %v2964_v61 = vcombine.high %v311_v54, %v319_v55  ;;  %v2966_v62 = vcombine.high %v312_v56, %v320_v57 }
  0x97   : > { %1604 = vmatpush1.bf16.msra.mxu0 %v2975_v2  ;;  %1717 = vmatpush1.bf16.msra.mxu1 %v2977_v3  ;;  %v336_v2 = vld [vmem:[%s4192_s1 + $0x2f8] sm:$0xff]  ;;  %v2963_v3 = vcombine.low %v311_v54, %v319_v55 }
  0x98   : > { %1605 = vmatprep.subr.bf16.mxu0 %v2992_v4  ;;  %1718 = vmatprep.subr.bf16.mxu1 %v2994_v5  ;;  %v2965_v4 = vcombine.low %v312_v56, %v320_v57  ;;  %v2980_v5 = vcombine.high %v327_v63, %v335_v0  ;;  %v2982_v6 = vcombine.high %v328_v1, %v336_v2 }
  0x99   : > { %1430 = vmatmul.mubr.bf16.gmra.mrb[44].mxu0 %v3427_v59  ;;  %1543 = vmatmul.mubr.bf16.gmra.mrb[44].mxu1 %v3427_v59 }
  0x9a   : > { %1439 = vmatprep.mubr.bf16.mxu0 %v3141_v9  ;;  %1552 = vmatprep.mubr.bf16.mxu1 %v3141_v9 }
  0x9b   : > { %1606 = vmatpush1.bf16.msra.mxu0 %v2991_v12  ;;  %1719 = vmatpush1.bf16.msra.mxu1 %v2993_v13  ;;  %v352_v12 = vld [vmem:[%s4192_s1 + $0x378] sm:$0xff]  ;;  %v2979_v13 = vcombine.low %v327_v63, %v335_v0 }
  0x9c   : > { %1607 = vmatprep.subr.bf16.mxu0 %v3008_v15  ;;  %1720 = vmatprep.subr.bf16.mxu1 %v3010_v19  ;;  %v2981_v15 = vcombine.low %v328_v1, %v336_v2  ;;  %v2996_v19 = vcombine.high %v343_v7, %v351_v10  ;;  %v2998_v20 = vcombine.high %v344_v11, %v352_v12 }
  0x9f   : > { %1608 = vmatpush1.bf16.msra.mxu0 %v3007_v24  ;;  %1721 = vmatpush1.bf16.msra.mxu1 %v3009_v25  ;;  %v368_v24 = vld [vmem:[%s4192_s1 + $0x3f8] sm:$0xff]  ;;  %v2995_v25 = vcombine.low %v343_v7, %v351_v10 }
  0xa0   : > { %1819 = vmatprep.subr.bf16.mxu0 %v2900_v27  ;;  %1932 = vmatprep.subr.bf16.mxu1 %v2902_v28  ;;  %v2997_v27 = vcombine.low %v344_v11, %v352_v12  ;;  %v3012_v28 = vcombine.high %v359_v21, %v367_v22  ;;  %v3014_v29 = vcombine.high %v360_v23, %v368_v24 }
  0xa1   : > { %1440 = vmatmul.mubr.bf16.gmra.mrb[48].mxu0 %v3458_v14  ;;  %1553 = vmatmul.mubr.bf16.gmra.mrb[48].mxu1 %v3458_v14 }
  0xa2   : > { %1449 = vmatprep.mubr.bf16.mxu0 %v3141_v9  ;;  %1562 = vmatprep.mubr.bf16.mxu1 %v3141_v9 }
  0xa9   : > { %1450 = vmatmul.mubr.bf16.gmra.mrb[52].mxu0 %v3465_v16  ;;  %1563 = vmatmul.mubr.bf16.gmra.mrb[52].mxu1 %v3465_v16 }
  0xaa   : > { %1459 = vmatprep.mubr.bf16.mxu0 %v3141_v9  ;;  %1572 = vmatprep.mubr.bf16.mxu1 %v3141_v9 }
  0xb1   : > { %1460 = vmatmul.mubr.bf16.gmra.mrb[56].mxu0 %v3472_v17  ;;  %1573 = vmatmul.mubr.bf16.gmra.mrb[56].mxu1 %v3472_v17 }
  0xb2   : > { %1469 = vmatprep.mubr.bf16.mxu0 %v3141_v9  ;;  %1582 = vmatprep.mubr.bf16.mxu1 %v3141_v9 }
  0xb9   : > { %1470 = vmatmul.mubr.bf16.gmra.mrb[60].mxu0 %v3479_v18  ;;  %1583 = vmatmul.mubr.bf16.gmra.mrb[60].mxu1 %v3479_v18 }
  0xba   : > { %1625 = vmatprep.mubr.bf16.mxu0 %v3141_v9  ;;  %1738 = vmatprep.mubr.bf16.mxu1 %v3141_v9 }
  0xc1   : > { %1626 = vmatmul.mubr.bf16.vlgmr.msra.gmra.mrb[64].mxu0 %v3334_v8  ;;  %1739 = vmatmul.mubr.bf16.vlgmr.msra.gmra.mrb[64].mxu1 %v3334_v8 }
  0xc2   : > { %1820 = vmatpush1.bf16.msra.mxu0 %v2899_v31  ;;  %1933 = vmatpush1.bf16.msra.mxu1 %v2901_v34  ;;  %v3013_v31 = vcombine.low %v360_v23, %v368_v24  ;;  %v375_v34 = vsub.s32 0, %v3734_v33 }
  0xc3   : > { %1635 = vmatprep.mubr.bf16.mxu0 %v3141_v9  ;;  %1748 = vmatprep.mubr.bf16.mxu1 %v3141_v9 }
  0xc4   : > { %1821 = vmatprep.subr.bf16.mxu0 %v2916_v35  ;;  %1934 = vmatprep.subr.bf16.mxu1 %v2918_v38  ;;  %v383_v35 = vsub.s32 2, %v3734_v33 }
  0xc6   : > { %1822 = vmatpush1.bf16.msra.mxu0 %v2915_v41  ;;  %1935 = vmatpush1.bf16.msra.mxu1 %v2917_v43 }
  0xc7   : > { %1823 = vmatprep.subr.bf16.mxu0 %v2932_v44  ;;  %1936 = vmatprep.subr.bf16.mxu1 %v2934_v45 }
  0xc9   : > { %1636 = vmatmul.mubr.bf16.gmra.mrb[68].mxu0 %v3365_v26  ;;  %1749 = vmatmul.mubr.bf16.gmra.mrb[68].mxu1 %v3365_v26 }
  0xca   : > { %1645 = vmatprep.mubr.bf16.mxu0 %v3141_v9  ;;  %1758 = vmatprep.mubr.bf16.mxu1 %v3141_v9 }
  0xcb   : > { %1824 = vmatpush1.bf16.msra.mxu0 %v2931_v50  ;;  %1937 = vmatpush1.bf16.msra.mxu1 %v2933_v51 }
  0xcc   : > { %1825 = vmatprep.subr.bf16.mxu0 %v2948_v52  ;;  %1938 = vmatprep.subr.bf16.mxu1 %v2950_v53 }
  0xcf   : > { %1826 = vmatpush1.bf16.msra.mxu0 %v2947_v58  ;;  %1939 = vmatpush1.bf16.msra.mxu1 %v2949_v60 }
  0xd0   : > { %1827 = vmatprep.subr.bf16.mxu0 %v2964_v61  ;;  %1940 = vmatprep.subr.bf16.mxu1 %v2966_v62 }
  0xd1   : > { %1646 = vmatmul.mubr.bf16.gmra.mrb[72].mxu0 %v3396_v42  ;;  %1759 = vmatmul.mubr.bf16.gmra.mrb[72].mxu1 %v3396_v42 }
  0xd2   : > { %1655 = vmatprep.mubr.bf16.mxu0 %v3141_v9  ;;  %1768 = vmatprep.mubr.bf16.mxu1 %v3141_v9 }
  0xd3   : > { %1828 = vmatpush1.bf16.msra.mxu0 %v2963_v3  ;;  %1941 = vmatpush1.bf16.msra.mxu1 %v2965_v4 }
  0xd4   : > { %1829 = vmatprep.subr.bf16.mxu0 %v2980_v5  ;;  %1942 = vmatprep.subr.bf16.mxu1 %v2982_v6 }
  0xd7   : > { %1830 = vmatpush1.bf16.msra.mxu0 %v2979_v13  ;;  %1943 = vmatpush1.bf16.msra.mxu1 %v2981_v15 }
  0xd8   : > { %1831 = vmatprep.subr.bf16.mxu0 %v2996_v19  ;;  %1944 = vmatprep.subr.bf16.mxu1 %v2998_v20 }
  0xd9   : > { %1656 = vmatmul.mubr.bf16.gmra.mrb[76].mxu0 %v3427_v59  ;;  %1769 = vmatmul.mubr.bf16.gmra.mrb[76].mxu1 %v3427_v59 }
  0xda   : > { %1665 = vmatprep.mubr.bf16.mxu0 %v3141_v9  ;;  %1778 = vmatprep.mubr.bf16.mxu1 %v3141_v9 }
  0xdb   : > { %1832 = vmatpush1.bf16.msra.mxu0 %v2995_v25  ;;  %1945 = vmatpush1.bf16.msra.mxu1 %v2997_v27 }
  0xdc   : > { %1833 = vmatprep.subr.bf16.mxu0 %v3012_v28  ;;  %1946 = vmatprep.subr.bf16.mxu1 %v3014_v29 }
  0xdf   : > { %1834 = vmatpush1.bf16.msra.mxu0 %v3011_v30  ;;  %1947 = vmatpush1.bf16.msra.mxu1 %v3013_v31 }
  0xe1   : > { %1666 = vmatmul.mubr.bf16.gmra.mrb[80].mxu0 %v3458_v14  ;;  %1779 = vmatmul.mubr.bf16.gmra.mrb[80].mxu1 %v3458_v14 }
  0xe2   : > { %1675 = vmatprep.mubr.bf16.mxu0 %v3141_v9  ;;  %1788 = vmatprep.mubr.bf16.mxu1 %v3141_v9 }
  0xe9   : > { %1676 = vmatmul.mubr.bf16.gmra.mrb[84].mxu0 %v3465_v16  ;;  %1789 = vmatmul.mubr.bf16.gmra.mrb[84].mxu1 %v3465_v16 }
  0xea   : > { %1685 = vmatprep.mubr.bf16.mxu0 %v3141_v9  ;;  %1798 = vmatprep.mubr.bf16.mxu1 %v3141_v9 }
  0xf1   : > { %1686 = vmatmul.mubr.bf16.gmra.mrb[88].mxu0 %v3472_v17  ;;  %1799 = vmatmul.mubr.bf16.gmra.mrb[88].mxu1 %v3472_v17 }
  0xf2   : > { %1695 = vmatprep.mubr.bf16.mxu0 %v3141_v9  ;;  %1808 = vmatprep.mubr.bf16.mxu1 %v3141_v9 }
  0xf9   : > { %1696 = vmatmul.mubr.bf16.gmra.mrb[92].mxu0 %v3479_v18  ;;  %1809 = vmatmul.mubr.bf16.gmra.mrb[92].mxu1 %v3479_v18 }
  0xfa   : > { %1851 = vmatprep.mubr.bf16.mxu0 %v3141_v9  ;;  %1964 = vmatprep.mubr.bf16.mxu1 %v3141_v9 }
 0x101   : > { %1852 = vmatmul.mubr.bf16.vlgmr.msra.gmra.mrb[96].mxu0 %v3334_v8  ;;  %1965 = vmatmul.mubr.bf16.vlgmr.msra.gmra.mrb[96].mxu1 %v3334_v8  ;;  %v3743_v8 = vld [vmem:[%s4193_s2] sm:$0xff] }
 0x102   : > { %1861 = vmatprep.mubr.bf16.mxu0 %v3141_v9  ;;  %1974 = vmatprep.mubr.bf16.mxu1 %v3141_v9  ;;  %v3758_v38 = vrot.slane %v3743_v8, %v383_v35  ;;  %v3763_v39 = vrot.slane %v3743_v8, %v379_v36  ;;  %v3769_v40 = vrot.slane %v3743_v8, %v387_v37 }
 0x109   : > { %1862 = vmatmul.mubr.bf16.gmra.mrb[100].mxu0 %v3365_v26  ;;  %1975 = vmatmul.mubr.bf16.gmra.mrb[100].mxu1 %v3365_v26  ;;  %v3752_v26 = vrot.slane %v3743_v8, %v375_v34 }
 0x10a   : > { %1871 = vmatprep.mubr.bf16.mxu0 %v3141_v9  ;;  %1984 = vmatprep.mubr.bf16.mxu1 %v3141_v9 }
 0x111   : > { %1872 = vmatmul.mubr.bf16.gmra.mrb[104].mxu0 %v3396_v42  ;;  %1985 = vmatmul.mubr.bf16.gmra.mrb[104].mxu1 %v3396_v42 }
 0x112   : > { %1881 = vmatprep.mubr.bf16.mxu0 %v3141_v9  ;;  %1994 = vmatprep.mubr.bf16.mxu1 %v3141_v9 }
 0x114   : > { %v1175_v42 = vpop.f32.mrb[0].mxu0  ;;  %v1288_v43 = vpop.f32.mrb[0].mxu1 }
 0x115   : > { %v1176_v41 = vadd.f32 %v1175_v42, %v3752_v26  ;;  %v1177_v44 = vpop.f32.mrb[1].mxu0  ;;  %v1289_v45 = vadd.f32 %v1288_v43, %v3758_v38  ;;  %v1290_v47 = vpop.f32.mrb[1].mxu1 }
 0x116   : > { %v1178_v46 = vadd.f32 %v1177_v44, %v3763_v39  ;;  %v1179_v48 = vpop.f32.mrb[2].mxu0  ;;  %v1291_v49 = vadd.f32 %v1290_v47, %v3769_v40  ;;  %v1292_v51 = vpop.f32.mrb[2].mxu1 }
 0x117   : > { %v1180_v50 = vadd.f32 %v1179_v48, %v3752_v26  ;;  %v1181_v52 = vpop.f32.mrb[3].mxu0  ;;  %v1293_v53 = vadd.f32 %v1292_v51, %v3758_v38  ;;  %v1294_v55 = vpop.f32.mrb[3].mxu1  ;;  %v2045_v56 = vmax.f32 %v1176_v41, 0.0  ;;  %v2047_v60 = vmax.f32 %v1289_v45, 0.0 }
 0x118   : > { %v1182_v54 = vadd.f32 %v1181_v52, %v3763_v39  ;;  %v1295_v58 = vadd.f32 %v1294_v55, %v3769_v40  ;;  %v2046_v61 = vmax.f32 %v1178_v46, 0.0  ;;  %v2048_v0 = vmax.f32 %v1291_v49, 0.0 }
 0x119   : > { %v2061_v57 = vmax.f32 %v1180_v50, 0.0  ;;  %1882 = vmatmul.mubr.bf16.gmra.mrb[108].mxu0 %v3427_v59  ;;  %v2063_v62 = vmax.f32 %v1293_v53, 0.0  ;;  %1995 = vmatmul.mubr.bf16.gmra.mrb[108].mxu1 %v3427_v59 }
 0x11a   : > { %v2062_v63 = vmax.f32 %v1182_v54, 0.0  ;;  %1891 = vmatprep.mubr.bf16.mxu0 %v3141_v9  ;;  %v2064_v2 = vmax.f32 %v1295_v58, 0.0  ;;  %2004 = vmatprep.mubr.bf16.mxu1 %v3141_v9 }
 0x11b   : > { %v2303_v1 = vadd.f32 %v2061_v57, %v2045_v56  ;;  %v2345_v3 = vadd.f32 %v2063_v62, %v2047_v60 }
 0x11c   : > { %v2324_v4 = vadd.f32 %v2062_v63, %v2046_v61  ;;  %v1185_v5 = vpop.f32.mrb[4].mxu0  ;;  %v2366_v6 = vadd.f32 %v2064_v2, %v2048_v0  ;;  %v1298_v10 = vpop.f32.mrb[4].mxu1 }
 0x11d   : > { %v1186_v7 = vadd.f32 %v1185_v5, %v3752_v26  ;;  %v1187_v11 = vpop.f32.mrb[5].mxu0  ;;  %v1299_v12 = vadd.f32 %v1298_v10, %v3758_v38  ;;  %v1300_v59 = vpop.f32.mrb[5].mxu1 }
 0x11e   : > { %v1188_v13 = vadd.f32 %v1187_v11, %v3763_v39  ;;  %v1189_v15 = vpop.f32.mrb[6].mxu0  ;;  %v1301_v20 = vadd.f32 %v1300_v59, %v3769_v40  ;;  %v1302_v22 = vpop.f32.mrb[6].mxu1 }
 0x11f   : > { %v2077_v19 = vmax.f32 %v1186_v7, 0.0  ;;  %v1190_v21 = vadd.f32 %v1189_v15, %v3752_v26  ;;  %v1191_v23 = vpop.f32.mrb[7].mxu0  ;;  %v2079_v24 = vmax.f32 %v1299_v12, 0.0  ;;  %v1303_v27 = vadd.f32 %v1302_v22, %v3758_v38  ;;  %v1304_v29 = vpop.f32.mrb[7].mxu1 }
 0x120   : > { %v2078_v25 = vmax.f32 %v1188_v13, 0.0  ;;  %v1192_v28 = vadd.f32 %v1191_v23, %v3763_v39  ;;  %v2080_v31 = vmax.f32 %v1301_v20, 0.0  ;;  %v1305_v42 = vadd.f32 %v1304_v29, %v3769_v40 }
 0x121   : > { %v2304_v30 = vadd.f32 %v2303_v1, %v2077_v19  ;;  %v2093_v32 = vmax.f32 %v1190_v21, 0.0  ;;  %1892 = vmatmul.mubr.bf16.gmra.mrb[112].mxu0 %v3458_v14  ;;  %v2346_v41 = vadd.f32 %v2345_v3, %v2079_v24  ;;  %v2095_v44 = vmax.f32 %v1303_v27, 0.0  ;;  %2005 = vmatmul.mubr.bf16.gmra.mrb[112].mxu1 %v3458_v14 }
 0x122   : > { %v2325_v43 = vadd.f32 %v2324_v4, %v2078_v25  ;;  %v2094_v45 = vmax.f32 %v1192_v28, 0.0  ;;  %1901 = vmatprep.mubr.bf16.mxu0 %v3141_v9  ;;  %v2367_v46 = vadd.f32 %v2366_v6, %v2080_v31  ;;  %v2096_v48 = vmax.f32 %v1305_v42, 0.0  ;;  %2014 = vmatprep.mubr.bf16.mxu1 %v3141_v9 }
 0x123   : > { %v2305_v47 = vadd.f32 %v2304_v30, %v2093_v32  ;;  %v2347_v49 = vadd.f32 %v2346_v41, %v2095_v44 }
 0x124   : > { %v2326_v50 = vadd.f32 %v2325_v43, %v2094_v45  ;;  %v1195_v51 = vpop.f32.mrb[8].mxu0  ;;  %v2368_v52 = vadd.f32 %v2367_v46, %v2096_v48  ;;  %v1308_v54 = vpop.f32.mrb[8].mxu1 }
 0x125   : > { %v1196_v53 = vadd.f32 %v1195_v51, %v3752_v26  ;;  %v1197_v55 = vpop.f32.mrb[9].mxu0  ;;  %v1309_v56 = vadd.f32 %v1308_v54, %v3758_v38  ;;  %v1310_v14 = vpop.f32.mrb[9].mxu1 }
 0x126   : > { %v1198_v57 = vadd.f32 %v1197_v55, %v3763_v39  ;;  %v1199_v58 = vpop.f32.mrb[10].mxu0  ;;  %v1311_v61 = vadd.f32 %v1310_v14, %v3769_v40  ;;  %v1312_v63 = vpop.f32.mrb[10].mxu1 }
 0x127   : > { %v2109_v60 = vmax.f32 %v1196_v53, 0.0  ;;  %v1200_v62 = vadd.f32 %v1199_v58, %v3752_v26  ;;  %v1201_v0 = vpop.f32.mrb[11].mxu0  ;;  %v2111_v1 = vmax.f32 %v1309_v56, 0.0  ;;  %v1313_v3 = vadd.f32 %v1312_v63, %v3758_v38  ;;  %v1314_v5 = vpop.f32.mrb[11].mxu1 }
 0x128   : > { %v2110_v2 = vmax.f32 %v1198_v57, 0.0  ;;  %v1202_v4 = vadd.f32 %v1201_v0, %v3763_v39  ;;  %v2112_v7 = vmax.f32 %v1311_v61, 0.0  ;;  %v1315_v11 = vadd.f32 %v1314_v5, %v3769_v40 }
 0x129   : > { %v2306_v6 = vadd.f32 %v2305_v47, %v2109_v60  ;;  %v2125_v10 = vmax.f32 %v1200_v62, 0.0  ;;  %1902 = vmatmul.mubr.bf16.gmra.mrb[116].mxu0 %v3465_v16  ;;  %v2348_v12 = vadd.f32 %v2347_v49, %v2111_v1  ;;  %v2127_v59 = vmax.f32 %v1313_v3, 0.0  ;;  %2015 = vmatmul.mubr.bf16.gmra.mrb[116].mxu1 %v3465_v16 }
 0x12a   : > { %v2327_v13 = vadd.f32 %v2326_v50, %v2110_v2  ;;  %v2126_v15 = vmax.f32 %v1202_v4, 0.0  ;;  %1911 = vmatprep.mubr.bf16.mxu0 %v3141_v9  ;;  %v2369_v19 = vadd.f32 %v2368_v52, %v2112_v7  ;;  %v2128_v21 = vmax.f32 %v1315_v11, 0.0  ;;  %2024 = vmatprep.mubr.bf16.mxu1 %v3141_v9 }
 0x12b   : > { %v2307_v20 = vadd.f32 %v2306_v6, %v2125_v10  ;;  %v2349_v22 = vadd.f32 %v2348_v12, %v2127_v59 }
 0x12c   : > { %v2328_v23 = vadd.f32 %v2327_v13, %v2126_v15  ;;  %v1205_v24 = vpop.f32.mrb[12].mxu0  ;;  %v2370_v25 = vadd.f32 %v2369_v19, %v2128_v21  ;;  %v1318_v28 = vpop.f32.mrb[12].mxu1 }
 0x12d   : > { %v1206_v27 = vadd.f32 %v1205_v24, %v3752_v26  ;;  %v1207_v29 = vpop.f32.mrb[13].mxu0  ;;  %v1319_v30 = vadd.f32 %v1318_v28, %v3758_v38  ;;  %v1320_v16 = vpop.f32.mrb[13].mxu1 }
 0x12e   : > { %v1208_v31 = vadd.f32 %v1207_v29, %v3763_v39  ;;  %v1209_v32 = vpop.f32.mrb[14].mxu0  ;;  %v1321_v41 = vadd.f32 %v1320_v16, %v3769_v40  ;;  %v1322_v44 = vpop.f32.mrb[14].mxu1 }
 0x12f   : > { %v2141_v42 = vmax.f32 %v1206_v27, 0.0  ;;  %v1210_v43 = vadd.f32 %v1209_v32, %v3752_v26  ;;  %v1211_v45 = vpop.f32.mrb[15].mxu0  ;;  %v2143_v46 = vmax.f32 %v1319_v30, 0.0  ;;  %v1323_v48 = vadd.f32 %v1322_v44, %v3758_v38  ;;  %v1324_v50 = vpop.f32.mrb[15].mxu1 }
 0x130   : > { %v2142_v47 = vmax.f32 %v1208_v31, 0.0  ;;  %v1212_v49 = vadd.f32 %v1211_v45, %v3763_v39  ;;  %v2144_v52 = vmax.f32 %v1321_v41, 0.0  ;;  %v1325_v54 = vadd.f32 %v1324_v50, %v3769_v40 }
 0x131   : > { %v2308_v51 = vadd.f32 %v2307_v20, %v2141_v42  ;;  %v2157_v53 = vmax.f32 %v1210_v43, 0.0  ;;  %1912 = vmatmul.mubr.bf16.gmra.mrb[120].mxu0 %v3472_v17  ;;  %v2350_v55 = vadd.f32 %v2349_v22, %v2143_v46  ;;  %v2159_v57 = vmax.f32 %v1323_v48, 0.0  ;;  %2025 = vmatmul.mubr.bf16.gmra.mrb[120].mxu1 %v3472_v17 }
 0x132   : > { %v2329_v56 = vadd.f32 %v2328_v23, %v2142_v47  ;;  %v2158_v14 = vmax.f32 %v1212_v49, 0.0  ;;  %1921 = vmatprep.mubr.bf16.mxu0 %v3141_v9  ;;  %v2371_v58 = vadd.f32 %v2370_v25, %v2144_v52  ;;  %v2160_v61 = vmax.f32 %v1325_v54, 0.0  ;;  %2034 = vmatprep.mubr.bf16.mxu1 %v3141_v9 }
 0x133   : > { %v2309_v60 = vadd.f32 %v2308_v51, %v2157_v53  ;;  %v2351_v62 = vadd.f32 %v2350_v55, %v2159_v57 }
 0x134   : > { %v2330_v63 = vadd.f32 %v2329_v56, %v2158_v14  ;;  %v1215_v0 = vpop.f32.mrb[16].mxu0  ;;  %v2372_v1 = vadd.f32 %v2371_v58, %v2160_v61  ;;  %v1328_v3 = vpop.f32.mrb[16].mxu1 }
 0x135   : > { %v1216_v2 = vadd.f32 %v1215_v0, %v3752_v26  ;;  %v1217_v4 = vpop.f32.mrb[17].mxu0  ;;  %v1329_v5 = vadd.f32 %v1328_v3, %v3758_v38  ;;  %v1330_v17 = vpop.f32.mrb[17].mxu1 }
 0x136   : > { %v1218_v6 = vadd.f32 %v1217_v4, %v3763_v39  ;;  %v1219_v7 = vpop.f32.mrb[18].mxu0  ;;  %v1331_v11 = vadd.f32 %v1330_v17, %v3769_v40  ;;  %v1332_v9 = vpop.f32.mrb[18].mxu1 }
 0x137   : > { %v2173_v10 = vmax.f32 %v1216_v2, 0.0  ;;  %v1220_v12 = vadd.f32 %v1219_v7, %v3752_v26  ;;  %v1221_v13 = vpop.f32.mrb[19].mxu0  ;;  %v2175_v59 = vmax.f32 %v1329_v5, 0.0  ;;  %v1333_v19 = vadd.f32 %v1332_v9, %v3758_v38  ;;  %v1334_v21 = vpop.f32.mrb[19].mxu1 }
 0x138   : > { %v2174_v15 = vmax.f32 %v1218_v6, 0.0  ;;  %v1222_v20 = vadd.f32 %v1221_v13, %v3763_v39  ;;  %v2176_v23 = vmax.f32 %v1331_v11, 0.0  ;;  %v1335_v25 = vadd.f32 %v1334_v21, %v3769_v40 }
 0x139   : > { %v2310_v22 = vadd.f32 %v2309_v60, %v2173_v10  ;;  %v2189_v24 = vmax.f32 %v1220_v12, 0.0  ;;  %1922 = vmatmul.mubr.bf16.gmra.mrb[124].mxu0 %v3479_v18  ;;  %v2352_v27 = vadd.f32 %v2351_v62, %v2175_v59  ;;  %v2191_v29 = vmax.f32 %v1333_v19, 0.0  ;;  %2035 = vmatmul.mubr.bf16.gmra.mrb[124].mxu1 %v3479_v18 }
 0x13a   : > { %v2331_v28 = vadd.f32 %v2330_v63, %v2174_v15  ;;  %v2190_v30 = vmax.f32 %v1222_v20, 0.0  ;;  %v2373_v31 = vadd.f32 %v2372_v1, %v2176_v23  ;;  %v2192_v32 = vmax.f32 %v1335_v25, 0.0 }
 0x13b   : > { %v2311_v16 = vadd.f32 %v2310_v22, %v2189_v24  ;;  %v2353_v42 = vadd.f32 %v2352_v27, %v2191_v29  ;;  %v391_v15 = vsub.s32 4, %v3734_v33  ;;  %v399_v23 = vsub.s32 6, %v3734_v33 }
 0x13c   : > { %v2332_v41 = vadd.f32 %v2331_v28, %v2190_v30  ;;  %v1225_v43 = vpop.f32.mrb[20].mxu0  ;;  %v2374_v44 = vadd.f32 %v2373_v31, %v2192_v32  ;;  %v1338_v46 = vpop.f32.mrb[20].mxu1  ;;  %v395_v24 = vsub.s32 5, %v3734_v33 }
 0x13d   : > { %v1226_v45 = vadd.f32 %v1225_v43, %v3752_v26  ;;  %v1227_v47 = vpop.f32.mrb[21].mxu0  ;;  %v1339_v48 = vadd.f32 %v1338_v46, %v3758_v38  ;;  %v1340_v50 = vpop.f32.mrb[21].mxu1 }
 0x13e   : > { %v1228_v49 = vadd.f32 %v1227_v47, %v3763_v39  ;;  %v1229_v51 = vpop.f32.mrb[22].mxu0  ;;  %v1341_v18 = vadd.f32 %v1340_v50, %v3769_v40  ;;  %v1342_v54 = vpop.f32.mrb[22].mxu1 }
 0x13f   : > { %v2205_v52 = vmax.f32 %v1226_v45, 0.0  ;;  %v1230_v53 = vadd.f32 %v1229_v51, %v3752_v26  ;;  %v1231_v55 = vpop.f32.mrb[23].mxu0  ;;  %v2207_v56 = vmax.f32 %v1339_v48, 0.0  ;;  %v1343_v14 = vadd.f32 %v1342_v54, %v3758_v38  ;;  %v1344_v60 = vpop.f32.mrb[23].mxu1 }
 0x140   : > { %v2206_v57 = vmax.f32 %v1228_v49, 0.0  ;;  %v1232_v58 = vadd.f32 %v1231_v55, %v3763_v39  ;;  %v2208_v62 = vmax.f32 %v1341_v18, 0.0  ;;  %v1345_v0 = vadd.f32 %v1344_v60, %v3769_v40 }
 0x141   : > { %v2312_v61 = vadd.f32 %v2311_v16, %v2205_v52  ;;  %v2221_v63 = vmax.f32 %v1230_v53, 0.0  ;;  %v2354_v1 = vadd.f32 %v2353_v42, %v2207_v56  ;;  %v2223_v3 = vmax.f32 %v1343_v14, 0.0 }
 0x142   : > { %v2333_v2 = vadd.f32 %v2332_v41, %v2206_v57  ;;  %v2222_v4 = vmax.f32 %v1232_v58, 0.0  ;;  %v2375_v5 = vadd.f32 %v2374_v44, %v2208_v62  ;;  %v2224_v17 = vmax.f32 %v1345_v0, 0.0 }
 0x143   : > { %v2313_v6 = vadd.f32 %v2312_v61, %v2221_v63  ;;  %v2355_v7 = vadd.f32 %v2354_v1, %v2223_v3  ;;  %v3142_v53 = vmov 1966171168   ;;  %v3853_v62 = vrot.slane %v3743_v8, %v391_v15 }
 0x144   : > { %v2334_v10 = vadd.f32 %v2333_v2, %v2222_v4  ;;  %v1235_v11 = vpop.f32.mrb[24].mxu0  ;;  %v2376_v12 = vadd.f32 %v2375_v5, %v2224_v17  ;;  %v1348_v13 = vpop.f32.mrb[24].mxu1  ;;  %v2660_v54 = vunpack.c.l.s4 %v3142_v53  ;;  %v403_v63 = vsub.s32 7, %v3734_v33 }
 0x145   : > { %v1236_v9 = vadd.f32 %v1235_v11, %v3752_v26  ;;  %v1237_v59 = vpop.f32.mrb[25].mxu0  ;;  %v1349_v19 = vadd.f32 %v1348_v13, %v3758_v38  ;;  %v1350_v21 = vpop.f32.mrb[25].mxu1  ;;  %v3861_v4 = vrot.slane %v3743_v8, %v399_v23  ;;  %v3866_v5 = vrot.slane %v3743_v8, %v395_v24 }
 0x146   : > { %v1238_v20 = vadd.f32 %v1237_v59, %v3763_v39  ;;  %v1239_v22 = vpop.f32.mrb[26].mxu0  ;;  %v1351_v27 = vadd.f32 %v1350_v21, %v3769_v40  ;;  %v1352_v29 = vpop.f32.mrb[26].mxu1 }
 0x147   : > { %v2237_v25 = vmax.f32 %v1236_v9, 0.0  ;;  %v1240_v28 = vadd.f32 %v1239_v22, %v3752_v26  ;;  %v1241_v30 = vpop.f32.mrb[27].mxu0  ;;  %v2239_v31 = vmax.f32 %v1349_v19, 0.0  ;;  %v1353_v32 = vadd.f32 %v1352_v29, %v3758_v38  ;;  %v1354_v41 = vpop.f32.mrb[27].mxu1 }
 0x148   : > { %v2238_v16 = vmax.f32 %v1238_v20, 0.0  ;;  %v1242_v42 = vadd.f32 %v1241_v30, %v3763_v39  ;;  %v2240_v44 = vmax.f32 %v1351_v27, 0.0  ;;  %v1355_v46 = vadd.f32 %v1354_v41, %v3769_v40 }
 0x149   : > { %v2314_v43 = vadd.f32 %v2313_v6, %v2237_v25  ;;  %v2253_v45 = vmax.f32 %v1240_v28, 0.0  ;;  %v2356_v47 = vadd.f32 %v2355_v7, %v2239_v31  ;;  %v2255_v49 = vmax.f32 %v1353_v32, 0.0 }
 0x14a   : > { %v2335_v48 = vadd.f32 %v2334_v10, %v2238_v16  ;;  %v2254_v50 = vmax.f32 %v1242_v42, 0.0  ;;  %v2377_v51 = vadd.f32 %v2376_v12, %v2240_v44  ;;  %v2256_v18 = vmax.f32 %v1355_v46, 0.0 }
 0x14b   : > { %v2315_v52 = vadd.f32 %v2314_v43, %v2253_v45  ;;  %v2357_v55 = vadd.f32 %v2356_v47, %v2255_v49  ;;  %v2661_v12 = vunpack.c.0.s8 %v2660_v54  ;;  %v3876_v42 = vrot.slane %v3743_v8, %v403_v63 }
 0x14c   : > { %v2336_v56 = vadd.f32 %v2335_v48, %v2254_v50  ;;  %v1245_v57 = vpop.f32.mrb[28].mxu0  ;;  %v2378_v14 = vadd.f32 %v2377_v51, %v2256_v18  ;;  %v1358_v60 = vpop.f32.mrb[28].mxu1 }
 0x14d   : > { %v1246_v58 = vadd.f32 %v1245_v57, %v3752_v26  ;;  %v1247_v61 = vpop.f32.mrb[29].mxu0  ;;  %v1359_v0 = vadd.f32 %v1358_v60, %v3758_v38  ;;  %v1360_v2 = vpop.f32.mrb[29].mxu1  ;;  %v3879_v44 = vsub.s32 %v2661_v12, %v3734_v33 }
 0x14e   : > { %v1248_v1 = vadd.f32 %v1247_v61, %v3763_v39  ;;  %v1249_v3 = vpop.f32.mrb[30].mxu0  ;;  %v1361_v17 = vadd.f32 %v1360_v2, %v3769_v40  ;;  %v1362_v10 = vpop.f32.mrb[30].mxu1 }
 0x14f   : > { %v2269_v6 = vmax.f32 %v1246_v58, 0.0  ;;  %v1250_v7 = vadd.f32 %v1249_v3, %v3752_v26  ;;  %v1251_v11 = vpop.f32.mrb[31].mxu0  ;;  %v2271_v9 = vmax.f32 %v1359_v0, 0.0  ;;  %v1363_v59 = vadd.f32 %v1362_v10, %v3758_v38  ;;  %v1364_v20 = vpop.f32.mrb[31].mxu1 }
 0x150   : > { %v2270_v13 = vmax.f32 %v1248_v1, 0.0  ;;  %v1252_v19 = vadd.f32 %v1251_v11, %v3763_v39  ;;  %v2272_v22 = vmax.f32 %v1361_v17, 0.0  ;;  %v1365_v27 = vadd.f32 %v1364_v20, %v3769_v40 }
 0x151   : > { %v2316_v21 = vadd.f32 %v2315_v52, %v2269_v6  ;;  %v2285_v25 = vmax.f32 %v1250_v7, 0.0  ;;  %v2358_v28 = vadd.f32 %v2357_v55, %v2271_v9  ;;  %v2287_v30 = vmax.f32 %v1363_v59, 0.0 }
 0x152   : > { %v2337_v29 = vadd.f32 %v2336_v56, %v2270_v13  ;;  %v2286_v31 = vmax.f32 %v1252_v19, 0.0  ;;  %v2379_v26 = vadd.f32 %v2378_v14, %v2272_v22  ;;  %v2288_v32 = vmax.f32 %v1365_v27, 0.0 }
 0x153   : > { %v2317_v16 = vadd.f32 %v2316_v21, %v2285_v25  ;;  %v2359_v38 = vadd.f32 %v2358_v28, %v2287_v30 }
 0x154   : > { %v2338_v39 = vadd.f32 %v2337_v29, %v2286_v31  ;;  %v1401_v41 = vpop.f32.mrb[32].mxu0  ;;  %v2380_v40 = vadd.f32 %v2379_v26, %v2288_v32  ;;  %v1514_v46 = vpop.f32.mrb[32].mxu1 }
 0x155   : > { %v2318_v43 = vrot.slane %v2317_v16, 4  ;;  %v1402_v45 = vadd.f32 %v1401_v41, %v3853_v62  ;;  %v1403_v47 = vpop.f32.mrb[33].mxu0  ;;  %v2360_v48 = vrot.slane %v2359_v38, 4  ;;  %v1515_v50 = vadd.f32 %v1514_v46, %v3861_v4  ;;  %v1516_v8 = vpop.f32.mrb[33].mxu1 }
 0x156   : > { %v2339_v49 = vrot.slane %v2338_v39, 4  ;;  %v1404_v51 = vadd.f32 %v1403_v47, %v3866_v5  ;;  %v1405_v52 = vpop.f32.mrb[34].mxu0  ;;  %v2381_v53 = vrot.slane %v2380_v40, 4  ;;  %v1517_v55 = vadd.f32 %v1516_v8, %v3876_v42  ;;  %v1518_v56 = vpop.f32.mrb[34].mxu1 }
 0x157   : > { %v2319_v18 = vadd.f32 %v2318_v43, %v2317_v16  ;;  %v2049_v54 = vmax.f32 %v1402_v45, 0.0  ;;  %v1407_v57 = vpop.f32.mrb[35].mxu0  ;;  %v2361_v14 = vadd.f32 %v2360_v48, %v2359_v38  ;;  %v2051_v60 = vmax.f32 %v1515_v50, 0.0  ;;  %v1520_v0 = vpop.f32.mrb[35].mxu1 }
 0x158   : > { %v2340_v58 = vadd.f32 %v2339_v49, %v2338_v39  ;;  %v2050_v61 = vmax.f32 %v1404_v51, 0.0  ;;  %v2382_v2 = vadd.f32 %v2381_v53, %v2380_v40  ;;  %v2052_v3 = vmax.f32 %v1517_v55, 0.0 }
 0x159   : > { %v2320_v1 = vrot.slane %v2319_v18, 2  ;;  %v1406_v6 = vadd.f32 %v1405_v52, %v3853_v62  ;;  %v2362_v17 = vrot.slane %v2361_v14, 2  ;;  %v1519_v10 = vadd.f32 %v1518_v56, %v3861_v4 }
 0x15a   : > { %v2341_v7 = vrot.slane %v2340_v58, 2  ;;  %v1408_v11 = vadd.f32 %v1407_v57, %v3866_v5  ;;  %v2383_v9 = vrot.slane %v2382_v2, 2  ;;  %v1521_v59 = vadd.f32 %v1520_v0, %v3876_v42 }
 0x15b   : > { %v2321_v12 = vadd.f32 %v2320_v1, %v2319_v18  ;;  %v2065_v13 = vmax.f32 %v1406_v6, 0.0  ;;  %v2363_v19 = vadd.f32 %v2362_v17, %v2361_v14  ;;  %v2067_v21 = vmax.f32 %v1519_v10, 0.0 }
 0x15c   : > { %v2342_v20 = vadd.f32 %v2341_v7, %v2340_v58  ;;  %v2066_v22 = vmax.f32 %v1408_v11, 0.0  ;;  %v1411_v25 = vpop.f32.mrb[36].mxu0  ;;  %v2384_v28 = vadd.f32 %v2383_v9, %v2382_v2  ;;  %v2068_v30 = vmax.f32 %v1521_v59, 0.0  ;;  %v1524_v31 = vpop.f32.mrb[36].mxu1 }
 0x15d   : > { %v2322_v27 = vrot.slane %v2321_v12, 1  ;;  %v2387_v29 = vadd.f32 %v2065_v13, %v2049_v54  ;;  %v1413_v26 = vpop.f32.mrb[37].mxu0  ;;  %v2364_v16 = vrot.slane %v2363_v19, 1  ;;  %v2429_v38 = vadd.f32 %v2067_v21, %v2051_v60  ;;  %v1526_v41 = vpop.f32.mrb[37].mxu1 }
 0x15e   : > { %v2343_v32 = vrot.slane %v2342_v20, 1  ;;  %v2408_v39 = vadd.f32 %v2066_v22, %v2050_v61  ;;  %v1415_v43 = vpop.f32.mrb[38].mxu0  ;;  %v2385_v45 = vrot.slane %v2384_v28, 1  ;;  %v2450_v46 = vadd.f32 %v2068_v30, %v2052_v3  ;;  %v1528_v48 = vpop.f32.mrb[38].mxu1 }
 0x15f   : > { %v2323_v40 = vadd.f32 %v2322_v27, %v2321_v12  ;;  %v1412_v47 = vadd.f32 %v1411_v25, %v3853_v62  ;;  %v1417_v49 = vpop.f32.mrb[39].mxu0  ;;  %v2365_v50 = vadd.f32 %v2364_v16, %v2363_v19  ;;  %v1525_v8 = vadd.f32 %v1524_v31, %v3861_v4  ;;  %v1530_v18 = vpop.f32.mrb[39].mxu1 }
 0x160   : > { %v2344_v51 = vadd.f32 %v2343_v32, %v2342_v20  ;;  %v1414_v52 = vadd.f32 %v1413_v26, %v3866_v5  ;;  %v2386_v53 = vadd.f32 %v2385_v45, %v2384_v28  ;;  %v1527_v55 = vadd.f32 %v1526_v41, %v3876_v42 }
 0x161   : > { %v2081_v54 = vmax.f32 %v1412_v47, 0.0  ;;  %v1416_v56 = vadd.f32 %v1415_v43, %v3853_v62  ;;  %v2083_v14 = vmax.f32 %v1525_v8, 0.0  ;;  %v1529_v60 = vadd.f32 %v1528_v48, %v3861_v4 }
 0x162   : > { %v2655_v57 = vcombine.low %v2323_v40, %v2344_v51  ;;  %v2082_v58 = vmax.f32 %v1414_v52, 0.0  ;;  %v2656_v61 = vcombine.low %v2365_v50, %v2386_v53  ;;  %v2084_v1 = vmax.f32 %v1527_v55, 0.0 }
 0x163   : > { %v2388_v0 = vadd.f32 %v2387_v29, %v2081_v54  ;;  %v2097_v2 = vmax.f32 %v1416_v56, 0.0  ;;  %v2430_v6 = vadd.f32 %v2429_v38, %v2083_v14  ;;  %v2099_v7 = vmax.f32 %v1529_v60, 0.0 }
 0x164   : > { %v3896_v3 = vrot.slane %v2655_v57, %v3879_v44  ;;  %v2409_v17 = vadd.f32 %v2408_v39, %v2082_v58  ;;  %v1421_v10 = vpop.f32.mrb[40].mxu0  ;;  %v3899_v11 = vrot.slane %v2656_v61, %v3879_v44  ;;  %v2451_v12 = vadd.f32 %v2450_v46, %v2084_v1  ;;  %v1534_v59 = vpop.f32.mrb[40].mxu1 }
 0x165   : > { %v2389_v9 = vadd.f32 %v2388_v0, %v2097_v2  ;;  %v1418_v13 = vadd.f32 %v1417_v49, %v3866_v5  ;;  %v1423_v19 = vpop.f32.mrb[41].mxu0  ;;  %v2431_v20 = vadd.f32 %v2430_v6, %v2099_v7  ;;  %v1531_v21 = vadd.f32 %v1530_v18, %v3876_v42  ;;  %v1536_v27 = vpop.f32.mrb[41].mxu1 }
 0x166   : > { %v1422_v22 = vadd.f32 %v1421_v10, %v3853_v62  ;;  %v1535_v25 = vadd.f32 %v1534_v59, %v3861_v4  ;;  %v1425_v28 = vpop.f32.mrb[42].mxu0  ;;  %v2687_v29 = vcombine.low %v3896_v3, %v3899_v11  ;;  %v1424_v31 = vadd.f32 %v1423_v19, %v3866_v5  ;;  %v1538_v16 = vpop.f32.mrb[42].mxu1 }
 0x167   : > { %v2098_v30 = vmax.f32 %v1418_v13, 0.0  ;;  %v1537_v26 = vadd.f32 %v1536_v27, %v3876_v42  ;;  %v1427_v32 = vpop.f32.mrb[43].mxu0  ;;  %v2100_v38 = vmax.f32 %v1531_v21, 0.0  ;;  %v1426_v43 = vadd.f32 %v1425_v28, %v3853_v62  ;;  %v1540_v40 = vpop.f32.mrb[43].mxu1 }
 0x168   : > { %v2113_v39 = vmax.f32 %v1422_v22, 0.0  ;;  %v2115_v41 = vmax.f32 %v1535_v25, 0.0  ;;  %v2114_v46 = vmax.f32 %v1424_v31, 0.0  ;;  %v1539_v52 = vadd.f32 %v1538_v16, %v3861_v4 }
 0x169   : > { %v2410_v45 = vadd.f32 %v2409_v17, %v2098_v30  ;;  %v2116_v47 = vmax.f32 %v1537_v26, 0.0  ;;  %v2452_v48 = vadd.f32 %v2451_v12, %v2100_v38  ;;  %v2129_v51 = vmax.f32 %v1426_v43, 0.0 }
 0x16a   : > { %v2390_v49 = vadd.f32 %v2389_v9, %v2113_v39  ;;  %v2432_v50 = vadd.f32 %v2431_v20, %v2115_v41  ;;  %v1428_v18 = vadd.f32 %v1427_v32, %v3866_v5  ;;  %v1541_v53 = vadd.f32 %v1540_v40, %v3876_v42 }
 0x16b   : > { %v2411_v8 = vadd.f32 %v2410_v45, %v2114_v46  ;;  %v2453_v54 = vadd.f32 %v2452_v48, %v2116_v47  ;;  %v2131_v57 = vmax.f32 %v1539_v52, 0.0 }
 0x16c   : > { %v2391_v55 = vadd.f32 %v2390_v49, %v2129_v51  ;;  %v1431_v56 = vpop.f32.mrb[44].mxu0  ;;  %v2130_v14 = vmax.f32 %v1428_v18, 0.0  ;;  %v2132_v58 = vmax.f32 %v1541_v53, 0.0  ;;  %v1544_v61 = vpop.f32.mrb[44].mxu1 }
 0x16d   : > { %v1432_v60 = vadd.f32 %v1431_v56, %v3853_v62  ;;  %v1433_v0 = vpop.f32.mrb[45].mxu0  ;;  %v1545_v1 = vadd.f32 %v1544_v61, %v3861_v4  ;;  %v1546_v6 = vpop.f32.mrb[45].mxu1  ;;  %v2433_v7 = vadd.f32 %v2432_v50, %v2131_v57 }
 0x16e   : > { %v1434_v2 = vadd.f32 %v1433_v0, %v3866_v5  ;;  %v1435_v17 = vpop.f32.mrb[46].mxu0  ;;  %v2412_v10 = vadd.f32 %v2411_v8, %v2130_v14  ;;  %v2454_v12 = vadd.f32 %v2453_v54, %v2132_v58  ;;  %v1548_v13 = vpop.f32.mrb[46].mxu1  ;;  %v1547_v21 = vadd.f32 %v1546_v6, %v3876_v42 }
 0x16f   : > { %v2145_v9 = vmax.f32 %v1432_v60, 0.0  ;;  %v1437_v59 = vpop.f32.mrb[47].mxu0  ;;  %v2147_v19 = vmax.f32 %v1545_v1, 0.0  ;;  %v1436_v22 = vadd.f32 %v1435_v17, %v3853_v62  ;;  %v1550_v25 = vpop.f32.mrb[47].mxu1  ;;  %v1549_v28 = vadd.f32 %v1548_v13, %v3861_v4 }
 0x170   : > { %v2146_v20 = vmax.f32 %v1434_v2, 0.0  ;;  %v1438_v30 = vadd.f32 %v1437_v59, %v3866_v5  ;;  %v1551_v31 = vadd.f32 %v1550_v25, %v3876_v42  ;;  %v2148_v32 = vmax.f32 %v1547_v21, 0.0 }
 0x171   : > { %v2392_v27 = vadd.f32 %v2391_v55, %v2145_v9  ;;  %v2434_v26 = vadd.f32 %v2433_v7, %v2147_v19  ;;  %v2161_v38 = vmax.f32 %v1436_v22, 0.0  ;;  %v2163_v39 = vmax.f32 %v1549_v28, 0.0 }
 0x172   : > { %v2413_v16 = vadd.f32 %v2412_v10, %v2146_v20  ;;  %v2162_v41 = vmax.f32 %v1438_v30, 0.0  ;;  %v2164_v43 = vmax.f32 %v1551_v31, 0.0  ;;  %v2455_v40 = vadd.f32 %v2454_v12, %v2148_v32 }
 0x173   : > { %v2393_v45 = vadd.f32 %v2392_v27, %v2161_v38  ;;  %v2435_v47 = vadd.f32 %v2434_v26, %v2163_v39 }
 0x174   : > { %v1441_v46 = vpop.f32.mrb[48].mxu0  ;;  %v2414_v48 = vadd.f32 %v2413_v16, %v2162_v41  ;;  %v1554_v50 = vpop.f32.mrb[48].mxu1  ;;  %v2456_v8 = vadd.f32 %v2455_v40, %v2164_v43 }
 0x175   : > { %v1442_v49 = vadd.f32 %v1441_v46, %v3853_v62  ;;  %v1443_v51 = vpop.f32.mrb[49].mxu0  ;;  %v1555_v52 = vadd.f32 %v1554_v50, %v3861_v4  ;;  %v1556_v53 = vpop.f32.mrb[49].mxu1 }
 0x176   : > { %v1444_v18 = vadd.f32 %v1443_v51, %v3866_v5  ;;  %v1445_v54 = vpop.f32.mrb[50].mxu0  ;;  %v1557_v56 = vadd.f32 %v1556_v53, %v3876_v42  ;;  %v1558_v14 = vpop.f32.mrb[50].mxu1 }
 0x177   : > { %v2177_v55 = vmax.f32 %v1442_v49, 0.0  ;;  %v1446_v57 = vadd.f32 %v1445_v54, %v3853_v62  ;;  %v1447_v58 = vpop.f32.mrb[51].mxu0  ;;  %v2179_v60 = vmax.f32 %v1555_v52, 0.0  ;;  %v1559_v0 = vadd.f32 %v1558_v14, %v3861_v4  ;;  %v1560_v2 = vpop.f32.mrb[51].mxu1 }
 0x178   : > { %v2178_v61 = vmax.f32 %v1444_v18, 0.0  ;;  %v1448_v1 = vadd.f32 %v1447_v58, %v3866_v5  ;;  %v2180_v17 = vmax.f32 %v1557_v56, 0.0  ;;  %v1561_v10 = vadd.f32 %v1560_v2, %v3876_v42 }
 0x179   : > { %v2394_v6 = vadd.f32 %v2393_v45, %v2177_v55  ;;  %v2193_v7 = vmax.f32 %v1446_v57, 0.0  ;;  %v2436_v12 = vadd.f32 %v2435_v47, %v2179_v60  ;;  %v2195_v13 = vmax.f32 %v1559_v0, 0.0 }
 0x17a   : > { %v2415_v9 = vadd.f32 %v2414_v48, %v2178_v61  ;;  %v2194_v59 = vmax.f32 %v1448_v1, 0.0  ;;  %v2457_v19 = vadd.f32 %v2456_v8, %v2180_v17  ;;  %v2196_v21 = vmax.f32 %v1561_v10, 0.0 }
 0x17b   : > { %v2395_v20 = vadd.f32 %v2394_v6, %v2193_v7  ;;  %v2437_v22 = vadd.f32 %v2436_v12, %v2195_v13 }
 0x17c   : > { %v2416_v25 = vadd.f32 %v2415_v9, %v2194_v59  ;;  %v1451_v27 = vpop.f32.mrb[52].mxu0  ;;  %v2458_v28 = vadd.f32 %v2457_v19, %v2196_v21  ;;  %v1564_v31 = vpop.f32.mrb[52].mxu1 }
 0x17d   : > { %v1452_v30 = vadd.f32 %v1451_v27, %v3853_v62  ;;  %v1453_v26 = vpop.f32.mrb[53].mxu0  ;;  %v1565_v16 = vadd.f32 %v1564_v31, %v3861_v4  ;;  %v1566_v38 = vpop.f32.mrb[53].mxu1 }
 0x17e   : > { %v1454_v32 = vadd.f32 %v1453_v26, %v3866_v5  ;;  %v1455_v39 = vpop.f32.mrb[54].mxu0  ;;  %v1567_v43 = vadd.f32 %v1566_v38, %v3876_v42  ;;  %v1568_v45 = vpop.f32.mrb[54].mxu1 }
 0x17f   : > { %v2209_v41 = vmax.f32 %v1452_v30, 0.0  ;;  %v1456_v40 = vadd.f32 %v1455_v39, %v3853_v62  ;;  %v1457_v46 = vpop.f32.mrb[55].mxu0  ;;  %v2211_v47 = vmax.f32 %v1565_v16, 0.0  ;;  %v1569_v49 = vadd.f32 %v1568_v45, %v3861_v4  ;;  %v1570_v51 = vpop.f32.mrb[55].mxu1 }
 0x180   : > { %v2210_v48 = vmax.f32 %v1454_v32, 0.0  ;;  %v1458_v50 = vadd.f32 %v1457_v46, %v3866_v5  ;;  %v2212_v52 = vmax.f32 %v1567_v43, 0.0  ;;  %v1571_v53 = vadd.f32 %v1570_v51, %v3876_v42 }
 0x181   : > { %v2396_v8 = vadd.f32 %v2395_v20, %v2209_v41  ;;  %v2225_v18 = vmax.f32 %v1456_v40, 0.0  ;;  %v2438_v54 = vadd.f32 %v2437_v22, %v2211_v47  ;;  %v2227_v56 = vmax.f32 %v1569_v49, 0.0 }
 0x182   : > { %v2417_v55 = vadd.f32 %v2416_v25, %v2210_v48  ;;  %v2226_v57 = vmax.f32 %v1458_v50, 0.0  ;;  %v2459_v14 = vadd.f32 %v2458_v28, %v2212_v52  ;;  %v2228_v60 = vmax.f32 %v1571_v53, 0.0  ;;  %v3948_v48 = vld [vmem:[%s4193_s2 + $0x8] sm:$0xff] }
 0x183   : > { %v2397_v58 = vadd.f32 %v2396_v8, %v2225_v18  ;;  %v2439_v61 = vadd.f32 %v2438_v54, %v2227_v56 }
 0x184   : > { %v2418_v0 = vadd.f32 %v2417_v55, %v2226_v57  ;;  %v1461_v1 = vpop.f32.mrb[56].mxu0  ;;  %v2460_v2 = vadd.f32 %v2459_v14, %v2228_v60  ;;  %v1574_v17 = vpop.f32.mrb[56].mxu1  ;;  %v3956_v14 = vrot.slane %v3948_v48, %v375_v34 }
 0x185   : > { %v1462_v6 = vadd.f32 %v1461_v1, %v3853_v62  ;;  %v1463_v7 = vpop.f32.mrb[57].mxu0  ;;  %v1575_v10 = vadd.f32 %v1574_v17, %v3861_v4  ;;  %v1576_v9 = vpop.f32.mrb[57].mxu1 }
 0x186   : > { %v1464_v12 = vadd.f32 %v1463_v7, %v3866_v5  ;;  %v1465_v13 = vpop.f32.mrb[58].mxu0  ;;  %v1577_v19 = vadd.f32 %v1576_v9, %v3876_v42  ;;  %v1578_v21 = vpop.f32.mrb[58].mxu1 }
 0x187   : > { %v2241_v59 = vmax.f32 %v1462_v6, 0.0  ;;  %v1466_v20 = vadd.f32 %v1465_v13, %v3853_v62  ;;  %v1467_v22 = vpop.f32.mrb[59].mxu0  ;;  %v2243_v25 = vmax.f32 %v1575_v10, 0.0  ;;  %v1579_v28 = vadd.f32 %v1578_v21, %v3861_v4  ;;  %v1580_v31 = vpop.f32.mrb[59].mxu1 }
 0x188   : > { %v2242_v27 = vmax.f32 %v1464_v12, 0.0  ;;  %v1468_v30 = vadd.f32 %v1467_v22, %v3866_v5  ;;  %v2244_v16 = vmax.f32 %v1577_v19, 0.0  ;;  %v1581_v38 = vadd.f32 %v1580_v31, %v3876_v42 }
 0x189   : > { %v2398_v26 = vadd.f32 %v2397_v58, %v2241_v59  ;;  %v2257_v32 = vmax.f32 %v1466_v20, 0.0  ;;  %v2440_v39 = vadd.f32 %v2439_v61, %v2243_v25  ;;  %v2259_v43 = vmax.f32 %v1579_v28, 0.0 }
 0x18a   : > { %v2419_v41 = vadd.f32 %v2418_v0, %v2242_v27  ;;  %v2258_v40 = vmax.f32 %v1468_v30, 0.0  ;;  %v2461_v45 = vadd.f32 %v2460_v2, %v2244_v16  ;;  %v2260_v47 = vmax.f32 %v1581_v38, 0.0 }
 0x18b   : > { %v2399_v46 = vadd.f32 %v2398_v26, %v2257_v32  ;;  %v2441_v49 = vadd.f32 %v2440_v39, %v2259_v43  ;;  %v3961_v58 = vrot.slane %v3948_v48, %v383_v35  ;;  %v3968_v6 = vrot.slane %v3948_v48, %v379_v36 }
 0x18c   : > { %v2420_v50 = vadd.f32 %v2419_v41, %v2258_v40  ;;  %v1471_v51 = vpop.f32.mrb[60].mxu0  ;;  %v2462_v8 = vadd.f32 %v2461_v45, %v2260_v47  ;;  %v1584_v18 = vpop.f32.mrb[60].mxu1  ;;  %v3976_v27 = vrot.slane %v3948_v48, %v387_v37 }
 0x18d   : > { %v1472_v52 = vadd.f32 %v1471_v51, %v3853_v62  ;;  %v1473_v53 = vpop.f32.mrb[61].mxu0  ;;  %v1585_v54 = vadd.f32 %v1584_v18, %v3861_v4  ;;  %v1586_v56 = vpop.f32.mrb[61].mxu1 }
 0x18e   : > { %v1474_v55 = vadd.f32 %v1473_v53, %v3866_v5  ;;  %v1475_v57 = vpop.f32.mrb[62].mxu0  ;;  %v1587_v61 = vadd.f32 %v1586_v56, %v3876_v42  ;;  %v1588_v1 = vpop.f32.mrb[62].mxu1 }
 0x18f   : > { %v2273_v60 = vmax.f32 %v1472_v52, 0.0  ;;  %v1476_v0 = vadd.f32 %v1475_v57, %v3853_v62  ;;  %v1477_v2 = vpop.f32.mrb[63].mxu0  ;;  %v2275_v17 = vmax.f32 %v1585_v54, 0.0  ;;  %v1589_v7 = vadd.f32 %v1588_v1, %v3861_v4  ;;  %v1590_v35 = vpop.f32.mrb[63].mxu1 }
 0x190   : > { %v2274_v34 = vmax.f32 %v1474_v55, 0.0  ;;  %v1478_v10 = vadd.f32 %v1477_v2, %v3866_v5  ;;  %v2276_v9 = vmax.f32 %v1587_v61, 0.0  ;;  %v1591_v59 = vadd.f32 %v1590_v35, %v3876_v42 }
 0x191   : > { %v2400_v12 = vadd.f32 %v2399_v46, %v2273_v60  ;;  %v2289_v13 = vmax.f32 %v1476_v0, 0.0  ;;  %v2442_v62 = vadd.f32 %v2441_v49, %v2275_v17  ;;  %v2291_v20 = vmax.f32 %v1589_v7, 0.0 }
 0x192   : > { %v2421_v19 = vadd.f32 %v2420_v50, %v2274_v34  ;;  %v2290_v21 = vmax.f32 %v1478_v10, 0.0  ;;  %v2463_v22 = vadd.f32 %v2462_v8, %v2276_v9  ;;  %v2292_v36 = vmax.f32 %v1591_v59, 0.0 }
 0x193   : > { %v2401_v25 = vadd.f32 %v2400_v12, %v2289_v13  ;;  %v2443_v4 = vadd.f32 %v2442_v62, %v2291_v20  ;;  %v3982_v42 = vrot.slane %v2687_v29, %v3879_v44 }
 0x194   : > { %v2422_v5 = vadd.f32 %v2421_v19, %v2290_v21  ;;  %v1627_v28 = vpop.f32.mrb[64].mxu0  ;;  %v2464_v31 = vadd.f32 %v2463_v22, %v2292_v36  ;;  %v1740_v16 = vpop.f32.mrb[64].mxu1 }
 0x195   : > { %v2402_v30 = vrot.slane %v2401_v25, 4  ;;  %v1628_v26 = vadd.f32 %v1627_v28, %v3956_v14  ;;  %v1629_v32 = vpop.f32.mrb[65].mxu0  ;;  %v2444_v38 = vrot.slane %v2443_v4, 4  ;;  %v1741_v37 = vadd.f32 %v1740_v16, %v3961_v58  ;;  %v1742_v43 = vpop.f32.mrb[65].mxu1 }
 0x196   : > { %v2423_v39 = vrot.slane %v2422_v5, 4  ;;  %v1630_v41 = vadd.f32 %v1629_v32, %v3968_v6  ;;  %v1631_v40 = vpop.f32.mrb[66].mxu0  ;;  %v2465_v46 = vrot.slane %v2464_v31, 4  ;;  %v1743_v3 = vadd.f32 %v1742_v43, %v3976_v27  ;;  %v1744_v11 = vpop.f32.mrb[66].mxu1 }
 0x197   : > { %v2403_v45 = vadd.f32 %v2402_v30, %v2401_v25  ;;  %v2053_v47 = vmax.f32 %v1628_v26, 0.0  ;;  %v1633_v29 = vpop.f32.mrb[67].mxu0  ;;  %v2445_v49 = vadd.f32 %v2444_v38, %v2443_v4  ;;  %v2055_v51 = vmax.f32 %v1741_v37, 0.0  ;;  %v1746_v52 = vpop.f32.mrb[67].mxu1 }
 0x198   : > { %v2424_v50 = vadd.f32 %v2423_v39, %v2422_v5  ;;  %v2054_v8 = vmax.f32 %v1630_v41, 0.0  ;;  %v2466_v53 = vadd.f32 %v2465_v46, %v2464_v31  ;;  %v2056_v54 = vmax.f32 %v1743_v3, 0.0 }
 0x199   : > { %v2404_v18 = vrot.slane %v2403_v45, 2  ;;  %v1632_v55 = vadd.f32 %v1631_v40, %v3956_v14  ;;  %v2446_v56 = vrot.slane %v2445_v49, 2  ;;  %v1745_v60 = vadd.f32 %v1744_v11, %v3961_v58 }
 0x19a   : > { %v2425_v57 = vrot.slane %v2424_v50, 2  ;;  %v1634_v61 = vadd.f32 %v1633_v29, %v3968_v6  ;;  %v2467_v1 = vrot.slane %v2466_v53, 2  ;;  %v1747_v17 = vadd.f32 %v1746_v52, %v3976_v27 }
 0x19b   : > { %v2405_v0 = vadd.f32 %v2404_v18, %v2403_v45  ;;  %v2069_v2 = vmax.f32 %v1632_v55, 0.0  ;;  %v2447_v34 = vadd.f32 %v2446_v56, %v2445_v49  ;;  %v2071_v10 = vmax.f32 %v1745_v60, 0.0 }
 0x19c   : > { %v2426_v7 = vadd.f32 %v2425_v57, %v2424_v50  ;;  %v2070_v35 = vmax.f32 %v1634_v61, 0.0  ;;  %v1637_v12 = vpop.f32.mrb[68].mxu0  ;;  %v2468_v13 = vadd.f32 %v2467_v1, %v2466_v53  ;;  %v2072_v62 = vmax.f32 %v1747_v17, 0.0  ;;  %v1750_v19 = vpop.f32.mrb[68].mxu1 }
 0x19d   : > { %v2406_v9 = vrot.slane %v2405_v0, 1  ;;  %v2471_v59 = vadd.f32 %v2069_v2, %v2053_v47  ;;  %v1639_v20 = vpop.f32.mrb[69].mxu0  ;;  %v2448_v21 = vrot.slane %v2447_v34, 1  ;;  %v2513_v25 = vadd.f32 %v2071_v10, %v2055_v51  ;;  %v1752_v4 = vpop.f32.mrb[69].mxu1 }
 0x19e   : > { %v2427_v22 = vrot.slane %v2426_v7, 1  ;;  %v2492_v36 = vadd.f32 %v2070_v35, %v2054_v8  ;;  %v1641_v5 = vpop.f32.mrb[70].mxu0  ;;  %v2469_v30 = vrot.slane %v2468_v13, 1  ;;  %v2534_v31 = vadd.f32 %v2072_v62, %v2056_v54  ;;  %v1754_v16 = vpop.f32.mrb[70].mxu1 }
 0x19f   : > { %v2407_v28 = vadd.f32 %v2406_v9, %v2405_v0  ;;  %v1638_v26 = vadd.f32 %v1637_v12, %v3956_v14  ;;  %v1643_v32 = vpop.f32.mrb[71].mxu0  ;;  %v2449_v38 = vadd.f32 %v2448_v21, %v2447_v34  ;;  %v1751_v37 = vadd.f32 %v1750_v19, %v3961_v58  ;;  %v1756_v43 = vpop.f32.mrb[71].mxu1 }
 0x1a0   : > { %v2428_v39 = vadd.f32 %v2427_v22, %v2426_v7  ;;  %v1640_v41 = vadd.f32 %v1639_v20, %v3968_v6  ;;  %v2470_v40 = vadd.f32 %v2469_v30, %v2468_v13  ;;  %v1753_v46 = vadd.f32 %v1752_v4, %v3976_v27 }
 0x1a1   : > { %v2085_v45 = vmax.f32 %v1638_v26, 0.0  ;;  %v1642_v47 = vadd.f32 %v1641_v5, %v3956_v14  ;;  %v2087_v11 = vmax.f32 %v1751_v37, 0.0  ;;  %v1755_v49 = vadd.f32 %v1754_v16, %v3961_v58  ;;  %v2301_v26 = vld [vmem:[#allocation2] sm:$0xff] }
 0x1a2   : > { %v2657_v3 = vcombine.low %v2407_v28, %v2428_v39  ;;  %v2086_v29 = vmax.f32 %v1640_v41, 0.0  ;;  %v2658_v50 = vcombine.low %v2449_v38, %v2470_v40  ;;  %v2088_v8 = vmax.f32 %v1753_v46, 0.0 }
 0x1a3   : > { %v2472_v51 = vadd.f32 %v2471_v59, %v2085_v45  ;;  %v2101_v52 = vmax.f32 %v1642_v47, 0.0  ;;  %v2514_v53 = vadd.f32 %v2513_v25, %v2087_v11  ;;  %v2103_v55 = vmax.f32 %v1755_v49, 0.0 }
 0x1a4   : > { %v2679_v18 = vrot.slane %v2657_v3, %v3879_v44  ;;  %v2493_v54 = vadd.f32 %v2492_v36, %v2086_v29  ;;  %v1647_v56 = vpop.f32.mrb[72].mxu0  ;;  %v2686_v57 = vrot.slane %v2658_v50, %v3879_v44  ;;  %v2535_v60 = vadd.f32 %v2534_v31, %v2088_v8  ;;  %v1760_v1 = vpop.f32.mrb[72].mxu1 }
 0x1a5   : > { %v2473_v61 = vadd.f32 %v2472_v51, %v2101_v52  ;;  %v1644_v0 = vadd.f32 %v1643_v32, %v3968_v6  ;;  %v1649_v2 = vpop.f32.mrb[73].mxu0  ;;  %v2515_v17 = vadd.f32 %v2514_v53, %v2103_v55  ;;  %v1757_v34 = vadd.f32 %v1756_v43, %v3976_v27  ;;  %v1762_v35 = vpop.f32.mrb[73].mxu1 }
 0x1a6   : > { %v1648_v7 = vadd.f32 %v1647_v56, %v3956_v14  ;;  %v1761_v10 = vadd.f32 %v1760_v1, %v3961_v58  ;;  %v1651_v12 = vpop.f32.mrb[74].mxu0  ;;  %v2688_v9 = vcombine.low %v2679_v18, %v2686_v57  ;;  %v1650_v59 = vadd.f32 %v1649_v2, %v3968_v6  ;;  %v1764_v19 = vpop.f32.mrb[74].mxu1 }
 0x1a7   : > { %v2102_v13 = vmax.f32 %v1644_v0, 0.0  ;;  %v1763_v62 = vadd.f32 %v1762_v35, %v3976_v27  ;;  %v1653_v20 = vpop.f32.mrb[75].mxu0  ;;  %v2104_v21 = vmax.f32 %v1757_v34, 0.0  ;;  %v1652_v36 = vadd.f32 %v1651_v12, %v3956_v14  ;;  %v1766_v4 = vpop.f32.mrb[75].mxu1 }
 0x1a8   : > { %v2117_v22 = vmax.f32 %v1648_v7, 0.0  ;;  %v2119_v25 = vmax.f32 %v1761_v10, 0.0  ;;  %v2702_v5 = vrot.slane %v2688_v9, %v3879_v44  ;;  %v2118_v30 = vmax.f32 %v1650_v59, 0.0 }
 0x1a9   : > { %v2494_v28 = vadd.f32 %v2493_v54, %v2102_v13  ;;  %v2120_v31 = vmax.f32 %v1763_v62, 0.0  ;;  %v2536_v16 = vadd.f32 %v2535_v60, %v2104_v21  ;;  %v2133_v39 = vmax.f32 %v1652_v36, 0.0 }
 0x1aa   : > { %v2474_v32 = vadd.f32 %v2473_v61, %v2117_v22  ;;  %v2516_v38 = vadd.f32 %v2515_v17, %v2119_v25  ;;  %v2703_v37 = vcombine.low %v3982_v42, %v2702_v5  ;;  %v1765_v43 = vadd.f32 %v1764_v19, %v3961_v58 }
 0x1ab   : > { %v2495_v41 = vadd.f32 %v2494_v28, %v2118_v30  ;;  %v1654_v40 = vadd.f32 %v1653_v20, %v3968_v6  ;;  %v2537_v45 = vadd.f32 %v2536_v16, %v2120_v31  ;;  %v1767_v47 = vadd.f32 %v1766_v4, %v3976_v27 }
 0x1ac   : > { %v2475_v46 = vadd.f32 %v2474_v32, %v2133_v39  ;;  %v1657_v3 = vpop.f32.mrb[76].mxu0  ;;  %v2755_v11 = vadd.f32 %v2703_v37, %v2301_v26  ;;  %v2135_v29 = vmax.f32 %v1765_v43, 0.0  ;;  %v1770_v51 = vpop.f32.mrb[76].mxu1 }
 0x1ad   : > { %v2134_v49 = vmax.f32 %v1654_v40, 0.0  ;;  %v1658_v50 = vadd.f32 %v1657_v3, %v3956_v14  ;;  %v1659_v8 = vpop.f32.mrb[77].mxu0  ;;  %v2136_v42 = vmax.f32 %v1767_v47, 0.0  ;;  %v1771_v52 = vadd.f32 %v1770_v51, %v3961_v58  ;;  %v1772_v53 = vpop.f32.mrb[77].mxu1 }
 0x1ae   : > { %v1660_v18 = vadd.f32 %v1659_v8, %v3968_v6  ;;  %v1661_v54 = vpop.f32.mrb[78].mxu0  ;;  %2757 = vst [vmem:[#allocation2] sm:$0xff] %v2755_v11  ;;  %v2517_v55 = vadd.f32 %v2516_v38, %v2135_v29  ;;  %v1773_v60 = vadd.f32 %v1772_v53, %v3976_v27  ;;  %v1774_v61 = vpop.f32.mrb[78].mxu1 }
 0x1af   : > { %v2496_v56 = vadd.f32 %v2495_v41, %v2134_v49  ;;  %v2149_v57 = vmax.f32 %v1658_v50, 0.0  ;;  %v1663_v0 = vpop.f32.mrb[79].mxu0  ;;  %v2538_v1 = vadd.f32 %v2537_v45, %v2136_v42  ;;  %v2151_v2 = vmax.f32 %v1771_v52, 0.0  ;;  %v1776_v7 = vpop.f32.mrb[79].mxu1 }
 0x1b0   : > { %v2150_v17 = vmax.f32 %v1660_v18, 0.0  ;;  %v1662_v34 = vadd.f32 %v1661_v54, %v3956_v14  ;;  %v2152_v35 = vmax.f32 %v1773_v60, 0.0  ;;  %v1775_v12 = vadd.f32 %v1774_v61, %v3961_v58 }
 0x1b1   : > { %v2476_v10 = vadd.f32 %v2475_v46, %v2149_v57  ;;  %v1664_v9 = vadd.f32 %v1663_v0, %v3968_v6  ;;  %v2518_v13 = vadd.f32 %v2517_v55, %v2151_v2  ;;  %v1777_v19 = vadd.f32 %v1776_v7, %v3976_v27 }
 0x1b2   : > { %v2497_v59 = vadd.f32 %v2496_v56, %v2150_v17  ;;  %v2165_v62 = vmax.f32 %v1662_v34, 0.0  ;;  %v2539_v20 = vadd.f32 %v2538_v1, %v2152_v35  ;;  %v2167_v21 = vmax.f32 %v1775_v12, 0.0 }
 0x1b3   : > { %v2166_v22 = vmax.f32 %v1664_v9, 0.0  ;;  %v2168_v36 = vmax.f32 %v1777_v19, 0.0 }
 0x1b4   : > { %v2477_v25 = vadd.f32 %v2476_v10, %v2165_v62  ;;  %v1667_v4 = vpop.f32.mrb[80].mxu0  ;;  %v2519_v5 = vadd.f32 %v2518_v13, %v2167_v21  ;;  %v1780_v31 = vpop.f32.mrb[80].mxu1 }
 0x1b5   : > { %v2498_v28 = vadd.f32 %v2497_v59, %v2166_v22  ;;  %v1668_v30 = vadd.f32 %v1667_v4, %v3956_v14  ;;  %v1669_v26 = vpop.f32.mrb[81].mxu0  ;;  %v2540_v16 = vadd.f32 %v2539_v20, %v2168_v36  ;;  %v1781_v32 = vadd.f32 %v1780_v31, %v3961_v58  ;;  %v1782_v39 = vpop.f32.mrb[81].mxu1 }
 0x1b6   : > { %v1670_v38 = vadd.f32 %v1669_v26, %v3968_v6  ;;  %v1671_v37 = vpop.f32.mrb[82].mxu0  ;;  %v1783_v43 = vadd.f32 %v1782_v39, %v3976_v27  ;;  %v1784_v45 = vpop.f32.mrb[82].mxu1 }
 0x1b7   : > { %v2181_v41 = vmax.f32 %v1668_v30, 0.0  ;;  %v1672_v40 = vadd.f32 %v1671_v37, %v3956_v14  ;;  %v1673_v46 = vpop.f32.mrb[83].mxu0  ;;  %v2183_v47 = vmax.f32 %v1781_v32, 0.0  ;;  %v1785_v11 = vadd.f32 %v1784_v45, %v3961_v58  ;;  %v1786_v49 = vpop.f32.mrb[83].mxu1 }
 0x1b8   : > { %v2182_v3 = vmax.f32 %v1670_v38, 0.0  ;;  %v1674_v29 = vadd.f32 %v1673_v46, %v3968_v6  ;;  %v2184_v51 = vmax.f32 %v1783_v43, 0.0  ;;  %v1787_v42 = vadd.f32 %v1786_v49, %v3976_v27 }
 0x1b9   : > { %v2478_v50 = vadd.f32 %v2477_v25, %v2181_v41  ;;  %v2197_v8 = vmax.f32 %v1672_v40, 0.0  ;;  %v2520_v52 = vadd.f32 %v2519_v5, %v2183_v47  ;;  %v2199_v53 = vmax.f32 %v1785_v11, 0.0 }
 0x1ba   : > { %v2499_v18 = vadd.f32 %v2498_v28, %v2182_v3  ;;  %v2198_v54 = vmax.f32 %v1674_v29, 0.0  ;;  %v2541_v55 = vadd.f32 %v2540_v16, %v2184_v51  ;;  %v2200_v57 = vmax.f32 %v1787_v42, 0.0 }
 0x1bb   : > { %v2479_v56 = vadd.f32 %v2478_v50, %v2197_v8  ;;  %v2521_v60 = vadd.f32 %v2520_v52, %v2199_v53 }
 0x1bc   : > { %v2500_v61 = vadd.f32 %v2499_v18, %v2198_v54  ;;  %v1677_v0 = vpop.f32.mrb[84].mxu0  ;;  %v2542_v1 = vadd.f32 %v2541_v55, %v2200_v57  ;;  %v1790_v17 = vpop.f32.mrb[84].mxu1 }
 0x1bd   : > { %v1678_v2 = vadd.f32 %v1677_v0, %v3956_v14  ;;  %v1679_v34 = vpop.f32.mrb[85].mxu0  ;;  %v1791_v7 = vadd.f32 %v1790_v17, %v3961_v58  ;;  %v1792_v35 = vpop.f32.mrb[85].mxu1 }
 0x1be   : > { %v1680_v10 = vadd.f32 %v1679_v34, %v3968_v6  ;;  %v1681_v12 = vpop.f32.mrb[86].mxu0  ;;  %v1793_v13 = vadd.f32 %v1792_v35, %v3976_v27  ;;  %v1794_v62 = vpop.f32.mrb[86].mxu1 }
 0x1bf   : > { %v2213_v9 = vmax.f32 %v1678_v2, 0.0  ;;  %v1682_v59 = vadd.f32 %v1681_v12, %v3956_v14  ;;  %v1683_v19 = vpop.f32.mrb[87].mxu0  ;;  %v2215_v20 = vmax.f32 %v1791_v7, 0.0  ;;  %v1795_v22 = vadd.f32 %v1794_v62, %v3961_v58  ;;  %v1796_v36 = vpop.f32.mrb[87].mxu1 }
 0x1c0   : > { %v2214_v21 = vmax.f32 %v1680_v10, 0.0  ;;  %v1684_v25 = vadd.f32 %v1683_v19, %v3968_v6  ;;  %v2216_v5 = vmax.f32 %v1793_v13, 0.0  ;;  %v1797_v30 = vadd.f32 %v1796_v36, %v3976_v27 }
 0x1c1   : > { %v2480_v4 = vadd.f32 %v2479_v56, %v2213_v9  ;;  %v2229_v28 = vmax.f32 %v1682_v59, 0.0  ;;  %v2522_v31 = vadd.f32 %v2521_v60, %v2215_v20  ;;  %v2231_v16 = vmax.f32 %v1795_v22, 0.0 }
 0x1c2   : > { %v2501_v26 = vadd.f32 %v2500_v61, %v2214_v21  ;;  %v2230_v32 = vmax.f32 %v1684_v25, 0.0  ;;  %v2543_v38 = vadd.f32 %v2542_v1, %v2216_v5  ;;  %v2232_v37 = vmax.f32 %v1797_v30, 0.0 }
 0x1c3   : > { %v2481_v39 = vadd.f32 %v2480_v4, %v2229_v28  ;;  %v2523_v41 = vadd.f32 %v2522_v31, %v2231_v16  ;;  %v4058_v5 = vrot.slane %v3948_v48, %v391_v15  ;;  %v4063_v28 = vrot.slane %v3948_v48, %v399_v23 }
 0x1c4   : > { %v2502_v43 = vadd.f32 %v2501_v26, %v2230_v32  ;;  %v1687_v40 = vpop.f32.mrb[88].mxu0  ;;  %v2544_v45 = vadd.f32 %v2543_v38, %v2232_v37  ;;  %v1800_v47 = vpop.f32.mrb[88].mxu1  ;;  %v4070_v38 = vrot.slane %v3948_v48, %v395_v24 }
 0x1c5   : > { %v1688_v46 = vadd.f32 %v1687_v40, %v3956_v14  ;;  %v1689_v3 = vpop.f32.mrb[89].mxu0  ;;  %v1801_v11 = vadd.f32 %v1800_v47, %v3961_v58  ;;  %v1802_v49 = vpop.f32.mrb[89].mxu1 }
 0x1c6   : > { %v1690_v29 = vadd.f32 %v1689_v3, %v3968_v6  ;;  %v1691_v50 = vpop.f32.mrb[90].mxu0  ;;  %v1803_v8 = vadd.f32 %v1802_v49, %v3976_v27  ;;  %v1804_v52 = vpop.f32.mrb[90].mxu1 }
 0x1c7   : > { %v2245_v51 = vmax.f32 %v1688_v46, 0.0  ;;  %v1692_v42 = vadd.f32 %v1691_v50, %v3956_v14  ;;  %v1693_v18 = vpop.f32.mrb[91].mxu0  ;;  %v2247_v53 = vmax.f32 %v1801_v11, 0.0  ;;  %v1805_v55 = vadd.f32 %v1804_v52, %v3961_v58  ;;  %v1806_v57 = vpop.f32.mrb[91].mxu1 }
 0x1c8   : > { %v2246_v54 = vmax.f32 %v1690_v29, 0.0  ;;  %v1694_v56 = vadd.f32 %v1693_v18, %v3968_v6  ;;  %v2248_v61 = vmax.f32 %v1803_v8, 0.0  ;;  %v1807_v1 = vadd.f32 %v1806_v57, %v3976_v27 }
 0x1c9   : > { %v2482_v60 = vadd.f32 %v2481_v39, %v2245_v51  ;;  %v2261_v0 = vmax.f32 %v1692_v42, 0.0  ;;  %v2524_v2 = vadd.f32 %v2523_v41, %v2247_v53  ;;  %v2263_v34 = vmax.f32 %v1805_v55, 0.0 }
 0x1ca   : > { %v2503_v17 = vadd.f32 %v2502_v43, %v2246_v54  ;;  %v2262_v7 = vmax.f32 %v1694_v56, 0.0  ;;  %v2545_v10 = vadd.f32 %v2544_v45, %v2248_v61  ;;  %v2264_v12 = vmax.f32 %v1807_v1, 0.0 }
 0x1cb   : > { %v2483_v35 = vadd.f32 %v2482_v60, %v2261_v0  ;;  %v2525_v9 = vadd.f32 %v2524_v2, %v2263_v34  ;;  %v4078_v50 = vrot.slane %v3948_v48, %v403_v63 }
 0x1cc   : > { %v2504_v13 = vadd.f32 %v2503_v17, %v2262_v7  ;;  %v1697_v59 = vpop.f32.mrb[92].mxu0  ;;  %v2546_v62 = vadd.f32 %v2545_v10, %v2264_v12  ;;  %v1810_v20 = vpop.f32.mrb[92].mxu1 }
 0x1cd   : > { %v1698_v19 = vadd.f32 %v1697_v59, %v3956_v14  ;;  %v1699_v21 = vpop.f32.mrb[93].mxu0  ;;  %v1811_v22 = vadd.f32 %v1810_v20, %v3961_v58  ;;  %v1812_v36 = vpop.f32.mrb[93].mxu1 }
 0x1ce   : > { %v1700_v25 = vadd.f32 %v1699_v21, %v3968_v6  ;;  %v1701_v4 = vpop.f32.mrb[94].mxu0  ;;  %v1813_v31 = vadd.f32 %v1812_v36, %v3976_v27  ;;  %v1814_v16 = vpop.f32.mrb[94].mxu1 }
 0x1cf   : > { %v2277_v30 = vmax.f32 %v1698_v19, 0.0  ;;  %v1702_v26 = vadd.f32 %v1701_v4, %v3956_v14  ;;  %v1703_v32 = vpop.f32.mrb[95].mxu0  ;;  %v2279_v39 = vmax.f32 %v1811_v22, 0.0  ;;  %v1815_v37 = vadd.f32 %v1814_v16, %v3961_v58  ;;  %v1816_v23 = vpop.f32.mrb[95].mxu1 }
 0x1d0   : > { %v2278_v15 = vmax.f32 %v1700_v25, 0.0  ;;  %v1704_v41 = vadd.f32 %v1703_v32, %v3968_v6  ;;  %v2280_v40 = vmax.f32 %v1813_v31, 0.0  ;;  %v1817_v46 = vadd.f32 %v1816_v23, %v3976_v27 }
 0x1d1   : > { %v2484_v43 = vadd.f32 %v2483_v35, %v2277_v30  ;;  %v2293_v45 = vmax.f32 %v1702_v26, 0.0  ;;  %v2526_v14 = vadd.f32 %v2525_v9, %v2279_v39  ;;  %v2295_v3 = vmax.f32 %v1815_v37, 0.0 }
 0x1d2   : > { %v2505_v47 = vadd.f32 %v2504_v13, %v2278_v15  ;;  %v2294_v11 = vmax.f32 %v1704_v41, 0.0  ;;  %v2547_v29 = vadd.f32 %v2546_v62, %v2280_v40  ;;  %v2296_v24 = vmax.f32 %v1817_v46, 0.0 }
 0x1d3   : > { %v2485_v49 = vadd.f32 %v2484_v43, %v2293_v45  ;;  %v2527_v58 = vadd.f32 %v2526_v14, %v2295_v3 }
 0x1d4   : > { %v2506_v6 = vadd.f32 %v2505_v47, %v2294_v11  ;;  %v1853_v51 = vpop.f32.mrb[96].mxu0  ;;  %v2548_v42 = vadd.f32 %v2547_v29, %v2296_v24  ;;  %v1966_v27 = vpop.f32.mrb[96].mxu1 }
 0x1d5   : > { %v2486_v8 = vrot.slane %v2485_v49, 4  ;;  %v1854_v52 = vadd.f32 %v1853_v51, %v4058_v5  ;;  %v1855_v18 = vpop.f32.mrb[97].mxu0  ;;  %v2528_v53 = vrot.slane %v2527_v58, 4  ;;  %v1967_v55 = vadd.f32 %v1966_v27, %v4063_v28  ;;  %v1968_v57 = vpop.f32.mrb[97].mxu1 }
 0x1d6   : > { %v2507_v54 = vrot.slane %v2506_v6, 4  ;;  %v1856_v56 = vadd.f32 %v1855_v18, %v4070_v38  ;;  %v1857_v33 = vpop.f32.mrb[98].mxu0  ;;  %v2549_v63 = vrot.slane %v2548_v42, 4  ;;  %v1969_v61 = vadd.f32 %v1968_v57, %v4078_v50  ;;  %v1970_v0 = vpop.f32.mrb[98].mxu1 }
 0x1d7   : > { %v2487_v60 = vadd.f32 %v2486_v8, %v2485_v49  ;;  %v2057_v48 = vmax.f32 %v1854_v52, 0.0  ;;  %v1859_v1 = vpop.f32.mrb[99].mxu0  ;;  %v2529_v2 = vadd.f32 %v2528_v53, %v2527_v58  ;;  %v2059_v34 = vmax.f32 %v1967_v55, 0.0  ;;  %v1972_v10 = vpop.f32.mrb[99].mxu1 }
 0x1d8   : > { %v2508_v17 = vadd.f32 %v2507_v54, %v2506_v6  ;;  %v2058_v7 = vmax.f32 %v1856_v56, 0.0  ;;  %v2550_v12 = vadd.f32 %v2549_v63, %v2548_v42  ;;  %v2060_v9 = vmax.f32 %v1969_v61, 0.0 }
 0x1d9   : > { %v2488_v35 = vrot.slane %v2487_v60, 2  ;;  %v1858_v13 = vadd.f32 %v1857_v33, %v4058_v5  ;;  %v2530_v59 = vrot.slane %v2529_v2, 2  ;;  %v1971_v19 = vadd.f32 %v1970_v0, %v4063_v28 }
 0x1da   : > { %v2509_v62 = vrot.slane %v2508_v17, 2  ;;  %v1860_v20 = vadd.f32 %v1859_v1, %v4070_v38  ;;  %v2551_v22 = vrot.slane %v2550_v12, 2  ;;  %v1973_v36 = vadd.f32 %v1972_v10, %v4078_v50 }
 0x1db   : > { %v2489_v21 = vadd.f32 %v2488_v35, %v2487_v60  ;;  %v2073_v25 = vmax.f32 %v1858_v13, 0.0  ;;  %v2531_v4 = vadd.f32 %v2530_v59, %v2529_v2  ;;  %v2075_v31 = vmax.f32 %v1971_v19, 0.0 }
 0x1dc   : > { %v2510_v30 = vadd.f32 %v2509_v62, %v2508_v17  ;;  %v2074_v26 = vmax.f32 %v1860_v20, 0.0  ;;  %v1863_v16 = vpop.f32.mrb[100].mxu0  ;;  %v2552_v39 = vadd.f32 %v2551_v22, %v2550_v12  ;;  %v2076_v37 = vmax.f32 %v1973_v36, 0.0  ;;  %v1976_v41 = vpop.f32.mrb[100].mxu1 }
 0x1dd   : > { %v2490_v32 = vrot.slane %v2489_v21, 1  ;;  %v2555_v15 = vadd.f32 %v2073_v25, %v2057_v48  ;;  %v1865_v23 = vpop.f32.mrb[101].mxu0  ;;  %v2532_v43 = vrot.slane %v2531_v4, 1  ;;  %v2597_v45 = vadd.f32 %v2075_v31, %v2059_v34  ;;  %v1978_v14 = vpop.f32.mrb[101].mxu1 }
 0x1de   : > { %v2511_v40 = vrot.slane %v2510_v30, 1  ;;  %v2576_v46 = vadd.f32 %v2074_v26, %v2058_v7  ;;  %v1867_v47 = vpop.f32.mrb[102].mxu0  ;;  %v2553_v11 = vrot.slane %v2552_v39, 1  ;;  %v2618_v29 = vadd.f32 %v2076_v37, %v2060_v9  ;;  %v1980_v24 = vpop.f32.mrb[102].mxu1 }
 0x1df   : > { %v2491_v3 = vadd.f32 %v2490_v32, %v2489_v21  ;;  %v1864_v49 = vadd.f32 %v1863_v16, %v4058_v5  ;;  %v1869_v58 = vpop.f32.mrb[103].mxu0  ;;  %v2533_v6 = vadd.f32 %v2532_v43, %v2531_v4  ;;  %v1977_v8 = vadd.f32 %v1976_v41, %v4063_v28  ;;  %v1982_v52 = vpop.f32.mrb[103].mxu1 }
 0x1e0   : > { %v2512_v51 = vadd.f32 %v2511_v40, %v2510_v30  ;;  %v1866_v42 = vadd.f32 %v1865_v23, %v4070_v38  ;;  %v2554_v27 = vadd.f32 %v2553_v11, %v2552_v39  ;;  %v1979_v53 = vadd.f32 %v1978_v14, %v4078_v50 }
 0x1e1   : > { %v2089_v18 = vmax.f32 %v1864_v49, 0.0  ;;  %v1868_v54 = vadd.f32 %v1867_v47, %v4058_v5  ;;  %v2091_v56 = vmax.f32 %v1977_v8, 0.0  ;;  %v1981_v33 = vadd.f32 %v1980_v24, %v4063_v28 }
 0x1e2   : > { %v2704_v55 = vcombine.low %v2491_v3, %v2512_v51  ;;  %v2090_v57 = vmax.f32 %v1866_v42, 0.0  ;;  %v2705_v60 = vcombine.low %v2533_v6, %v2554_v27  ;;  %v2092_v48 = vmax.f32 %v1979_v53, 0.0 }
 0x1e3   : > { %v2556_v63 = vadd.f32 %v2555_v15, %v2089_v18  ;;  %v2105_v61 = vmax.f32 %v1868_v54, 0.0  ;;  %v2598_v1 = vadd.f32 %v2597_v45, %v2091_v56  ;;  %v2107_v17 = vmax.f32 %v1981_v33, 0.0 }
 0x1e4   : > { %v4095_v0 = vrot.slane %v2704_v55, %v3879_v44  ;;  %v2577_v2 = vadd.f32 %v2576_v46, %v2090_v57  ;;  %v1873_v34 = vpop.f32.mrb[104].mxu0  ;;  %v4098_v7 = vrot.slane %v2705_v60, %v3879_v44  ;;  %v2619_v10 = vadd.f32 %v2618_v29, %v2092_v48  ;;  %v1986_v9 = vpop.f32.mrb[104].mxu1 }
 0x1e5   : > { %v2557_v35 = vadd.f32 %v2556_v63, %v2105_v61  ;;  %v1870_v12 = vadd.f32 %v1869_v58, %v4070_v38  ;;  %v1875_v13 = vpop.f32.mrb[105].mxu0  ;;  %v2599_v59 = vadd.f32 %v2598_v1, %v2107_v17  ;;  %v1983_v62 = vadd.f32 %v1982_v52, %v4078_v50  ;;  %v1988_v21 = vpop.f32.mrb[105].mxu1 }
 0x1e6   : > { %v1874_v19 = vadd.f32 %v1873_v34, %v4058_v5  ;;  %v1987_v20 = vadd.f32 %v1986_v9, %v4063_v28  ;;  %v1877_v22 = vpop.f32.mrb[106].mxu0  ;;  %v2736_v25 = vcombine.low %v4095_v0, %v4098_v7  ;;  %v1876_v4 = vadd.f32 %v1875_v13, %v4070_v38  ;;  %v1990_v31 = vpop.f32.mrb[106].mxu1 }
 0x1e7   : > { %v2106_v36 = vmax.f32 %v1870_v12, 0.0  ;;  %v1989_v30 = vadd.f32 %v1988_v21, %v4078_v50  ;;  %v1879_v26 = vpop.f32.mrb[107].mxu0  ;;  %v2108_v16 = vmax.f32 %v1983_v62, 0.0  ;;  %v1878_v15 = vadd.f32 %v1877_v22, %v4058_v5  ;;  %v1992_v37 = vpop.f32.mrb[107].mxu1 }
 0x1e8   : > { %v2121_v32 = vmax.f32 %v1874_v19, 0.0  ;;  %v2123_v39 = vmax.f32 %v1987_v20, 0.0  ;;  %v2122_v23 = vmax.f32 %v1876_v4, 0.0  ;;  %v1991_v3 = vadd.f32 %v1990_v31, %v4063_v28 }
 0x1e9   : > { %v2578_v41 = vadd.f32 %v2577_v2, %v2106_v36  ;;  %v2124_v43 = vmax.f32 %v1989_v30, 0.0  ;;  %v2620_v40 = vadd.f32 %v2619_v10, %v2108_v16  ;;  %v2137_v14 = vmax.f32 %v1878_v15, 0.0 }
 0x1ea   : > { %v2558_v45 = vadd.f32 %v2557_v35, %v2121_v32  ;;  %v2600_v46 = vadd.f32 %v2599_v59, %v2123_v39  ;;  %v1880_v11 = vadd.f32 %v1879_v26, %v4070_v38  ;;  %v1993_v29 = vadd.f32 %v1992_v37, %v4078_v50 }
 0x1eb   : > { %v2579_v47 = vadd.f32 %v2578_v41, %v2122_v23  ;;  %v2621_v49 = vadd.f32 %v2620_v40, %v2124_v43  ;;  %v2139_v6 = vmax.f32 %v1991_v3, 0.0 }
 0x1ec   : > { %v2559_v24 = vadd.f32 %v2558_v45, %v2137_v14  ;;  %v1883_v58 = vpop.f32.mrb[108].mxu0  ;;  %v2138_v51 = vmax.f32 %v1880_v11, 0.0  ;;  %v2140_v8 = vmax.f32 %v1993_v29, 0.0  ;;  %v1996_v52 = vpop.f32.mrb[108].mxu1 }
 0x1ed   : > { %v1884_v42 = vadd.f32 %v1883_v58, %v4058_v5  ;;  %v1885_v27 = vpop.f32.mrb[109].mxu0  ;;  %v1997_v18 = vadd.f32 %v1996_v52, %v4063_v28  ;;  %v1998_v54 = vpop.f32.mrb[109].mxu1  ;;  %v2601_v56 = vadd.f32 %v2600_v46, %v2139_v6 }
 0x1ee   : > { %v1886_v53 = vadd.f32 %v1885_v27, %v4070_v38  ;;  %v1887_v55 = vpop.f32.mrb[110].mxu0  ;;  %v2580_v57 = vadd.f32 %v2579_v47, %v2138_v51  ;;  %v2622_v33 = vadd.f32 %v2621_v49, %v2140_v8  ;;  %v2000_v63 = vpop.f32.mrb[110].mxu1  ;;  %v1999_v2 = vadd.f32 %v1998_v54, %v4078_v50 }
 0x1ef   : > { %v2153_v60 = vmax.f32 %v1884_v42, 0.0  ;;  %v1889_v48 = vpop.f32.mrb[111].mxu0  ;;  %v2155_v61 = vmax.f32 %v1997_v18, 0.0  ;;  %v1888_v17 = vadd.f32 %v1887_v55, %v4058_v5  ;;  %v2002_v34 = vpop.f32.mrb[111].mxu1  ;;  %v2001_v35 = vadd.f32 %v2000_v63, %v4063_v28 }
 0x1f0   : > { %v2154_v1 = vmax.f32 %v1886_v53, 0.0  ;;  %v1890_v12 = vadd.f32 %v1889_v48, %v4070_v38  ;;  %v2003_v9 = vadd.f32 %v2002_v34, %v4078_v50  ;;  %v2156_v62 = vmax.f32 %v1999_v2, 0.0 }
 0x1f1   : > { %v2560_v10 = vadd.f32 %v2559_v24, %v2153_v60  ;;  %v2602_v13 = vadd.f32 %v2601_v56, %v2155_v61  ;;  %v2169_v19 = vmax.f32 %v1888_v17, 0.0  ;;  %v2171_v20 = vmax.f32 %v2001_v35, 0.0 }
 0x1f2   : > { %v2581_v59 = vadd.f32 %v2580_v57, %v2154_v1  ;;  %v2170_v21 = vmax.f32 %v1890_v12, 0.0  ;;  %v2172_v22 = vmax.f32 %v2003_v9, 0.0  ;;  %v2623_v36 = vadd.f32 %v2622_v33, %v2156_v62 }
 0x1f3   : > { %v2561_v4 = vadd.f32 %v2560_v10, %v2169_v19  ;;  %v2603_v31 = vadd.f32 %v2602_v13, %v2171_v20 }
 0x1f4   : > { %v1893_v30 = vpop.f32.mrb[112].mxu0  ;;  %v2582_v26 = vadd.f32 %v2581_v59, %v2170_v21  ;;  %v2006_v32 = vpop.f32.mrb[112].mxu1  ;;  %v2624_v15 = vadd.f32 %v2623_v36, %v2172_v22 }
 0x1f5   : > { %v1894_v16 = vadd.f32 %v1893_v30, %v4058_v5  ;;  %v1895_v39 = vpop.f32.mrb[113].mxu0  ;;  %v2007_v37 = vadd.f32 %v2006_v32, %v4063_v28  ;;  %v2008_v23 = vpop.f32.mrb[113].mxu1 }
 0x1f6   : > { %v1896_v41 = vadd.f32 %v1895_v39, %v4070_v38  ;;  %v1897_v43 = vpop.f32.mrb[114].mxu0  ;;  %v2009_v45 = vadd.f32 %v2008_v23, %v4078_v50  ;;  %v2010_v14 = vpop.f32.mrb[114].mxu1 }
 0x1f7   : > { %v2185_v40 = vmax.f32 %v1894_v16, 0.0  ;;  %v1898_v46 = vadd.f32 %v1897_v43, %v4058_v5  ;;  %v1899_v47 = vpop.f32.mrb[115].mxu0  ;;  %v2187_v3 = vmax.f32 %v2007_v37, 0.0  ;;  %v2011_v29 = vadd.f32 %v2010_v14, %v4063_v28  ;;  %v2012_v24 = vpop.f32.mrb[115].mxu1 }
 0x1f8   : > { %v2186_v11 = vmax.f32 %v1896_v41, 0.0  ;;  %v1900_v49 = vadd.f32 %v1899_v47, %v4070_v38  ;;  %v2188_v6 = vmax.f32 %v2009_v45, 0.0  ;;  %v2013_v8 = vadd.f32 %v2012_v24, %v4078_v50 }
 0x1f9   : > { %v2562_v58 = vadd.f32 %v2561_v4, %v2185_v40  ;;  %v2201_v51 = vmax.f32 %v1898_v46, 0.0  ;;  %v2604_v42 = vadd.f32 %v2603_v31, %v2187_v3  ;;  %v2203_v27 = vmax.f32 %v2011_v29, 0.0 }
 0x1fa   : > { %v2583_v52 = vadd.f32 %v2582_v26, %v2186_v11  ;;  %v2202_v18 = vmax.f32 %v1900_v49, 0.0  ;;  %v2625_v53 = vadd.f32 %v2624_v15, %v2188_v6  ;;  %v2204_v55 = vmax.f32 %v2013_v8, 0.0 }
 0x1fb   : > { %v2563_v54 = vadd.f32 %v2562_v58, %v2201_v51  ;;  %v2605_v56 = vadd.f32 %v2604_v42, %v2203_v27 }
 0x1fc   : > { %v2584_v57 = vadd.f32 %v2583_v52, %v2202_v18  ;;  %v1903_v33 = vpop.f32.mrb[116].mxu0  ;;  %v2626_v60 = vadd.f32 %v2625_v53, %v2204_v55  ;;  %v2016_v48 = vpop.f32.mrb[116].mxu1 }
 0x1fd   : > { %v1904_v63 = vadd.f32 %v1903_v33, %v4058_v5  ;;  %v1905_v61 = vpop.f32.mrb[117].mxu0  ;;  %v2017_v1 = vadd.f32 %v2016_v48, %v4063_v28  ;;  %v2018_v17 = vpop.f32.mrb[117].mxu1 }
 0x1fe   : > { %v1906_v2 = vadd.f32 %v1905_v61, %v4070_v38  ;;  %v1907_v34 = vpop.f32.mrb[118].mxu0  ;;  %v2019_v35 = vadd.f32 %v2018_v17, %v4078_v50  ;;  %v2020_v9 = vpop.f32.mrb[118].mxu1 }
 0x1ff   : > { %v2217_v10 = vmax.f32 %v1904_v63, 0.0  ;;  %v1908_v12 = vadd.f32 %v1907_v34, %v4058_v5  ;;  %v1909_v13 = vpop.f32.mrb[119].mxu0  ;;  %v2219_v59 = vmax.f32 %v2017_v1, 0.0  ;;  %v2021_v19 = vadd.f32 %v2020_v9, %v4063_v28  ;;  %v2022_v21 = vpop.f32.mrb[119].mxu1 }
 0x200   : > { %v2218_v62 = vmax.f32 %v1906_v2, 0.0  ;;  %v1910_v20 = vadd.f32 %v1909_v13, %v4070_v38  ;;  %v2220_v36 = vmax.f32 %v2019_v35, 0.0  ;;  %v2023_v30 = vadd.f32 %v2022_v21, %v4078_v50 }
 0x201   : > { %v2564_v22 = vadd.f32 %v2563_v54, %v2217_v10  ;;  %v2233_v4 = vmax.f32 %v1908_v12, 0.0  ;;  %v2606_v31 = vadd.f32 %v2605_v56, %v2219_v59  ;;  %v2235_v16 = vmax.f32 %v2021_v19, 0.0 }
 0x202   : > { %v2585_v26 = vadd.f32 %v2584_v57, %v2218_v62  ;;  %v2234_v32 = vmax.f32 %v1910_v20, 0.0  ;;  %v2627_v39 = vadd.f32 %v2626_v60, %v2220_v36  ;;  %v2236_v37 = vmax.f32 %v2023_v30, 0.0 }
 0x203   : > { %v2565_v15 = vadd.f32 %v2564_v22, %v2233_v4  ;;  %v2607_v41 = vadd.f32 %v2606_v31, %v2235_v16 }
 0x204   : > { %v2586_v23 = vadd.f32 %v2585_v26, %v2234_v32  ;;  %v1913_v43 = vpop.f32.mrb[120].mxu0  ;;  %v2628_v40 = vadd.f32 %v2627_v39, %v2236_v37  ;;  %v2026_v46 = vpop.f32.mrb[120].mxu1 }
 0x205   : > { %v1914_v45 = vadd.f32 %v1913_v43, %v4058_v5  ;;  %v1915_v14 = vpop.f32.mrb[121].mxu0  ;;  %v2027_v47 = vadd.f32 %v2026_v46, %v4063_v28  ;;  %v2028_v11 = vpop.f32.mrb[121].mxu1 }
 0x206   : > { %v1916_v3 = vadd.f32 %v1915_v14, %v4070_v38  ;;  %v1917_v29 = vpop.f32.mrb[122].mxu0  ;;  %v2029_v24 = vadd.f32 %v2028_v11, %v4078_v50  ;;  %v2030_v6 = vpop.f32.mrb[122].mxu1 }
 0x207   : > { %v2249_v49 = vmax.f32 %v1914_v45, 0.0  ;;  %v1918_v58 = vadd.f32 %v1917_v29, %v4058_v5  ;;  %v1919_v51 = vpop.f32.mrb[123].mxu0  ;;  %v2251_v8 = vmax.f32 %v2027_v47, 0.0  ;;  %v2031_v52 = vadd.f32 %v2030_v6, %v4063_v28  ;;  %v2032_v18 = vpop.f32.mrb[123].mxu1 }
 0x208   : > { %v2250_v42 = vmax.f32 %v1916_v3, 0.0  ;;  %v1920_v27 = vadd.f32 %v1919_v51, %v4070_v38  ;;  %v2252_v54 = vmax.f32 %v2029_v24, 0.0  ;;  %v2033_v56 = vadd.f32 %v2032_v18, %v4078_v50 }
 0x209   : > { %v2566_v53 = vadd.f32 %v2565_v15, %v2249_v49  ;;  %v2265_v55 = vmax.f32 %v1918_v58, 0.0  ;;  %v2608_v57 = vadd.f32 %v2607_v41, %v2251_v8  ;;  %v2267_v60 = vmax.f32 %v2031_v52, 0.0 }
 0x20a   : > { %v2587_v33 = vadd.f32 %v2586_v23, %v2250_v42  ;;  %v2266_v63 = vmax.f32 %v1920_v27, 0.0  ;;  %v2629_v48 = vadd.f32 %v2628_v40, %v2252_v54  ;;  %v2268_v1 = vmax.f32 %v2033_v56, 0.0 }
 0x20b   : > { %v2567_v61 = vadd.f32 %v2566_v53, %v2265_v55  ;;  %v2609_v2 = vadd.f32 %v2608_v57, %v2267_v60 }
 0x20c   : > { %v2588_v17 = vadd.f32 %v2587_v33, %v2266_v63  ;;  %v1923_v34 = vpop.f32.mrb[124].mxu0  ;;  %v2630_v10 = vadd.f32 %v2629_v48, %v2268_v1  ;;  %v2036_v12 = vpop.f32.mrb[124].mxu1 }
 0x20d   : > { %v1924_v35 = vadd.f32 %v1923_v34, %v4058_v5  ;;  %v1925_v9 = vpop.f32.mrb[125].mxu0  ;;  %v2037_v13 = vadd.f32 %v2036_v12, %v4063_v28  ;;  %v2038_v62 = vpop.f32.mrb[125].mxu1 }
 0x20e   : > { %v1926_v59 = vadd.f32 %v1925_v9, %v4070_v38  ;;  %v1927_v19 = vpop.f32.mrb[126].mxu0  ;;  %v2039_v21 = vadd.f32 %v2038_v62, %v4078_v50  ;;  %v2040_v36 = vpop.f32.mrb[126].mxu1  ;;  %v2302_v9 = vld [vmem:[#allocation2 + $0x8] sm:$0xff]  ;;  %v2765_v62 = vld [vmem:[#allocation2] sm:$0xff] (!%p4023_p12) }
 0x20f   : > { %v2281_v20 = vmax.f32 %v1924_v35, 0.0  ;;  %v1928_v22 = vadd.f32 %v1927_v19, %v4058_v5  ;;  %v1929_v4 = vpop.f32.mrb[127].mxu0  ;;  %v2283_v30 = vmax.f32 %v2037_v13, 0.0  ;;  %v2041_v26 = vadd.f32 %v2040_v36, %v4063_v28  ;;  %v2042_v32 = vpop.f32.mrb[127].mxu1 }
 0x210   : > { %v2282_v31 = vmax.f32 %v1926_v59, 0.0  ;;  %v1930_v16 = vadd.f32 %v1929_v4, %v4070_v38  ;;  %v2284_v15 = vmax.f32 %v2039_v21, 0.0  ;;  %v2043_v41 = vadd.f32 %v2042_v32, %v4078_v50 }
 0x211   : > { %v2568_v39 = vadd.f32 %v2567_v61, %v2281_v20  ;;  %v2297_v37 = vmax.f32 %v1928_v22, 0.0  ;;  %v2610_v23 = vadd.f32 %v2609_v2, %v2283_v30  ;;  %v2299_v40 = vmax.f32 %v2041_v26, 0.0 }
 0x212   : > { %v2589_v43 = vadd.f32 %v2588_v17, %v2282_v31  ;;  %v2298_v45 = vmax.f32 %v1930_v16, 0.0  ;;  %v2631_v46 = vadd.f32 %v2630_v10, %v2284_v15  ;;  %v2300_v14 = vmax.f32 %v2043_v41, 0.0 }
 0x213   : > { %v2569_v5 = vadd.f32 %v2568_v39, %v2297_v37  ;;  %v2611_v47 = vadd.f32 %v2610_v23, %v2299_v40  ;;  %v2744_v35 = vrot.slane %v2736_v25, %v3879_v44  ;;  %v2767_v20 = vmul.f32 (!%p4023_p12), 0.00390625, %v2765_v62 }
 0x214   : > { %v2590_v3 = vadd.f32 %v2589_v43, %v2298_v45  ;;  %v2632_v29 = vadd.f32 %v2631_v46, %v2300_v14 }
 0x215   : > { %v2570_v11 = vrot.slane %v2569_v5, 4  ;;  %v2612_v28 = vrot.slane %v2611_v47, 4  ;;  %2769 = vst [vmem:[%s3215_s4] sm:$0xff] (!%p4023_p12), %v2767_v20 }
 0x216   : > { %v2591_v49 = vrot.slane %v2590_v3, 4  ;;  %v2633_v24 = vrot.slane %v2632_v29, 4 }
 0x217   : > { %v2571_v38 = vadd.f32 %v2570_v11, %v2569_v5  ;;  %v2613_v58 = vadd.f32 %v2612_v28, %v2611_v47 }
 0x218   : > { %v2592_v6 = vadd.f32 %v2591_v49, %v2590_v3  ;;  %v2634_v8 = vadd.f32 %v2633_v24, %v2632_v29 }
 0x219   : > { %v2572_v51 = vrot.slane %v2571_v38, 2  ;;  %v2614_v50 = vrot.slane %v2613_v58, 2 }
 0x21a   : > { %v2593_v42 = vrot.slane %v2592_v6, 2  ;;  %v2635_v27 = vrot.slane %v2634_v8, 2 }
 0x21b   : > { %v2573_v52 = vadd.f32 %v2572_v51, %v2571_v38  ;;  %v2615_v18 = vadd.f32 %v2614_v50, %v2613_v58 }
 0x21c   : > { %v2594_v53 = vadd.f32 %v2593_v42, %v2592_v6  ;;  %v2636_v55 = vadd.f32 %v2635_v27, %v2634_v8 }
 0x21d   : > { %v2574_v54 = vrot.slane %v2573_v52, 1  ;;  %v2616_v56 = vrot.slane %v2615_v18, 1 }
 0x21e   : > { %v2595_v57 = vrot.slane %v2594_v53, 1  ;;  %v2637_v60 = vrot.slane %v2636_v55, 1 }
 0x21f   : > { %v2575_v33 = vadd.f32 %v2574_v54, %v2573_v52  ;;  %v2617_v63 = vadd.f32 %v2616_v56, %v2615_v18 }
 0x220   : > { %v2596_v48 = vadd.f32 %v2595_v57, %v2594_v53  ;;  %v2638_v61 = vadd.f32 %v2637_v60, %v2636_v55 }
 0x222   : > { %v2706_v1 = vcombine.low %v2575_v33, %v2596_v48  ;;  %v2707_v2 = vcombine.low %v2617_v63, %v2638_v61 }
 0x224   : > { %v2728_v17 = vrot.slane %v2706_v1, %v3879_v44  ;;  %v2735_v34 = vrot.slane %v2707_v2, %v3879_v44 }
 0x226   : > { %v2737_v10 = vcombine.low %v2728_v17, %v2735_v34 }
 0x228   : > { %v2751_v12 = vrot.slane %v2737_v10, %v3879_v44  ;;  %2764 = sbr.rel (%p4023_p12) target bundleno = 569 (0x239), region = 40 }
 0x22a   : > { %v2752_v13 = vcombine.low %v2744_v35, %v2751_v12 }
 0x22c   : > { %v2756_v59 = vadd.f32 %v2752_v13, %v2302_v9 }
 0x22e   : > { %2758 = vst [vmem:[#allocation2 + $0x8] sm:$0xff] %v2756_v59 }
 0x235   : > { %v2766_v19 = vld [vmem:[#allocation2 + $0x8] sm:$0xff] }
 0x236   : > { %v2768_v21 = vmul.f32 0.00390625, %v2766_v19 }
 0x238   : > { %2770 = vst [vmem:[%s3215_s4 + $0x8] sm:$0xff] %v2768_v21 }
 0x239 PF: > { %p2771_p13 = scmp.gt.s32.totalorder %s3118_s13, 0 }
 0x23b   : > { %p2772_p0 = pnand %p2771_p13, %p2759_p10 }
 0x23c   : > { %v2776_v44 = vld [vmem:[%s3215_s4] sm:$0xff] (!%p2772_p0) }
 0x23d   : > { %2775 = sbr.rel (%p2772_p0) target bundleno = 582 (0x246), region = 44  ;;  %v2778_v0 = vld [vmem:[#allocation2] sm:$0xff] (!%p2772_p0) }
 0x23e   : > { %v2780_v7 = vmul.f32 (!%p2772_p0), 0.00390625, %v2778_v0 }
 0x23f   : > { %v2777_v25 = vld [vmem:[%s3215_s4 + $0x8] sm:$0xff] (!%p2772_p0) }
 0x240   : > { %v2779_v22 = vld [vmem:[#allocation2 + $0x8] sm:$0xff] (!%p2772_p0)  ;;  %v2782_v4 = vmax.f32 (!%p2772_p0), %v2776_v44, %v2780_v7 }
 0x241   : > { %v2781_v36 = vmul.f32 (!%p2772_p0), 0.00390625, %v2779_v22 }
 0x242   : > { %2784 = vst [vmem:[%s3215_s4] sm:$0xff] (!%p2772_p0), %v2782_v4 }
 0x243   : > { %v2783_v30 = vmax.f32 (!%p2772_p0), %v2777_v25, %v2781_v36 }
 0x245   : > { %2785 = vst [vmem:[%s3215_s4 + $0x8] sm:$0xff] %v2783_v30 }
 0x246 PF: > { %s13_s18 = sadd.s32 1, %s3138_s18   ;;  %s4196_s12 = smov %s3126_s15 }
 0x247   : > { %p10_p1 = scmp.ge.s32.totalorder %s13_s18, 18   ;;  %s4197_s13 = smov %s3130_s16 }
 0x248   : > { %s4198_s14 = smov %s3134_s17  ;;  %s4199_s15 = smov %s4203_s19 }
 0x249   : > { %s4200_s16 = smov %s4207_s20  ;;  %s4201_s17 = smov %s4211_s21 }
 0x24a   :  { %12 = sbr.rel (!%p10_p1) target bundleno = 4 (0x4), region = 74 }

// kernel: fused_resnext_temppool_forward.3
= control target key start
LH: loop header
LB: loop body
LE: loop exit
PB: predicated region body
PF: predicated region fallthrough
CT: control target
= control target key end

     0   :  { %s7327_s1 = inlined_call_operand.vmem [shape: bf16[2048,512], index: 1, kind: input, shape index: {}]   ;;  %s7328_s0 = inlined_call_operand.vmem [shape: f32[8,2048], index: 0, kind: input, shape index: {}]   ;;  %s7329_s3 = inlined_call_operand.vmem [shape: bf16[512,128], index: 3, kind: input, shape index: {}]   ;;  %s7330_s2 = inlined_call_operand.vmem [shape: f32[1,512], index: 2, kind: input, shape index: {}]   ;;  %s7331_s4 = inlined_call_operand.vmem [shape: f32[1,128], index: 4, kind: input, shape index: {}]   ;;  %s7332_s5 = inlined_call_operand.vmem [shape: f32[8,128], index: 5, kind: output, shape index: {}]  }
   0x1   :  { %v4808_v0 = vld [vmem:[%s7327_s1 + $0x4] ss:$16 sps:$4 sm:$0xff]   ;;  %v4810_v1 = vld [vmem:[%s7327_s1 + $0xc] ss:$16 sps:$4 sm:$0xff]   ;;  %v4812_v2 = vld [vmem:[%s7327_s1] ss:$16 sps:$4 sm:$0xff]  }
   0x2   :  { %3147 = vmatprep.subr.bf16.mxu0 %v4808_v0  ;;  %v4813_v3 = vld [vmem:[%s7327_s1 + $0x8] ss:$16 sps:$4 sm:$0xff]   ;;  %3475 = vmatprep.subr.bf16.mxu1 %v4810_v1  ;;  %v4814_v4 = vld [vmem:[%s7327_s1 + $0x24] ss:$16 sps:$4 sm:$0xff]   ;;  %v4816_v5 = vld [vmem:[%s7327_s1 + $0x2c] ss:$16 sps:$4 sm:$0xff]  }
   0x3   :  { %3148 = vmatpush1.bf16.msra.mxu0 %v4812_v2  ;;  %3476 = vmatpush1.bf16.msra.mxu1 %v4813_v3  ;;  %v4818_v6 = vld [vmem:[%s7327_s1 + $0x20] ss:$16 sps:$4 sm:$0xff]   ;;  %v4819_v7 = vld [vmem:[%s7327_s1 + $0x28] ss:$16 sps:$4 sm:$0xff]   ;;  %v4820_v8 = vld [vmem:[%s7327_s1 + $0x44] ss:$16 sps:$4 sm:$0xff]  }
   0x4   :  { %3149 = vmatprep.subr.bf16.mxu0 %v4814_v4  ;;  %3477 = vmatprep.subr.bf16.mxu1 %v4816_v5  ;;  %v4822_v9 = vld [vmem:[%s7327_s1 + $0x4c] ss:$16 sps:$4 sm:$0xff]   ;;  %v4824_v10 = vld [vmem:[%s7327_s1 + $0x40] ss:$16 sps:$4 sm:$0xff]   ;;  %v4825_v11 = vld [vmem:[%s7327_s1 + $0x48] ss:$16 sps:$4 sm:$0xff]  }
   0x5   :  { %v4826_v12 = vld [vmem:[%s7327_s1 + $0x64] ss:$16 sps:$4 sm:$0xff]   ;;  %v4828_v13 = vld [vmem:[%s7327_s1 + $0x6c] ss:$16 sps:$4 sm:$0xff]   ;;  %v4830_v14 = vld [vmem:[%s7327_s1 + $0x60] ss:$16 sps:$4 sm:$0xff]  }
   0x6   :  { %v4831_v15 = vld [vmem:[%s7327_s1 + $0x68] ss:$16 sps:$4 sm:$0xff]   ;;  %v4832_v16 = vld [vmem:[%s7327_s1 + $0x84] ss:$16 sps:$4 sm:$0xff]   ;;  %v4834_v17 = vld [vmem:[%s7327_s1 + $0x8c] ss:$16 sps:$4 sm:$0xff]  }
   0x7   :  { %3150 = vmatpush1.bf16.msra.mxu0 %v4818_v6  ;;  %3478 = vmatpush1.bf16.msra.mxu1 %v4819_v7  ;;  %v4836_v18 = vld [vmem:[%s7327_s1 + $0x80] ss:$16 sps:$4 sm:$0xff]   ;;  %v4837_v19 = vld [vmem:[%s7327_s1 + $0x88] ss:$16 sps:$4 sm:$0xff]   ;;  %v4838_v20 = vld [vmem:[%s7327_s1 + $0xa4] ss:$16 sps:$4 sm:$0xff]  }
   0x8   :  { %3151 = vmatprep.subr.bf16.mxu0 %v4820_v8  ;;  %3479 = vmatprep.subr.bf16.mxu1 %v4822_v9  ;;  %v4840_v21 = vld [vmem:[%s7327_s1 + $0xac] ss:$16 sps:$4 sm:$0xff]   ;;  %v4842_v22 = vld [vmem:[%s7327_s1 + $0xa0] ss:$16 sps:$4 sm:$0xff]   ;;  %v4843_v23 = vld [vmem:[%s7327_s1 + $0xa8] ss:$16 sps:$4 sm:$0xff]  }
   0x9   :  { %v4844_v24 = vld [vmem:[%s7327_s1 + $0xc4] ss:$16 sps:$4 sm:$0xff]   ;;  %v4846_v25 = vld [vmem:[%s7327_s1 + $0xcc] ss:$16 sps:$4 sm:$0xff]   ;;  %v4848_v26 = vld [vmem:[%s7327_s1 + $0xc0] ss:$16 sps:$4 sm:$0xff]  }
   0xa   :  { %v4849_v27 = vld [vmem:[%s7327_s1 + $0xc8] ss:$16 sps:$4 sm:$0xff]   ;;  %v4850_v28 = vld [vmem:[%s7327_s1 + $0xe4] ss:$16 sps:$4 sm:$0xff]   ;;  %v4852_v29 = vld [vmem:[%s7327_s1 + $0xec] ss:$16 sps:$4 sm:$0xff]  }
   0xb   :  { %3152 = vmatpush1.bf16.msra.mxu0 %v4824_v10  ;;  %3480 = vmatpush1.bf16.msra.mxu1 %v4825_v11  ;;  %v4854_v30 = vld [vmem:[%s7327_s1 + $0xe0] ss:$16 sps:$4 sm:$0xff]   ;;  %v4855_v31 = vld [vmem:[%s7327_s1 + $0xe8] ss:$16 sps:$4 sm:$0xff]   ;;  %v4856_v32 = vld [vmem:[%s7327_s1 + $0x104] ss:$16 sps:$4 sm:$0xff]  }
   0xc   :  { %3153 = vmatprep.subr.bf16.mxu0 %v4826_v12  ;;  %3481 = vmatprep.subr.bf16.mxu1 %v4828_v13  ;;  %v4858_v33 = vld [vmem:[%s7327_s1 + $0x10c] ss:$16 sps:$4 sm:$0xff]   ;;  %v4860_v34 = vld [vmem:[%s7327_s1 + $0x100] ss:$16 sps:$4 sm:$0xff]   ;;  %v4861_v35 = vld [vmem:[%s7327_s1 + $0x108] ss:$16 sps:$4 sm:$0xff]  }
   0xd   :  { %v4862_v36 = vld [vmem:[%s7327_s1 + $0x124] ss:$16 sps:$4 sm:$0xff]   ;;  %v4864_v37 = vld [vmem:[%s7327_s1 + $0x12c] ss:$16 sps:$4 sm:$0xff]   ;;  %v4866_v38 = vld [vmem:[%s7327_s1 + $0x120] ss:$16 sps:$4 sm:$0xff]  }
   0xe   :  { %v4867_v39 = vld [vmem:[%s7327_s1 + $0x128] ss:$16 sps:$4 sm:$0xff]   ;;  %v4868_v40 = vld [vmem:[%s7327_s1 + $0x144] ss:$16 sps:$4 sm:$0xff]   ;;  %v4870_v41 = vld [vmem:[%s7327_s1 + $0x14c] ss:$16 sps:$4 sm:$0xff]  }
   0xf   :  { %3154 = vmatpush1.bf16.msra.mxu0 %v4830_v14  ;;  %3482 = vmatpush1.bf16.msra.mxu1 %v4831_v15  ;;  %v4872_v42 = vld [vmem:[%s7327_s1 + $0x140] ss:$16 sps:$4 sm:$0xff]   ;;  %v4873_v43 = vld [vmem:[%s7327_s1 + $0x148] ss:$16 sps:$4 sm:$0xff]   ;;  %v4874_v44 = vld [vmem:[%s7327_s1 + $0x164] ss:$16 sps:$4 sm:$0xff]  }
  0x10   :  { %3155 = vmatprep.subr.bf16.mxu0 %v4832_v16  ;;  %3483 = vmatprep.subr.bf16.mxu1 %v4834_v17  ;;  %v4876_v45 = vld [vmem:[%s7327_s1 + $0x16c] ss:$16 sps:$4 sm:$0xff]   ;;  %v4878_v47 = vld [vmem:[%s7327_s1 + $0x160] ss:$16 sps:$4 sm:$0xff]   ;;  %v4879_v49 = vld [vmem:[%s7327_s1 + $0x168] ss:$16 sps:$4 sm:$0xff]  }
  0x11   :  { %v22_v46 = vld [vmem:[%s7328_s0 + $0x8] sm:$0xff]  ;;  %v4880_v50 = vld [vmem:[%s7327_s1 + $0x184] ss:$16 sps:$4 sm:$0xff]   ;;  %v4884_v52 = vld [vmem:[%s7327_s1 + $0x180] ss:$16 sps:$4 sm:$0xff]  }
  0x12   :  { %v38_v48 = vpack.c.bf16 %v22_v46, %v22_v46  ;;  %v4882_v51 = vld [vmem:[%s7327_s1 + $0x18c] ss:$16 sps:$4 sm:$0xff]   ;;  %v4885_v53 = vld [vmem:[%s7327_s1 + $0x188] ss:$16 sps:$4 sm:$0xff]   ;;  %v4886_v54 = vld [vmem:[%s7327_s1 + $0x1a4] ss:$16 sps:$4 sm:$0xff]  }
  0x13   :  { %3156 = vmatpush1.bf16.msra.mxu0 %v4836_v18  ;;  %3484 = vmatpush1.bf16.msra.mxu1 %v4837_v19  ;;  %v4888_v55 = vld [vmem:[%s7327_s1 + $0x1ac] ss:$16 sps:$4 sm:$0xff]   ;;  %v4890_v56 = vld [vmem:[%s7327_s1 + $0x1a0] ss:$16 sps:$4 sm:$0xff]   ;;  %v4891_v57 = vld [vmem:[%s7327_s1 + $0x1a8] ss:$16 sps:$4 sm:$0xff]  }
  0x14   :  { %3157 = vmatprep.subr.bf16.mxu0 %v4838_v20  ;;  %3485 = vmatprep.subr.bf16.mxu1 %v4840_v21  ;;  %v4892_v58 = vld [vmem:[%s7327_s1 + $0x1c4] ss:$16 sps:$4 sm:$0xff]   ;;  %v4894_v59 = vld [vmem:[%s7327_s1 + $0x1cc] ss:$16 sps:$4 sm:$0xff]   ;;  %v4896_v60 = vld [vmem:[%s7327_s1 + $0x1c0] ss:$16 sps:$4 sm:$0xff]  }
  0x15   :  { %3179 = vmatprep.mubr.bf16.mxu0 %v38_v48  ;;  %3507 = vmatprep.mubr.bf16.mxu1 %v38_v48  ;;  %v4897_v61 = vld [vmem:[%s7327_s1 + $0x1c8] ss:$16 sps:$4 sm:$0xff]   ;;  %v4898_v62 = vld [vmem:[%s7327_s1 + $0x1e4] ss:$16 sps:$4 sm:$0xff]   ;;  %v4900_v63 = vld [vmem:[%s7327_s1 + $0x1ec] ss:$16 sps:$4 sm:$0xff]  }
  0x16   :  { %v4902_v0 = vld [vmem:[%s7327_s1 + $0x1e0] ss:$16 sps:$4 sm:$0xff]   ;;  %v4903_v1 = vld [vmem:[%s7327_s1 + $0x1e8] ss:$16 sps:$4 sm:$0xff]   ;;  %v4906_v3 = vld [vmem:[%s7327_s1 + $0x204] ss:$16 sps:$4 sm:$0xff]  }
  0x17   :  { %3158 = vmatpush1.bf16.msra.mxu0 %v4842_v22  ;;  %3486 = vmatpush1.bf16.msra.mxu1 %v4843_v23  ;;  %v21_v2 = vld [vmem:[%s7328_s0] sm:$0xff]  ;;  %v4909_v4 = vld [vmem:[%s7327_s1 + $0x20c] ss:$16 sps:$4 sm:$0xff]   ;;  %v4907_v7 = vld [vmem:[%s7327_s1 + $0x208] ss:$16 sps:$4 sm:$0xff]  }
  0x18   :  { %3159 = vmatprep.subr.bf16.mxu0 %v4844_v24  ;;  %3487 = vmatprep.subr.bf16.mxu1 %v4846_v25  ;;  %v37_v5 = vpack.c.bf16 %v21_v2, %v21_v2  ;;  %v4904_v6 = vld [vmem:[%s7327_s1 + $0x200] ss:$16 sps:$4 sm:$0xff]   ;;  %v4912_v8 = vld [vmem:[%s7327_s1 + $0x224] ss:$16 sps:$4 sm:$0xff]   ;;  %v4915_v9 = vld [vmem:[%s7327_s1 + $0x22c] ss:$16 sps:$4 sm:$0xff]  }
  0x19   :  { %v4910_v10 = vld [vmem:[%s7327_s1 + $0x220] ss:$16 sps:$4 sm:$0xff]   ;;  %v4913_v11 = vld [vmem:[%s7327_s1 + $0x228] ss:$16 sps:$4 sm:$0xff]   ;;  %v4918_v12 = vld [vmem:[%s7327_s1 + $0x244] ss:$16 sps:$4 sm:$0xff]  }
  0x1a   :  { %v4921_v13 = vld [vmem:[%s7327_s1 + $0x24c] ss:$16 sps:$4 sm:$0xff]   ;;  %v4916_v14 = vld [vmem:[%s7327_s1 + $0x240] ss:$16 sps:$4 sm:$0xff]   ;;  %v4919_v15 = vld [vmem:[%s7327_s1 + $0x248] ss:$16 sps:$4 sm:$0xff]  }
  0x1b   :  { %3160 = vmatpush1.bf16.msra.mxu0 %v4848_v26  ;;  %3488 = vmatpush1.bf16.msra.mxu1 %v4849_v27  ;;  %v4924_v16 = vld [vmem:[%s7327_s1 + $0x264] ss:$16 sps:$4 sm:$0xff]   ;;  %v4927_v17 = vld [vmem:[%s7327_s1 + $0x26c] ss:$16 sps:$4 sm:$0xff]   ;;  %v4922_v18 = vld [vmem:[%s7327_s1 + $0x260] ss:$16 sps:$4 sm:$0xff]  }
  0x1c   :  { %3161 = vmatprep.subr.bf16.mxu0 %v4850_v28  ;;  %3489 = vmatprep.subr.bf16.mxu1 %v4852_v29  ;;  %v4925_v19 = vld [vmem:[%s7327_s1 + $0x268] ss:$16 sps:$4 sm:$0xff]   ;;  %v4930_v20 = vld [vmem:[%s7327_s1 + $0x284] ss:$16 sps:$4 sm:$0xff]   ;;  %v4933_v21 = vld [vmem:[%s7327_s1 + $0x28c] ss:$16 sps:$4 sm:$0xff]  }
  0x1d   :  { %v4928_v22 = vld [vmem:[%s7327_s1 + $0x280] ss:$16 sps:$4 sm:$0xff]   ;;  %v4931_v23 = vld [vmem:[%s7327_s1 + $0x288] ss:$16 sps:$4 sm:$0xff]   ;;  %v4936_v24 = vld [vmem:[%s7327_s1 + $0x2a4] ss:$16 sps:$4 sm:$0xff]  }
  0x1e   :  { %v4939_v25 = vld [vmem:[%s7327_s1 + $0x2ac] ss:$16 sps:$4 sm:$0xff]   ;;  %v4934_v26 = vld [vmem:[%s7327_s1 + $0x2a0] ss:$16 sps:$4 sm:$0xff]   ;;  %v4937_v27 = vld [vmem:[%s7327_s1 + $0x2a8] ss:$16 sps:$4 sm:$0xff]  }
  0x1f   :  { %3162 = vmatpush1.bf16.msra.mxu0 %v4854_v30  ;;  %3490 = vmatpush1.bf16.msra.mxu1 %v4855_v31  ;;  %v4942_v28 = vld [vmem:[%s7327_s1 + $0x2c4] ss:$16 sps:$4 sm:$0xff]   ;;  %v4945_v29 = vld [vmem:[%s7327_s1 + $0x2cc] ss:$16 sps:$4 sm:$0xff]   ;;  %v4940_v31 = vld [vmem:[%s7327_s1 + $0x2c0] ss:$16 sps:$4 sm:$0xff]  }
  0x20   :  { %3163 = vmatprep.subr.bf16.mxu0 %v4856_v32  ;;  %3491 = vmatprep.subr.bf16.mxu1 %v4858_v33  ;;  %v24_v30 = vld [vmem:[%s7328_s0 + $0x18] sm:$0xff]  ;;  %v4966_v46 = vld [vmem:[%s7327_s1 + $0x344] ss:$16 sps:$4 sm:$0xff]   ;;  %v4964_v48 = vld [vmem:[%s7327_s1 + $0x340] ss:$16 sps:$4 sm:$0xff]  }
  0x21   :  { %v40_v32 = vpack.c.bf16 %v24_v30, %v24_v30  ;;  %v4943_v33 = vld [vmem:[%s7327_s1 + $0x2c8] ss:$16 sps:$4 sm:$0xff]   ;;  %v4996_v2 = vld [vmem:[%s7327_s1 + $0x3e4] ss:$16 sps:$4 sm:$0xff]  }
  0x22   :  { %v5032_v30 = vld [vmem:[%s7327_s1 + $0x4a4] ss:$16 sps:$4 sm:$0xff]  }
  0x23   :  { %3164 = vmatpush1.bf16.msra.mxu0 %v4860_v34  ;;  %3492 = vmatpush1.bf16.msra.mxu1 %v4861_v35  ;;  %v4948_v34 = vld [vmem:[%s7327_s1 + $0x2e4] ss:$16 sps:$4 sm:$0xff]   ;;  %v4951_v35 = vld [vmem:[%s7327_s1 + $0x2ec] ss:$16 sps:$4 sm:$0xff]  }
  0x24   :  { %3165 = vmatprep.subr.bf16.mxu0 %v4862_v36  ;;  %3493 = vmatprep.subr.bf16.mxu1 %v4864_v37  ;;  %v4946_v36 = vld [vmem:[%s7327_s1 + $0x2e0] ss:$16 sps:$4 sm:$0xff]   ;;  %v4949_v37 = vld [vmem:[%s7327_s1 + $0x2e8] ss:$16 sps:$4 sm:$0xff]  }
  0x27   :  { %3166 = vmatpush1.bf16.msra.mxu0 %v4866_v38  ;;  %3494 = vmatpush1.bf16.msra.mxu1 %v4867_v39  ;;  %v4954_v38 = vld [vmem:[%s7327_s1 + $0x304] ss:$16 sps:$4 sm:$0xff]   ;;  %v4957_v39 = vld [vmem:[%s7327_s1 + $0x30c] ss:$16 sps:$4 sm:$0xff]  }
  0x28   :  { %3167 = vmatprep.subr.bf16.mxu0 %v4868_v40  ;;  %3495 = vmatprep.subr.bf16.mxu1 %v4870_v41  ;;  %v4952_v40 = vld [vmem:[%s7327_s1 + $0x300] ss:$16 sps:$4 sm:$0xff]   ;;  %v4955_v41 = vld [vmem:[%s7327_s1 + $0x308] ss:$16 sps:$4 sm:$0xff]  }
  0x2b   :  { %3168 = vmatpush1.bf16.msra.mxu0 %v4872_v42  ;;  %3496 = vmatpush1.bf16.msra.mxu1 %v4873_v43  ;;  %v4960_v42 = vld [vmem:[%s7327_s1 + $0x324] ss:$16 sps:$4 sm:$0xff]   ;;  %v4963_v43 = vld [vmem:[%s7327_s1 + $0x32c] ss:$16 sps:$4 sm:$0xff]  }
  0x2c   :  { %3169 = vmatprep.subr.bf16.mxu0 %v4874_v44  ;;  %3497 = vmatprep.subr.bf16.mxu1 %v4876_v45  ;;  %v4958_v44 = vld [vmem:[%s7327_s1 + $0x320] ss:$16 sps:$4 sm:$0xff]   ;;  %v4961_v45 = vld [vmem:[%s7327_s1 + $0x328] ss:$16 sps:$4 sm:$0xff]  }
  0x2f   :  { %3170 = vmatpush1.bf16.msra.mxu0 %v4878_v47  ;;  %3498 = vmatpush1.bf16.msra.mxu1 %v4879_v49  ;;  %v4969_v47 = vld [vmem:[%s7327_s1 + $0x34c] ss:$16 sps:$4 sm:$0xff]   ;;  %v4967_v49 = vld [vmem:[%s7327_s1 + $0x348] ss:$16 sps:$4 sm:$0xff]  }
  0x30   :  { %3171 = vmatprep.subr.bf16.mxu0 %v4880_v50  ;;  %3499 = vmatprep.subr.bf16.mxu1 %v4882_v51  ;;  %v4972_v50 = vld [vmem:[%s7327_s1 + $0x364] ss:$16 sps:$4 sm:$0xff]   ;;  %v4975_v51 = vld [vmem:[%s7327_s1 + $0x36c] ss:$16 sps:$4 sm:$0xff]  }
  0x33   :  { %3172 = vmatpush1.bf16.msra.mxu0 %v4884_v52  ;;  %3500 = vmatpush1.bf16.msra.mxu1 %v4885_v53  ;;  %v4970_v52 = vld [vmem:[%s7327_s1 + $0x360] ss:$16 sps:$4 sm:$0xff]   ;;  %v4973_v53 = vld [vmem:[%s7327_s1 + $0x368] ss:$16 sps:$4 sm:$0xff]  }
  0x34   :  { %3173 = vmatprep.subr.bf16.mxu0 %v4886_v54  ;;  %3501 = vmatprep.subr.bf16.mxu1 %v4888_v55  ;;  %v4978_v54 = vld [vmem:[%s7327_s1 + $0x384] ss:$16 sps:$4 sm:$0xff]   ;;  %v4981_v55 = vld [vmem:[%s7327_s1 + $0x38c] ss:$16 sps:$4 sm:$0xff]  }
  0x37   :  { %3174 = vmatpush1.bf16.msra.mxu0 %v4890_v56  ;;  %3502 = vmatpush1.bf16.msra.mxu1 %v4891_v57  ;;  %v4976_v56 = vld [vmem:[%s7327_s1 + $0x380] ss:$16 sps:$4 sm:$0xff]   ;;  %v4979_v57 = vld [vmem:[%s7327_s1 + $0x388] ss:$16 sps:$4 sm:$0xff]  }
  0x38   :  { %3175 = vmatprep.subr.bf16.mxu0 %v4892_v58  ;;  %3503 = vmatprep.subr.bf16.mxu1 %v4894_v59  ;;  %v4984_v58 = vld [vmem:[%s7327_s1 + $0x3a4] ss:$16 sps:$4 sm:$0xff]   ;;  %v4987_v59 = vld [vmem:[%s7327_s1 + $0x3ac] ss:$16 sps:$4 sm:$0xff]  }
  0x3b   :  { %3176 = vmatpush1.bf16.msra.mxu0 %v4896_v60  ;;  %3504 = vmatpush1.bf16.msra.mxu1 %v4897_v61  ;;  %v4982_v60 = vld [vmem:[%s7327_s1 + $0x3a0] ss:$16 sps:$4 sm:$0xff]   ;;  %v4985_v61 = vld [vmem:[%s7327_s1 + $0x3a8] ss:$16 sps:$4 sm:$0xff]  }
  0x3c   :  { %3177 = vmatprep.subr.bf16.mxu0 %v4898_v62  ;;  %3505 = vmatprep.subr.bf16.mxu1 %v4900_v63  ;;  %v4990_v62 = vld [vmem:[%s7327_s1 + $0x3c4] ss:$16 sps:$4 sm:$0xff]   ;;  %v4993_v63 = vld [vmem:[%s7327_s1 + $0x3cc] ss:$16 sps:$4 sm:$0xff]  }
  0x3f   :  { %3178 = vmatpush1.bf16.msra.mxu0 %v4902_v0  ;;  %3506 = vmatpush1.bf16.msra.mxu1 %v4903_v1  ;;  %v4988_v0 = vld [vmem:[%s7327_s1 + $0x3c0] ss:$16 sps:$4 sm:$0xff]   ;;  %v4991_v1 = vld [vmem:[%s7327_s1 + $0x3c8] ss:$16 sps:$4 sm:$0xff]  }
  0x40   :  { %3188 = vmatprep.subr.bf16.mxu0 %v4906_v3  ;;  %3516 = vmatprep.subr.bf16.mxu1 %v4909_v4  ;;  %v4999_v3 = vld [vmem:[%s7327_s1 + $0x3ec] ss:$16 sps:$4 sm:$0xff]   ;;  %v4994_v4 = vld [vmem:[%s7327_s1 + $0x3e0] ss:$16 sps:$4 sm:$0xff]  }
  0x42   :  { %3180 = vmatmul.mubr.bf16.vlgmr.msra.gmra.mrb[0].mxu0 %v37_v5  ;;  %3508 = vmatmul.mubr.bf16.vlgmr.msra.gmra.mrb[0].mxu1 %v37_v5  ;;  %v4997_v5 = vld [vmem:[%s7327_s1 + $0x3e8] ss:$16 sps:$4 sm:$0xff]  }
  0x43   :  { %3189 = vmatpush1.bf16.msra.mxu0 %v4904_v6  ;;  %3517 = vmatpush1.bf16.msra.mxu1 %v4907_v7  ;;  %v5002_v6 = vld [vmem:[%s7327_s1 + $0x404] ss:$16 sps:$4 sm:$0xff]  }
  0x44   :  { %3190 = vmatprep.subr.bf16.mxu0 %v4912_v8  ;;  %3518 = vmatprep.subr.bf16.mxu1 %v4915_v9  ;;  %v23_v7 = vld [vmem:[%s7328_s0 + $0x10] sm:$0xff]  ;;  %v5005_v8 = vld [vmem:[%s7327_s1 + $0x40c] ss:$16 sps:$4 sm:$0xff]  }
  0x45   :  { %3220 = vmatprep.mubr.bf16.mxu0 %v40_v32  ;;  %3548 = vmatprep.mubr.bf16.mxu1 %v40_v32  ;;  %v5000_v9 = vld [vmem:[%s7327_s1 + $0x400] ss:$16 sps:$4 sm:$0xff]  }
  0x46   :  { %v5030_v32 = vld [vmem:[%s7327_s1 + $0x4a0] ss:$16 sps:$4 sm:$0xff]  }
  0x47   :  { %3191 = vmatpush1.bf16.msra.mxu0 %v4910_v10  ;;  %3519 = vmatpush1.bf16.msra.mxu1 %v4913_v11  ;;  %v5003_v10 = vld [vmem:[%s7327_s1 + $0x408] ss:$16 sps:$4 sm:$0xff]   ;;  %v39_v11 = vpack.c.bf16 %v23_v7, %v23_v7  ;;  %v5095_v7 = vld [vmem:[%s7327_s1 + $0x5ec] ss:$16 sps:$4 sm:$0xff]  }
  0x48   :  { %3192 = vmatprep.subr.bf16.mxu0 %v4918_v12  ;;  %3520 = vmatprep.subr.bf16.mxu1 %v4921_v13  ;;  %v5008_v12 = vld [vmem:[%s7327_s1 + $0x424] ss:$16 sps:$4 sm:$0xff]   ;;  %v5011_v13 = vld [vmem:[%s7327_s1 + $0x42c] ss:$16 sps:$4 sm:$0xff]  }
  0x4b   :  { %3193 = vmatpush1.bf16.msra.mxu0 %v4916_v14  ;;  %3521 = vmatpush1.bf16.msra.mxu1 %v4919_v15  ;;  %v26_v14 = vld [vmem:[%s7328_s0 + $0x28] sm:$0xff] }
  0x4c   :  { %3194 = vmatprep.subr.bf16.mxu0 %v4924_v16  ;;  %3522 = vmatprep.subr.bf16.mxu1 %v4927_v17  ;;  %v42_v15 = vpack.c.bf16 %v26_v14, %v26_v14  ;;  %v5006_v16 = vld [vmem:[%s7327_s1 + $0x420] ss:$16 sps:$4 sm:$0xff]   ;;  %v5009_v17 = vld [vmem:[%s7327_s1 + $0x428] ss:$16 sps:$4 sm:$0xff]  }
  0x4d   :  { %v5099_v14 = vld [vmem:[%s7327_s1 + $0x608] ss:$16 sps:$4 sm:$0xff]  }
  0x4f   :  { %3195 = vmatpush1.bf16.msra.mxu0 %v4922_v18  ;;  %3523 = vmatpush1.bf16.msra.mxu1 %v4925_v19  ;;  %v5014_v18 = vld [vmem:[%s7327_s1 + $0x444] ss:$16 sps:$4 sm:$0xff]   ;;  %v5017_v19 = vld [vmem:[%s7327_s1 + $0x44c] ss:$16 sps:$4 sm:$0xff]  }
  0x50   :  { %3196 = vmatprep.subr.bf16.mxu0 %v4930_v20  ;;  %3524 = vmatprep.subr.bf16.mxu1 %v4933_v21  ;;  %v5012_v20 = vld [vmem:[%s7327_s1 + $0x440] ss:$16 sps:$4 sm:$0xff]   ;;  %v5015_v21 = vld [vmem:[%s7327_s1 + $0x448] ss:$16 sps:$4 sm:$0xff]  }
  0x53   :  { %3197 = vmatpush1.bf16.msra.mxu0 %v4928_v22  ;;  %3525 = vmatpush1.bf16.msra.mxu1 %v4931_v23  ;;  %v5020_v22 = vld [vmem:[%s7327_s1 + $0x464] ss:$16 sps:$4 sm:$0xff]   ;;  %v5023_v23 = vld [vmem:[%s7327_s1 + $0x46c] ss:$16 sps:$4 sm:$0xff]  }
  0x54   :  { %3198 = vmatprep.subr.bf16.mxu0 %v4936_v24  ;;  %3526 = vmatprep.subr.bf16.mxu1 %v4939_v25  ;;  %v5018_v24 = vld [vmem:[%s7327_s1 + $0x460] ss:$16 sps:$4 sm:$0xff]   ;;  %v5021_v25 = vld [vmem:[%s7327_s1 + $0x468] ss:$16 sps:$4 sm:$0xff]  }
  0x57   :  { %3199 = vmatpush1.bf16.msra.mxu0 %v4934_v26  ;;  %3527 = vmatpush1.bf16.msra.mxu1 %v4937_v27  ;;  %v5026_v26 = vld [vmem:[%s7327_s1 + $0x484] ss:$16 sps:$4 sm:$0xff]   ;;  %v5029_v27 = vld [vmem:[%s7327_s1 + $0x48c] ss:$16 sps:$4 sm:$0xff]  }
  0x58   :  { %3200 = vmatprep.subr.bf16.mxu0 %v4942_v28  ;;  %3528 = vmatprep.subr.bf16.mxu1 %v4945_v29  ;;  %v5024_v28 = vld [vmem:[%s7327_s1 + $0x480] ss:$16 sps:$4 sm:$0xff]   ;;  %v5027_v29 = vld [vmem:[%s7327_s1 + $0x488] ss:$16 sps:$4 sm:$0xff]  }
  0x5b   :  { %3201 = vmatpush1.bf16.msra.mxu0 %v4940_v31  ;;  %3529 = vmatpush1.bf16.msra.mxu1 %v4943_v33  ;;  %v5035_v31 = vld [vmem:[%s7327_s1 + $0x4ac] ss:$16 sps:$4 sm:$0xff]   ;;  %v5033_v33 = vld [vmem:[%s7327_s1 + $0x4a8] ss:$16 sps:$4 sm:$0xff]  }
  0x5c   :  { %3202 = vmatprep.subr.bf16.mxu0 %v4948_v34  ;;  %3530 = vmatprep.subr.bf16.mxu1 %v4951_v35  ;;  %v5038_v34 = vld [vmem:[%s7327_s1 + $0x4c4] ss:$16 sps:$4 sm:$0xff]   ;;  %v5041_v35 = vld [vmem:[%s7327_s1 + $0x4cc] ss:$16 sps:$4 sm:$0xff]  }
  0x5f   :  { %3203 = vmatpush1.bf16.msra.mxu0 %v4946_v36  ;;  %3531 = vmatpush1.bf16.msra.mxu1 %v4949_v37  ;;  %v5036_v36 = vld [vmem:[%s7327_s1 + $0x4c0] ss:$16 sps:$4 sm:$0xff]   ;;  %v5039_v37 = vld [vmem:[%s7327_s1 + $0x4c8] ss:$16 sps:$4 sm:$0xff]  }
  0x60   :  { %3204 = vmatprep.subr.bf16.mxu0 %v4954_v38  ;;  %3532 = vmatprep.subr.bf16.mxu1 %v4957_v39  ;;  %v5044_v38 = vld [vmem:[%s7327_s1 + $0x4e4] ss:$16 sps:$4 sm:$0xff]   ;;  %v5047_v39 = vld [vmem:[%s7327_s1 + $0x4ec] ss:$16 sps:$4 sm:$0xff]  }
  0x63   :  { %3205 = vmatpush1.bf16.msra.mxu0 %v4952_v40  ;;  %3533 = vmatpush1.bf16.msra.mxu1 %v4955_v41  ;;  %v5042_v40 = vld [vmem:[%s7327_s1 + $0x4e0] ss:$16 sps:$4 sm:$0xff]   ;;  %v5045_v41 = vld [vmem:[%s7327_s1 + $0x4e8] ss:$16 sps:$4 sm:$0xff]  }
  0x64   :  { %3206 = vmatprep.subr.bf16.mxu0 %v4960_v42  ;;  %3534 = vmatprep.subr.bf16.mxu1 %v4963_v43  ;;  %v5050_v42 = vld [vmem:[%s7327_s1 + $0x504] ss:$16 sps:$4 sm:$0xff]   ;;  %v5053_v43 = vld [vmem:[%s7327_s1 + $0x50c] ss:$16 sps:$4 sm:$0xff]  }
  0x67   :  { %3207 = vmatpush1.bf16.msra.mxu0 %v4958_v44  ;;  %3535 = vmatpush1.bf16.msra.mxu1 %v4961_v45  ;;  %v5048_v44 = vld [vmem:[%s7327_s1 + $0x500] ss:$16 sps:$4 sm:$0xff]   ;;  %v5051_v45 = vld [vmem:[%s7327_s1 + $0x508] ss:$16 sps:$4 sm:$0xff]  }
  0x68   :  { %3208 = vmatprep.subr.bf16.mxu0 %v4966_v46  ;;  %3536 = vmatprep.subr.bf16.mxu1 %v4969_v47  ;;  %v5056_v46 = vld [vmem:[%s7327_s1 + $0x524] ss:$16 sps:$4 sm:$0xff]   ;;  %v5059_v47 = vld [vmem:[%s7327_s1 + $0x52c] ss:$16 sps:$4 sm:$0xff]  }
  0x6b   :  { %3209 = vmatpush1.bf16.msra.mxu0 %v4964_v48  ;;  %3537 = vmatpush1.bf16.msra.mxu1 %v4967_v49  ;;  %v5054_v48 = vld [vmem:[%s7327_s1 + $0x520] ss:$16 sps:$4 sm:$0xff]   ;;  %v5057_v49 = vld [vmem:[%s7327_s1 + $0x528] ss:$16 sps:$4 sm:$0xff]  }
  0x6c   :  { %3210 = vmatprep.subr.bf16.mxu0 %v4972_v50  ;;  %3538 = vmatprep.subr.bf16.mxu1 %v4975_v51  ;;  %v5062_v50 = vld [vmem:[%s7327_s1 + $0x544] ss:$16 sps:$4 sm:$0xff]   ;;  %v5065_v51 = vld [vmem:[%s7327_s1 + $0x54c] ss:$16 sps:$4 sm:$0xff]  }
  0x6f   :  { %3211 = vmatpush1.bf16.msra.mxu0 %v4970_v52  ;;  %3539 = vmatpush1.bf16.msra.mxu1 %v4973_v53  ;;  %v5060_v52 = vld [vmem:[%s7327_s1 + $0x540] ss:$16 sps:$4 sm:$0xff]   ;;  %v5063_v53 = vld [vmem:[%s7327_s1 + $0x548] ss:$16 sps:$4 sm:$0xff]  }
  0x70   :  { %3212 = vmatprep.subr.bf16.mxu0 %v4978_v54  ;;  %3540 = vmatprep.subr.bf16.mxu1 %v4981_v55  ;;  %v5068_v54 = vld [vmem:[%s7327_s1 + $0x564] ss:$16 sps:$4 sm:$0xff]   ;;  %v5071_v55 = vld [vmem:[%s7327_s1 + $0x56c] ss:$16 sps:$4 sm:$0xff]  }
  0x73   :  { %3213 = vmatpush1.bf16.msra.mxu0 %v4976_v56  ;;  %3541 = vmatpush1.bf16.msra.mxu1 %v4979_v57  ;;  %v5066_v56 = vld [vmem:[%s7327_s1 + $0x560] ss:$16 sps:$4 sm:$0xff]   ;;  %v5069_v57 = vld [vmem:[%s7327_s1 + $0x568] ss:$16 sps:$4 sm:$0xff]  }
  0x74   :  { %3214 = vmatprep.subr.bf16.mxu0 %v4984_v58  ;;  %3542 = vmatprep.subr.bf16.mxu1 %v4987_v59  ;;  %v5074_v58 = vld [vmem:[%s7327_s1 + $0x584] ss:$16 sps:$4 sm:$0xff]   ;;  %v5077_v59 = vld [vmem:[%s7327_s1 + $0x58c] ss:$16 sps:$4 sm:$0xff]  }
  0x77   :  { %3215 = vmatpush1.bf16.msra.mxu0 %v4982_v60  ;;  %3543 = vmatpush1.bf16.msra.mxu1 %v4985_v61  ;;  %v5072_v60 = vld [vmem:[%s7327_s1 + $0x580] ss:$16 sps:$4 sm:$0xff]   ;;  %v5075_v61 = vld [vmem:[%s7327_s1 + $0x588] ss:$16 sps:$4 sm:$0xff]  }
  0x78   :  { %3216 = vmatprep.subr.bf16.mxu0 %v4990_v62  ;;  %3544 = vmatprep.subr.bf16.mxu1 %v4993_v63  ;;  %v5080_v62 = vld [vmem:[%s7327_s1 + $0x5a4] ss:$16 sps:$4 sm:$0xff]   ;;  %v5083_v63 = vld [vmem:[%s7327_s1 + $0x5ac] ss:$16 sps:$4 sm:$0xff]  }
  0x7b   :  { %3217 = vmatpush1.bf16.msra.mxu0 %v4988_v0  ;;  %3545 = vmatpush1.bf16.msra.mxu1 %v4991_v1  ;;  %v5078_v0 = vld [vmem:[%s7327_s1 + $0x5a0] ss:$16 sps:$4 sm:$0xff]   ;;  %v5081_v1 = vld [vmem:[%s7327_s1 + $0x5a8] ss:$16 sps:$4 sm:$0xff]  }
  0x7c   :  { %3218 = vmatprep.subr.bf16.mxu0 %v4996_v2  ;;  %3546 = vmatprep.subr.bf16.mxu1 %v4999_v3  ;;  %v5086_v2 = vld [vmem:[%s7327_s1 + $0x5c4] ss:$16 sps:$4 sm:$0xff]   ;;  %v5089_v3 = vld [vmem:[%s7327_s1 + $0x5cc] ss:$16 sps:$4 sm:$0xff]  }
  0x7f   :  { %3219 = vmatpush1.bf16.msra.mxu0 %v4994_v4  ;;  %3547 = vmatpush1.bf16.msra.mxu1 %v4997_v5  ;;  %v5084_v4 = vld [vmem:[%s7327_s1 + $0x5c0] ss:$16 sps:$4 sm:$0xff]   ;;  %v5087_v5 = vld [vmem:[%s7327_s1 + $0x5c8] ss:$16 sps:$4 sm:$0xff]  }
  0x80   :  { %3229 = vmatprep.subr.bf16.mxu0 %v5002_v6  ;;  %3557 = vmatprep.subr.bf16.mxu1 %v5005_v8  ;;  %v5092_v6 = vld [vmem:[%s7327_s1 + $0x5e4] ss:$16 sps:$4 sm:$0xff]   ;;  %v5090_v8 = vld [vmem:[%s7327_s1 + $0x5e0] ss:$16 sps:$4 sm:$0xff]  }
  0x82   :  { %3221 = vmatmul.mubr.bf16.vlgmr.msra.gmra.mrb[0].mxu0 %v39_v11  ;;  %3549 = vmatmul.mubr.bf16.vlgmr.msra.gmra.mrb[0].mxu1 %v39_v11  ;;  %v25_v11 = vld [vmem:[%s7328_s0 + $0x20] sm:$0xff] }
  0x83   :  { %3230 = vmatpush1.bf16.msra.mxu0 %v5000_v9  ;;  %3558 = vmatpush1.bf16.msra.mxu1 %v5003_v10  ;;  %v5093_v9 = vld [vmem:[%s7327_s1 + $0x5e8] ss:$16 sps:$4 sm:$0xff]   ;;  %v5098_v10 = vld [vmem:[%s7327_s1 + $0x604] ss:$16 sps:$4 sm:$0xff]  }
  0x84   :  { %3231 = vmatprep.subr.bf16.mxu0 %v5008_v12  ;;  %3559 = vmatprep.subr.bf16.mxu1 %v5011_v13  ;;  %v5101_v12 = vld [vmem:[%s7327_s1 + $0x60c] ss:$16 sps:$4 sm:$0xff]   ;;  %v5096_v13 = vld [vmem:[%s7327_s1 + $0x600] ss:$16 sps:$4 sm:$0xff]  }
  0x85   :  { %3261 = vmatprep.mubr.bf16.mxu0 %v42_v15  ;;  %3589 = vmatprep.mubr.bf16.mxu1 %v42_v15  ;;  %v41_v15 = vpack.c.bf16 %v25_v11, %v25_v11  ;;  %v5191_v11 = vld [vmem:[%s7327_s1 + $0x7ec] ss:$16 sps:$4 sm:$0xff]  }
  0x87   :  { %3232 = vmatpush1.bf16.msra.mxu0 %v5006_v16  ;;  %3560 = vmatpush1.bf16.msra.mxu1 %v5009_v17  ;;  %v28_v16 = vld [vmem:[%s7328_s0 + $0x38] sm:$0xff]  ;;  %v5104_v17 = vld [vmem:[%s7327_s1 + $0x624] ss:$16 sps:$4 sm:$0xff]  }
  0x88   :  { %3233 = vmatprep.subr.bf16.mxu0 %v5014_v18  ;;  %3561 = vmatprep.subr.bf16.mxu1 %v5017_v19  ;;  %v5107_v18 = vld [vmem:[%s7327_s1 + $0x62c] ss:$16 sps:$4 sm:$0xff]   ;;  %v44_v19 = vpack.c.bf16 %v28_v16, %v28_v16 }
  0x89   :  { %v5197_v16 = vld [vmem:[%s7327_s1 + $0x80c] ss:$16 sps:$4 sm:$0xff]  }
  0x8b   :  { %3234 = vmatpush1.bf16.msra.mxu0 %v5012_v20  ;;  %3562 = vmatpush1.bf16.msra.mxu1 %v5015_v21  ;;  %v5102_v20 = vld [vmem:[%s7327_s1 + $0x620] ss:$16 sps:$4 sm:$0xff]   ;;  %v5105_v21 = vld [vmem:[%s7327_s1 + $0x628] ss:$16 sps:$4 sm:$0xff]  }
  0x8c   :  { %3235 = vmatprep.subr.bf16.mxu0 %v5020_v22  ;;  %3563 = vmatprep.subr.bf16.mxu1 %v5023_v23  ;;  %v5110_v22 = vld [vmem:[%s7327_s1 + $0x644] ss:$16 sps:$4 sm:$0xff]   ;;  %v5113_v23 = vld [vmem:[%s7327_s1 + $0x64c] ss:$16 sps:$4 sm:$0xff]  }
  0x8f   :  { %3236 = vmatpush1.bf16.msra.mxu0 %v5018_v24  ;;  %3564 = vmatpush1.bf16.msra.mxu1 %v5021_v25  ;;  %v5108_v24 = vld [vmem:[%s7327_s1 + $0x640] ss:$16 sps:$4 sm:$0xff]   ;;  %v5111_v25 = vld [vmem:[%s7327_s1 + $0x648] ss:$16 sps:$4 sm:$0xff]  }
  0x90   :  { %3237 = vmatprep.subr.bf16.mxu0 %v5026_v26  ;;  %3565 = vmatprep.subr.bf16.mxu1 %v5029_v27  ;;  %v5116_v26 = vld [vmem:[%s7327_s1 + $0x664] ss:$16 sps:$4 sm:$0xff]   ;;  %v5119_v27 = vld [vmem:[%s7327_s1 + $0x66c] ss:$16 sps:$4 sm:$0xff]  }
  0x93   :  { %3238 = vmatpush1.bf16.msra.mxu0 %v5024_v28  ;;  %3566 = vmatpush1.bf16.msra.mxu1 %v5027_v29  ;;  %v5114_v28 = vld [vmem:[%s7327_s1 + $0x660] ss:$16 sps:$4 sm:$0xff]   ;;  %v5117_v29 = vld [vmem:[%s7327_s1 + $0x668] ss:$16 sps:$4 sm:$0xff]  }
  0x94   :  { %3239 = vmatprep.subr.bf16.mxu0 %v5032_v30  ;;  %3567 = vmatprep.subr.bf16.mxu1 %v5035_v31  ;;  %v5122_v30 = vld [vmem:[%s7327_s1 + $0x684] ss:$16 sps:$4 sm:$0xff]   ;;  %v5125_v31 = vld [vmem:[%s7327_s1 + $0x68c] ss:$16 sps:$4 sm:$0xff]  }
  0x97   :  { %3240 = vmatpush1.bf16.msra.mxu0 %v5030_v32  ;;  %3568 = vmatpush1.bf16.msra.mxu1 %v5033_v33  ;;  %v5120_v32 = vld [vmem:[%s7327_s1 + $0x680] ss:$16 sps:$4 sm:$0xff]   ;;  %v5123_v33 = vld [vmem:[%s7327_s1 + $0x688] ss:$16 sps:$4 sm:$0xff]  }
  0x98   :  { %3241 = vmatprep.subr.bf16.mxu0 %v5038_v34  ;;  %3569 = vmatprep.subr.bf16.mxu1 %v5041_v35  ;;  %v5128_v34 = vld [vmem:[%s7327_s1 + $0x6a4] ss:$16 sps:$4 sm:$0xff]   ;;  %v5131_v35 = vld [vmem:[%s7327_s1 + $0x6ac] ss:$16 sps:$4 sm:$0xff]  }
  0x9b   :  { %3242 = vmatpush1.bf16.msra.mxu0 %v5036_v36  ;;  %3570 = vmatpush1.bf16.msra.mxu1 %v5039_v37  ;;  %v5126_v36 = vld [vmem:[%s7327_s1 + $0x6a0] ss:$16 sps:$4 sm:$0xff]   ;;  %v5129_v37 = vld [vmem:[%s7327_s1 + $0x6a8] ss:$16 sps:$4 sm:$0xff]  }
  0x9c   :  { %3243 = vmatprep.subr.bf16.mxu0 %v5044_v38  ;;  %3571 = vmatprep.subr.bf16.mxu1 %v5047_v39  ;;  %v5134_v38 = vld [vmem:[%s7327_s1 + $0x6c4] ss:$16 sps:$4 sm:$0xff]   ;;  %v5137_v39 = vld [vmem:[%s7327_s1 + $0x6cc] ss:$16 sps:$4 sm:$0xff]  }
  0x9f   :  { %3244 = vmatpush1.bf16.msra.mxu0 %v5042_v40  ;;  %3572 = vmatpush1.bf16.msra.mxu1 %v5045_v41  ;;  %v5132_v40 = vld [vmem:[%s7327_s1 + $0x6c0] ss:$16 sps:$4 sm:$0xff]   ;;  %v5135_v41 = vld [vmem:[%s7327_s1 + $0x6c8] ss:$16 sps:$4 sm:$0xff]  }
  0xa0   :  { %3245 = vmatprep.subr.bf16.mxu0 %v5050_v42  ;;  %3573 = vmatprep.subr.bf16.mxu1 %v5053_v43  ;;  %v5140_v42 = vld [vmem:[%s7327_s1 + $0x6e4] ss:$16 sps:$4 sm:$0xff]   ;;  %v5143_v43 = vld [vmem:[%s7327_s1 + $0x6ec] ss:$16 sps:$4 sm:$0xff]  }
  0xa3   :  { %3246 = vmatpush1.bf16.msra.mxu0 %v5048_v44  ;;  %3574 = vmatpush1.bf16.msra.mxu1 %v5051_v45  ;;  %v5138_v44 = vld [vmem:[%s7327_s1 + $0x6e0] ss:$16 sps:$4 sm:$0xff]   ;;  %v5141_v45 = vld [vmem:[%s7327_s1 + $0x6e8] ss:$16 sps:$4 sm:$0xff]  }
  0xa4   :  { %3247 = vmatprep.subr.bf16.mxu0 %v5056_v46  ;;  %3575 = vmatprep.subr.bf16.mxu1 %v5059_v47  ;;  %v5146_v46 = vld [vmem:[%s7327_s1 + $0x704] ss:$16 sps:$4 sm:$0xff]   ;;  %v5149_v47 = vld [vmem:[%s7327_s1 + $0x70c] ss:$16 sps:$4 sm:$0xff]  }
  0xa7   :  { %3248 = vmatpush1.bf16.msra.mxu0 %v5054_v48  ;;  %3576 = vmatpush1.bf16.msra.mxu1 %v5057_v49  ;;  %v5144_v48 = vld [vmem:[%s7327_s1 + $0x700] ss:$16 sps:$4 sm:$0xff]   ;;  %v5147_v49 = vld [vmem:[%s7327_s1 + $0x708] ss:$16 sps:$4 sm:$0xff]  }
  0xa8   :  { %3249 = vmatprep.subr.bf16.mxu0 %v5062_v50  ;;  %3577 = vmatprep.subr.bf16.mxu1 %v5065_v51  ;;  %v5152_v50 = vld [vmem:[%s7327_s1 + $0x724] ss:$16 sps:$4 sm:$0xff]   ;;  %v5155_v51 = vld [vmem:[%s7327_s1 + $0x72c] ss:$16 sps:$4 sm:$0xff]  }
  0xab   :  { %3250 = vmatpush1.bf16.msra.mxu0 %v5060_v52  ;;  %3578 = vmatpush1.bf16.msra.mxu1 %v5063_v53  ;;  %v5150_v52 = vld [vmem:[%s7327_s1 + $0x720] ss:$16 sps:$4 sm:$0xff]   ;;  %v5153_v53 = vld [vmem:[%s7327_s1 + $0x728] ss:$16 sps:$4 sm:$0xff]  }
  0xac   :  { %3251 = vmatprep.subr.bf16.mxu0 %v5068_v54  ;;  %3579 = vmatprep.subr.bf16.mxu1 %v5071_v55  ;;  %v5158_v54 = vld [vmem:[%s7327_s1 + $0x744] ss:$16 sps:$4 sm:$0xff]   ;;  %v5161_v55 = vld [vmem:[%s7327_s1 + $0x74c] ss:$16 sps:$4 sm:$0xff]  }
  0xaf   :  { %3252 = vmatpush1.bf16.msra.mxu0 %v5066_v56  ;;  %3580 = vmatpush1.bf16.msra.mxu1 %v5069_v57  ;;  %v5156_v56 = vld [vmem:[%s7327_s1 + $0x740] ss:$16 sps:$4 sm:$0xff]   ;;  %v5159_v57 = vld [vmem:[%s7327_s1 + $0x748] ss:$16 sps:$4 sm:$0xff]  }
  0xb0   :  { %3253 = vmatprep.subr.bf16.mxu0 %v5074_v58  ;;  %3581 = vmatprep.subr.bf16.mxu1 %v5077_v59  ;;  %v5164_v58 = vld [vmem:[%s7327_s1 + $0x764] ss:$16 sps:$4 sm:$0xff]   ;;  %v5167_v59 = vld [vmem:[%s7327_s1 + $0x76c] ss:$16 sps:$4 sm:$0xff]  }
  0xb3   :  { %3254 = vmatpush1.bf16.msra.mxu0 %v5072_v60  ;;  %3582 = vmatpush1.bf16.msra.mxu1 %v5075_v61  ;;  %v5162_v60 = vld [vmem:[%s7327_s1 + $0x760] ss:$16 sps:$4 sm:$0xff]   ;;  %v5165_v61 = vld [vmem:[%s7327_s1 + $0x768] ss:$16 sps:$4 sm:$0xff]  }
  0xb4   :  { %3255 = vmatprep.subr.bf16.mxu0 %v5080_v62  ;;  %3583 = vmatprep.subr.bf16.mxu1 %v5083_v63  ;;  %v5170_v62 = vld [vmem:[%s7327_s1 + $0x784] ss:$16 sps:$4 sm:$0xff]   ;;  %v5173_v63 = vld [vmem:[%s7327_s1 + $0x78c] ss:$16 sps:$4 sm:$0xff]  }
  0xb7   :  { %3256 = vmatpush1.bf16.msra.mxu0 %v5078_v0  ;;  %3584 = vmatpush1.bf16.msra.mxu1 %v5081_v1  ;;  %v5168_v0 = vld [vmem:[%s7327_s1 + $0x780] ss:$16 sps:$4 sm:$0xff]   ;;  %v5171_v1 = vld [vmem:[%s7327_s1 + $0x788] ss:$16 sps:$4 sm:$0xff]  }
  0xb8   :  { %3257 = vmatprep.subr.bf16.mxu0 %v5086_v2  ;;  %3585 = vmatprep.subr.bf16.mxu1 %v5089_v3  ;;  %v5176_v2 = vld [vmem:[%s7327_s1 + $0x7a4] ss:$16 sps:$4 sm:$0xff]   ;;  %v5179_v3 = vld [vmem:[%s7327_s1 + $0x7ac] ss:$16 sps:$4 sm:$0xff]  }
  0xbb   :  { %3258 = vmatpush1.bf16.msra.mxu0 %v5084_v4  ;;  %3586 = vmatpush1.bf16.msra.mxu1 %v5087_v5  ;;  %v5174_v4 = vld [vmem:[%s7327_s1 + $0x7a0] ss:$16 sps:$4 sm:$0xff]   ;;  %v5177_v5 = vld [vmem:[%s7327_s1 + $0x7a8] ss:$16 sps:$4 sm:$0xff]  }
  0xbc   :  { %3259 = vmatprep.subr.bf16.mxu0 %v5092_v6  ;;  %3587 = vmatprep.subr.bf16.mxu1 %v5095_v7  ;;  %v5182_v6 = vld [vmem:[%s7327_s1 + $0x7c4] ss:$16 sps:$4 sm:$0xff]   ;;  %v5185_v7 = vld [vmem:[%s7327_s1 + $0x7cc] ss:$16 sps:$4 sm:$0xff]  }
  0xbf   :  { %3260 = vmatpush1.bf16.msra.mxu0 %v5090_v8  ;;  %3588 = vmatpush1.bf16.msra.mxu1 %v5093_v9  ;;  %v5180_v8 = vld [vmem:[%s7327_s1 + $0x7c0] ss:$16 sps:$4 sm:$0xff]   ;;  %v5183_v9 = vld [vmem:[%s7327_s1 + $0x7c8] ss:$16 sps:$4 sm:$0xff]  }
  0xc0   :  { %3270 = vmatprep.subr.bf16.mxu0 %v5098_v10  ;;  %3598 = vmatprep.subr.bf16.mxu1 %v5101_v12  ;;  %v5188_v10 = vld [vmem:[%s7327_s1 + $0x7e4] ss:$16 sps:$4 sm:$0xff]   ;;  %v5186_v12 = vld [vmem:[%s7327_s1 + $0x7e0] ss:$16 sps:$4 sm:$0xff]  }
  0xc2   :  { %3262 = vmatmul.mubr.bf16.vlgmr.msra.gmra.mrb[0].mxu0 %v41_v15  ;;  %3590 = vmatmul.mubr.bf16.vlgmr.msra.gmra.mrb[0].mxu1 %v41_v15  ;;  %v5194_v15 = vld [vmem:[%s7327_s1 + $0x804] ss:$16 sps:$4 sm:$0xff]  }
  0xc3   :  { %3271 = vmatpush1.bf16.msra.mxu0 %v5096_v13  ;;  %3599 = vmatpush1.bf16.msra.mxu1 %v5099_v14  ;;  %v5189_v13 = vld [vmem:[%s7327_s1 + $0x7e8] ss:$16 sps:$4 sm:$0xff]   ;;  %v27_v14 = vld [vmem:[%s7328_s0 + $0x30] sm:$0xff] }
  0xc4   :  { %3272 = vmatprep.subr.bf16.mxu0 %v5104_v17  ;;  %3600 = vmatprep.subr.bf16.mxu1 %v5107_v18  ;;  %v43_v17 = vpack.c.bf16 %v27_v14, %v27_v14  ;;  %v30_v18 = vld [vmem:[%s7328_s0 + $0x48] sm:$0xff]  ;;  %v5284_v14 = vld [vmem:[%s7327_s1 + $0x9e4] ss:$16 sps:$4 sm:$0xff]  }
  0xc5   :  { %3302 = vmatprep.mubr.bf16.mxu0 %v44_v19  ;;  %3630 = vmatprep.mubr.bf16.mxu1 %v44_v19  ;;  %v5192_v19 = vld [vmem:[%s7327_s1 + $0x800] ss:$16 sps:$4 sm:$0xff]  }
  0xc7   :  { %3273 = vmatpush1.bf16.msra.mxu0 %v5102_v20  ;;  %3601 = vmatpush1.bf16.msra.mxu1 %v5105_v21  ;;  %v5195_v20 = vld [vmem:[%s7327_s1 + $0x808] ss:$16 sps:$4 sm:$0xff]   ;;  %v5200_v21 = vld [vmem:[%s7327_s1 + $0x824] ss:$16 sps:$4 sm:$0xff]  }
  0xc8   :  { %3274 = vmatprep.subr.bf16.mxu0 %v5110_v22  ;;  %3602 = vmatprep.subr.bf16.mxu1 %v5113_v23  ;;  %v5203_v22 = vld [vmem:[%s7327_s1 + $0x82c] ss:$16 sps:$4 sm:$0xff]   ;;  %v46_v23 = vpack.c.bf16 %v30_v18, %v30_v18  ;;  %v5290_v18 = vld [vmem:[%s7327_s1 + $0xa04] ss:$16 sps:$4 sm:$0xff]  }
  0xcb   :  { %3275 = vmatpush1.bf16.msra.mxu0 %v5108_v24  ;;  %3603 = vmatpush1.bf16.msra.mxu1 %v5111_v25  ;;  %v5198_v24 = vld [vmem:[%s7327_s1 + $0x820] ss:$16 sps:$4 sm:$0xff]   ;;  %v5201_v25 = vld [vmem:[%s7327_s1 + $0x828] ss:$16 sps:$4 sm:$0xff]  }
  0xcc   :  { %3276 = vmatprep.subr.bf16.mxu0 %v5116_v26  ;;  %3604 = vmatprep.subr.bf16.mxu1 %v5119_v27  ;;  %v5206_v26 = vld [vmem:[%s7327_s1 + $0x844] ss:$16 sps:$4 sm:$0xff]   ;;  %v5209_v27 = vld [vmem:[%s7327_s1 + $0x84c] ss:$16 sps:$4 sm:$0xff]  }
  0xcf   :  { %3277 = vmatpush1.bf16.msra.mxu0 %v5114_v28  ;;  %3605 = vmatpush1.bf16.msra.mxu1 %v5117_v29  ;;  %v5204_v28 = vld [vmem:[%s7327_s1 + $0x840] ss:$16 sps:$4 sm:$0xff]   ;;  %v5207_v29 = vld [vmem:[%s7327_s1 + $0x848] ss:$16 sps:$4 sm:$0xff]  }
  0xd0   :  { %3278 = vmatprep.subr.bf16.mxu0 %v5122_v30  ;;  %3606 = vmatprep.subr.bf16.mxu1 %v5125_v31  ;;  %v5212_v30 = vld [vmem:[%s7327_s1 + $0x864] ss:$16 sps:$4 sm:$0xff]   ;;  %v5215_v31 = vld [vmem:[%s7327_s1 + $0x86c] ss:$16 sps:$4 sm:$0xff]  }
  0xd3   :  { %3279 = vmatpush1.bf16.msra.mxu0 %v5120_v32  ;;  %3607 = vmatpush1.bf16.msra.mxu1 %v5123_v33  ;;  %v5210_v32 = vld [vmem:[%s7327_s1 + $0x860] ss:$16 sps:$4 sm:$0xff]   ;;  %v5213_v33 = vld [vmem:[%s7327_s1 + $0x868] ss:$16 sps:$4 sm:$0xff]  }
  0xd4   :  { %3280 = vmatprep.subr.bf16.mxu0 %v5128_v34  ;;  %3608 = vmatprep.subr.bf16.mxu1 %v5131_v35  ;;  %v5218_v34 = vld [vmem:[%s7327_s1 + $0x884] ss:$16 sps:$4 sm:$0xff]   ;;  %v5221_v35 = vld [vmem:[%s7327_s1 + $0x88c] ss:$16 sps:$4 sm:$0xff]  }
  0xd7   :  { %3281 = vmatpush1.bf16.msra.mxu0 %v5126_v36  ;;  %3609 = vmatpush1.bf16.msra.mxu1 %v5129_v37  ;;  %v5216_v36 = vld [vmem:[%s7327_s1 + $0x880] ss:$16 sps:$4 sm:$0xff]   ;;  %v5219_v37 = vld [vmem:[%s7327_s1 + $0x888] ss:$16 sps:$4 sm:$0xff]  }
  0xd8   :  { %3282 = vmatprep.subr.bf16.mxu0 %v5134_v38  ;;  %3610 = vmatprep.subr.bf16.mxu1 %v5137_v39  ;;  %v5224_v38 = vld [vmem:[%s7327_s1 + $0x8a4] ss:$16 sps:$4 sm:$0xff]   ;;  %v5227_v39 = vld [vmem:[%s7327_s1 + $0x8ac] ss:$16 sps:$4 sm:$0xff]  }
  0xdb   :  { %3283 = vmatpush1.bf16.msra.mxu0 %v5132_v40  ;;  %3611 = vmatpush1.bf16.msra.mxu1 %v5135_v41  ;;  %v5222_v40 = vld [vmem:[%s7327_s1 + $0x8a0] ss:$16 sps:$4 sm:$0xff]   ;;  %v5225_v41 = vld [vmem:[%s7327_s1 + $0x8a8] ss:$16 sps:$4 sm:$0xff]  }
  0xdc   :  { %3284 = vmatprep.subr.bf16.mxu0 %v5140_v42  ;;  %3612 = vmatprep.subr.bf16.mxu1 %v5143_v43  ;;  %v5230_v42 = vld [vmem:[%s7327_s1 + $0x8c4] ss:$16 sps:$4 sm:$0xff]   ;;  %v5233_v43 = vld [vmem:[%s7327_s1 + $0x8cc] ss:$16 sps:$4 sm:$0xff]  }
  0xdf   :  { %3285 = vmatpush1.bf16.msra.mxu0 %v5138_v44  ;;  %3613 = vmatpush1.bf16.msra.mxu1 %v5141_v45  ;;  %v5228_v44 = vld [vmem:[%s7327_s1 + $0x8c0] ss:$16 sps:$4 sm:$0xff]   ;;  %v5231_v45 = vld [vmem:[%s7327_s1 + $0x8c8] ss:$16 sps:$4 sm:$0xff]  }
  0xe0   :  { %3286 = vmatprep.subr.bf16.mxu0 %v5146_v46  ;;  %3614 = vmatprep.subr.bf16.mxu1 %v5149_v47  ;;  %v5236_v46 = vld [vmem:[%s7327_s1 + $0x8e4] ss:$16 sps:$4 sm:$0xff]   ;;  %v5239_v47 = vld [vmem:[%s7327_s1 + $0x8ec] ss:$16 sps:$4 sm:$0xff]  }
  0xe3   :  { %3287 = vmatpush1.bf16.msra.mxu0 %v5144_v48  ;;  %3615 = vmatpush1.bf16.msra.mxu1 %v5147_v49  ;;  %v5234_v48 = vld [vmem:[%s7327_s1 + $0x8e0] ss:$16 sps:$4 sm:$0xff]   ;;  %v5237_v49 = vld [vmem:[%s7327_s1 + $0x8e8] ss:$16 sps:$4 sm:$0xff]  }
  0xe4   :  { %3288 = vmatprep.subr.bf16.mxu0 %v5152_v50  ;;  %3616 = vmatprep.subr.bf16.mxu1 %v5155_v51  ;;  %v5242_v50 = vld [vmem:[%s7327_s1 + $0x904] ss:$16 sps:$4 sm:$0xff]   ;;  %v5245_v51 = vld [vmem:[%s7327_s1 + $0x90c] ss:$16 sps:$4 sm:$0xff]  }
  0xe7   :  { %3289 = vmatpush1.bf16.msra.mxu0 %v5150_v52  ;;  %3617 = vmatpush1.bf16.msra.mxu1 %v5153_v53  ;;  %v5240_v52 = vld [vmem:[%s7327_s1 + $0x900] ss:$16 sps:$4 sm:$0xff]   ;;  %v5243_v53 = vld [vmem:[%s7327_s1 + $0x908] ss:$16 sps:$4 sm:$0xff]  }
  0xe8   :  { %3290 = vmatprep.subr.bf16.mxu0 %v5158_v54  ;;  %3618 = vmatprep.subr.bf16.mxu1 %v5161_v55  ;;  %v5248_v54 = vld [vmem:[%s7327_s1 + $0x924] ss:$16 sps:$4 sm:$0xff]   ;;  %v5251_v55 = vld [vmem:[%s7327_s1 + $0x92c] ss:$16 sps:$4 sm:$0xff]  }
  0xeb   :  { %3291 = vmatpush1.bf16.msra.mxu0 %v5156_v56  ;;  %3619 = vmatpush1.bf16.msra.mxu1 %v5159_v57  ;;  %v5246_v56 = vld [vmem:[%s7327_s1 + $0x920] ss:$16 sps:$4 sm:$0xff]   ;;  %v5249_v57 = vld [vmem:[%s7327_s1 + $0x928] ss:$16 sps:$4 sm:$0xff]  }
  0xec   :  { %3292 = vmatprep.subr.bf16.mxu0 %v5164_v58  ;;  %3620 = vmatprep.subr.bf16.mxu1 %v5167_v59  ;;  %v5254_v58 = vld [vmem:[%s7327_s1 + $0x944] ss:$16 sps:$4 sm:$0xff]   ;;  %v5257_v59 = vld [vmem:[%s7327_s1 + $0x94c] ss:$16 sps:$4 sm:$0xff]  }
  0xef   :  { %3293 = vmatpush1.bf16.msra.mxu0 %v5162_v60  ;;  %3621 = vmatpush1.bf16.msra.mxu1 %v5165_v61  ;;  %v5252_v60 = vld [vmem:[%s7327_s1 + $0x940] ss:$16 sps:$4 sm:$0xff]   ;;  %v5255_v61 = vld [vmem:[%s7327_s1 + $0x948] ss:$16 sps:$4 sm:$0xff]  }
  0xf0   :  { %3294 = vmatprep.subr.bf16.mxu0 %v5170_v62  ;;  %3622 = vmatprep.subr.bf16.mxu1 %v5173_v63  ;;  %v5260_v62 = vld [vmem:[%s7327_s1 + $0x964] ss:$16 sps:$4 sm:$0xff]   ;;  %v5263_v63 = vld [vmem:[%s7327_s1 + $0x96c] ss:$16 sps:$4 sm:$0xff]  }
  0xf3   :  { %3295 = vmatpush1.bf16.msra.mxu0 %v5168_v0  ;;  %3623 = vmatpush1.bf16.msra.mxu1 %v5171_v1  ;;  %v5258_v0 = vld [vmem:[%s7327_s1 + $0x960] ss:$16 sps:$4 sm:$0xff]   ;;  %v5261_v1 = vld [vmem:[%s7327_s1 + $0x968] ss:$16 sps:$4 sm:$0xff]  }
  0xf4   :  { %3296 = vmatprep.subr.bf16.mxu0 %v5176_v2  ;;  %3624 = vmatprep.subr.bf16.mxu1 %v5179_v3  ;;  %v5266_v2 = vld [vmem:[%s7327_s1 + $0x984] ss:$16 sps:$4 sm:$0xff]   ;;  %v5269_v3 = vld [vmem:[%s7327_s1 + $0x98c] ss:$16 sps:$4 sm:$0xff]  }
  0xf7   :  { %3297 = vmatpush1.bf16.msra.mxu0 %v5174_v4  ;;  %3625 = vmatpush1.bf16.msra.mxu1 %v5177_v5  ;;  %v5264_v4 = vld [vmem:[%s7327_s1 + $0x980] ss:$16 sps:$4 sm:$0xff]   ;;  %v5267_v5 = vld [vmem:[%s7327_s1 + $0x988] ss:$16 sps:$4 sm:$0xff]  }
  0xf8   :  { %3298 = vmatprep.subr.bf16.mxu0 %v5182_v6  ;;  %3626 = vmatprep.subr.bf16.mxu1 %v5185_v7  ;;  %v5272_v6 = vld [vmem:[%s7327_s1 + $0x9a4] ss:$16 sps:$4 sm:$0xff]   ;;  %v5275_v7 = vld [vmem:[%s7327_s1 + $0x9ac] ss:$16 sps:$4 sm:$0xff]  }
  0xfb   :  { %3299 = vmatpush1.bf16.msra.mxu0 %v5180_v8  ;;  %3627 = vmatpush1.bf16.msra.mxu1 %v5183_v9  ;;  %v5270_v8 = vld [vmem:[%s7327_s1 + $0x9a0] ss:$16 sps:$4 sm:$0xff]   ;;  %v5273_v9 = vld [vmem:[%s7327_s1 + $0x9a8] ss:$16 sps:$4 sm:$0xff]  }
  0xfc   :  { %3300 = vmatprep.subr.bf16.mxu0 %v5188_v10  ;;  %3628 = vmatprep.subr.bf16.mxu1 %v5191_v11  ;;  %v5278_v10 = vld [vmem:[%s7327_s1 + $0x9c4] ss:$16 sps:$4 sm:$0xff]   ;;  %v5281_v11 = vld [vmem:[%s7327_s1 + $0x9cc] ss:$16 sps:$4 sm:$0xff]  }
  0xff   :  { %3301 = vmatpush1.bf16.msra.mxu0 %v5186_v12  ;;  %3629 = vmatpush1.bf16.msra.mxu1 %v5189_v13  ;;  %v5276_v12 = vld [vmem:[%s7327_s1 + $0x9c0] ss:$16 sps:$4 sm:$0xff]   ;;  %v5279_v13 = vld [vmem:[%s7327_s1 + $0x9c8] ss:$16 sps:$4 sm:$0xff]  }
 0x100   :  { %3311 = vmatprep.subr.bf16.mxu0 %v5194_v15  ;;  %3639 = vmatprep.subr.bf16.mxu1 %v5197_v16  ;;  %v5287_v15 = vld [vmem:[%s7327_s1 + $0x9ec] ss:$16 sps:$4 sm:$0xff]   ;;  %v5282_v16 = vld [vmem:[%s7327_s1 + $0x9e0] ss:$16 sps:$4 sm:$0xff]  }
 0x102   :  { %3303 = vmatmul.mubr.bf16.vlgmr.msra.gmra.mrb[0].mxu0 %v43_v17  ;;  %3631 = vmatmul.mubr.bf16.vlgmr.msra.gmra.mrb[0].mxu1 %v43_v17  ;;  %v5285_v17 = vld [vmem:[%s7327_s1 + $0x9e8] ss:$16 sps:$4 sm:$0xff]  }
 0x103   :  { %3312 = vmatpush1.bf16.msra.mxu0 %v5192_v19  ;;  %3640 = vmatpush1.bf16.msra.mxu1 %v5195_v20  ;;  %v29_v19 = vld [vmem:[%s7328_s0 + $0x40] sm:$0xff]  ;;  %v5293_v20 = vld [vmem:[%s7327_s1 + $0xa0c] ss:$16 sps:$4 sm:$0xff]  }
 0x104   :  { %3313 = vmatprep.subr.bf16.mxu0 %v5200_v21  ;;  %3641 = vmatprep.subr.bf16.mxu1 %v5203_v22  ;;  %v32_v21 = vld [vmem:[%s7328_s0 + $0x58] sm:$0xff]  ;;  %v45_v22 = vpack.c.bf16 %v29_v19, %v29_v19 }
 0x105   :  { %3343 = vmatprep.mubr.bf16.mxu0 %v46_v23  ;;  %3671 = vmatprep.mubr.bf16.mxu1 %v46_v23  ;;  %v5288_v23 = vld [vmem:[%s7327_s1 + $0xa00] ss:$16 sps:$4 sm:$0xff]   ;;  %v5383_v19 = vld [vmem:[%s7327_s1 + $0xbec] ss:$16 sps:$4 sm:$0xff]  }
 0x107   :  { %3314 = vmatpush1.bf16.msra.mxu0 %v5198_v24  ;;  %3642 = vmatpush1.bf16.msra.mxu1 %v5201_v25  ;;  %v5291_v24 = vld [vmem:[%s7327_s1 + $0xa08] ss:$16 sps:$4 sm:$0xff]   ;;  %v5296_v25 = vld [vmem:[%s7327_s1 + $0xa24] ss:$16 sps:$4 sm:$0xff]  }
 0x108   :  { %3315 = vmatprep.subr.bf16.mxu0 %v5206_v26  ;;  %3643 = vmatprep.subr.bf16.mxu1 %v5209_v27  ;;  %v5299_v26 = vld [vmem:[%s7327_s1 + $0xa2c] ss:$16 sps:$4 sm:$0xff]   ;;  %v48_v27 = vpack.c.bf16 %v32_v21, %v32_v21  ;;  %v5381_v21 = vld [vmem:[%s7327_s1 + $0xbe8] ss:$16 sps:$4 sm:$0xff]  }
 0x10b   :  { %3316 = vmatpush1.bf16.msra.mxu0 %v5204_v28  ;;  %3644 = vmatpush1.bf16.msra.mxu1 %v5207_v29  ;;  %v5294_v28 = vld [vmem:[%s7327_s1 + $0xa20] ss:$16 sps:$4 sm:$0xff]   ;;  %v5297_v29 = vld [vmem:[%s7327_s1 + $0xa28] ss:$16 sps:$4 sm:$0xff]  }
 0x10c   :  { %3317 = vmatprep.subr.bf16.mxu0 %v5212_v30  ;;  %3645 = vmatprep.subr.bf16.mxu1 %v5215_v31  ;;  %v5302_v30 = vld [vmem:[%s7327_s1 + $0xa44] ss:$16 sps:$4 sm:$0xff]   ;;  %v5305_v31 = vld [vmem:[%s7327_s1 + $0xa4c] ss:$16 sps:$4 sm:$0xff]  }
 0x10f   :  { %3318 = vmatpush1.bf16.msra.mxu0 %v5210_v32  ;;  %3646 = vmatpush1.bf16.msra.mxu1 %v5213_v33  ;;  %v5300_v32 = vld [vmem:[%s7327_s1 + $0xa40] ss:$16 sps:$4 sm:$0xff]   ;;  %v5303_v33 = vld [vmem:[%s7327_s1 + $0xa48] ss:$16 sps:$4 sm:$0xff]  }
 0x110   :  { %3319 = vmatprep.subr.bf16.mxu0 %v5218_v34  ;;  %3647 = vmatprep.subr.bf16.mxu1 %v5221_v35  ;;  %v5308_v34 = vld [vmem:[%s7327_s1 + $0xa64] ss:$16 sps:$4 sm:$0xff]   ;;  %v5311_v35 = vld [vmem:[%s7327_s1 + $0xa6c] ss:$16 sps:$4 sm:$0xff]  }
 0x113   :  { %3320 = vmatpush1.bf16.msra.mxu0 %v5216_v36  ;;  %3648 = vmatpush1.bf16.msra.mxu1 %v5219_v37  ;;  %v5306_v36 = vld [vmem:[%s7327_s1 + $0xa60] ss:$16 sps:$4 sm:$0xff]   ;;  %v5309_v37 = vld [vmem:[%s7327_s1 + $0xa68] ss:$16 sps:$4 sm:$0xff]  }
 0x114   :  { %3321 = vmatprep.subr.bf16.mxu0 %v5224_v38  ;;  %3649 = vmatprep.subr.bf16.mxu1 %v5227_v39  ;;  %v5314_v38 = vld [vmem:[%s7327_s1 + $0xa84] ss:$16 sps:$4 sm:$0xff]   ;;  %v5317_v39 = vld [vmem:[%s7327_s1 + $0xa8c] ss:$16 sps:$4 sm:$0xff]  }
 0x117   :  { %3322 = vmatpush1.bf16.msra.mxu0 %v5222_v40  ;;  %3650 = vmatpush1.bf16.msra.mxu1 %v5225_v41  ;;  %v5312_v40 = vld [vmem:[%s7327_s1 + $0xa80] ss:$16 sps:$4 sm:$0xff]   ;;  %v5315_v41 = vld [vmem:[%s7327_s1 + $0xa88] ss:$16 sps:$4 sm:$0xff]  }
 0x118   :  { %3323 = vmatprep.subr.bf16.mxu0 %v5230_v42  ;;  %3651 = vmatprep.subr.bf16.mxu1 %v5233_v43  ;;  %v5320_v42 = vld [vmem:[%s7327_s1 + $0xaa4] ss:$16 sps:$4 sm:$0xff]   ;;  %v5323_v43 = vld [vmem:[%s7327_s1 + $0xaac] ss:$16 sps:$4 sm:$0xff]  }
 0x11b   :  { %3324 = vmatpush1.bf16.msra.mxu0 %v5228_v44  ;;  %3652 = vmatpush1.bf16.msra.mxu1 %v5231_v45  ;;  %v5318_v44 = vld [vmem:[%s7327_s1 + $0xaa0] ss:$16 sps:$4 sm:$0xff]   ;;  %v5321_v45 = vld [vmem:[%s7327_s1 + $0xaa8] ss:$16 sps:$4 sm:$0xff]  }
 0x11c   :  { %3325 = vmatprep.subr.bf16.mxu0 %v5236_v46  ;;  %3653 = vmatprep.subr.bf16.mxu1 %v5239_v47  ;;  %v5326_v46 = vld [vmem:[%s7327_s1 + $0xac4] ss:$16 sps:$4 sm:$0xff]   ;;  %v5329_v47 = vld [vmem:[%s7327_s1 + $0xacc] ss:$16 sps:$4 sm:$0xff]  }
 0x11f   :  { %3326 = vmatpush1.bf16.msra.mxu0 %v5234_v48  ;;  %3654 = vmatpush1.bf16.msra.mxu1 %v5237_v49  ;;  %v5324_v48 = vld [vmem:[%s7327_s1 + $0xac0] ss:$16 sps:$4 sm:$0xff]   ;;  %v5327_v49 = vld [vmem:[%s7327_s1 + $0xac8] ss:$16 sps:$4 sm:$0xff]  }
 0x120   :  { %3327 = vmatprep.subr.bf16.mxu0 %v5242_v50  ;;  %3655 = vmatprep.subr.bf16.mxu1 %v5245_v51  ;;  %v5332_v50 = vld [vmem:[%s7327_s1 + $0xae4] ss:$16 sps:$4 sm:$0xff]   ;;  %v5335_v51 = vld [vmem:[%s7327_s1 + $0xaec] ss:$16 sps:$4 sm:$0xff]  }
 0x123   :  { %3328 = vmatpush1.bf16.msra.mxu0 %v5240_v52  ;;  %3656 = vmatpush1.bf16.msra.mxu1 %v5243_v53  ;;  %v5330_v52 = vld [vmem:[%s7327_s1 + $0xae0] ss:$16 sps:$4 sm:$0xff]   ;;  %v5333_v53 = vld [vmem:[%s7327_s1 + $0xae8] ss:$16 sps:$4 sm:$0xff]  }
 0x124   :  { %3329 = vmatprep.subr.bf16.mxu0 %v5248_v54  ;;  %3657 = vmatprep.subr.bf16.mxu1 %v5251_v55  ;;  %v5338_v54 = vld [vmem:[%s7327_s1 + $0xb04] ss:$16 sps:$4 sm:$0xff]   ;;  %v5341_v55 = vld [vmem:[%s7327_s1 + $0xb0c] ss:$16 sps:$4 sm:$0xff]  }
 0x127   :  { %3330 = vmatpush1.bf16.msra.mxu0 %v5246_v56  ;;  %3658 = vmatpush1.bf16.msra.mxu1 %v5249_v57  ;;  %v5336_v56 = vld [vmem:[%s7327_s1 + $0xb00] ss:$16 sps:$4 sm:$0xff]   ;;  %v5339_v57 = vld [vmem:[%s7327_s1 + $0xb08] ss:$16 sps:$4 sm:$0xff]  }
 0x128   :  { %3331 = vmatprep.subr.bf16.mxu0 %v5254_v58  ;;  %3659 = vmatprep.subr.bf16.mxu1 %v5257_v59  ;;  %v5344_v58 = vld [vmem:[%s7327_s1 + $0xb24] ss:$16 sps:$4 sm:$0xff]   ;;  %v5347_v59 = vld [vmem:[%s7327_s1 + $0xb2c] ss:$16 sps:$4 sm:$0xff]  }
 0x12b   :  { %3332 = vmatpush1.bf16.msra.mxu0 %v5252_v60  ;;  %3660 = vmatpush1.bf16.msra.mxu1 %v5255_v61  ;;  %v5342_v60 = vld [vmem:[%s7327_s1 + $0xb20] ss:$16 sps:$4 sm:$0xff]   ;;  %v5345_v61 = vld [vmem:[%s7327_s1 + $0xb28] ss:$16 sps:$4 sm:$0xff]  }
 0x12c   :  { %3333 = vmatprep.subr.bf16.mxu0 %v5260_v62  ;;  %3661 = vmatprep.subr.bf16.mxu1 %v5263_v63  ;;  %v5350_v62 = vld [vmem:[%s7327_s1 + $0xb44] ss:$16 sps:$4 sm:$0xff]   ;;  %v5353_v63 = vld [vmem:[%s7327_s1 + $0xb4c] ss:$16 sps:$4 sm:$0xff]  }
 0x12f   :  { %3334 = vmatpush1.bf16.msra.mxu0 %v5258_v0  ;;  %3662 = vmatpush1.bf16.msra.mxu1 %v5261_v1  ;;  %v5348_v0 = vld [vmem:[%s7327_s1 + $0xb40] ss:$16 sps:$4 sm:$0xff]   ;;  %v5351_v1 = vld [vmem:[%s7327_s1 + $0xb48] ss:$16 sps:$4 sm:$0xff]  }
 0x130   :  { %3335 = vmatprep.subr.bf16.mxu0 %v5266_v2  ;;  %3663 = vmatprep.subr.bf16.mxu1 %v5269_v3  ;;  %v5356_v2 = vld [vmem:[%s7327_s1 + $0xb64] ss:$16 sps:$4 sm:$0xff]   ;;  %v5359_v3 = vld [vmem:[%s7327_s1 + $0xb6c] ss:$16 sps:$4 sm:$0xff]  }
 0x133   :  { %3336 = vmatpush1.bf16.msra.mxu0 %v5264_v4  ;;  %3664 = vmatpush1.bf16.msra.mxu1 %v5267_v5  ;;  %v5354_v4 = vld [vmem:[%s7327_s1 + $0xb60] ss:$16 sps:$4 sm:$0xff]   ;;  %v5357_v5 = vld [vmem:[%s7327_s1 + $0xb68] ss:$16 sps:$4 sm:$0xff]  }
 0x134   :  { %3337 = vmatprep.subr.bf16.mxu0 %v5272_v6  ;;  %3665 = vmatprep.subr.bf16.mxu1 %v5275_v7  ;;  %v5362_v6 = vld [vmem:[%s7327_s1 + $0xb84] ss:$16 sps:$4 sm:$0xff]   ;;  %v5365_v7 = vld [vmem:[%s7327_s1 + $0xb8c] ss:$16 sps:$4 sm:$0xff]  }
 0x137   :  { %3338 = vmatpush1.bf16.msra.mxu0 %v5270_v8  ;;  %3666 = vmatpush1.bf16.msra.mxu1 %v5273_v9  ;;  %v5360_v8 = vld [vmem:[%s7327_s1 + $0xb80] ss:$16 sps:$4 sm:$0xff]   ;;  %v5363_v9 = vld [vmem:[%s7327_s1 + $0xb88] ss:$16 sps:$4 sm:$0xff]  }
 0x138   :  { %3339 = vmatprep.subr.bf16.mxu0 %v5278_v10  ;;  %3667 = vmatprep.subr.bf16.mxu1 %v5281_v11  ;;  %v5368_v10 = vld [vmem:[%s7327_s1 + $0xba4] ss:$16 sps:$4 sm:$0xff]   ;;  %v5371_v11 = vld [vmem:[%s7327_s1 + $0xbac] ss:$16 sps:$4 sm:$0xff]  }
 0x13b   :  { %3340 = vmatpush1.bf16.msra.mxu0 %v5276_v12  ;;  %3668 = vmatpush1.bf16.msra.mxu1 %v5279_v13  ;;  %v5366_v12 = vld [vmem:[%s7327_s1 + $0xba0] ss:$16 sps:$4 sm:$0xff]   ;;  %v5369_v13 = vld [vmem:[%s7327_s1 + $0xba8] ss:$16 sps:$4 sm:$0xff]  }
 0x13c   :  { %3341 = vmatprep.subr.bf16.mxu0 %v5284_v14  ;;  %3669 = vmatprep.subr.bf16.mxu1 %v5287_v15  ;;  %v5374_v14 = vld [vmem:[%s7327_s1 + $0xbc4] ss:$16 sps:$4 sm:$0xff]   ;;  %v5377_v15 = vld [vmem:[%s7327_s1 + $0xbcc] ss:$16 sps:$4 sm:$0xff]  }
 0x13f   :  { %3342 = vmatpush1.bf16.msra.mxu0 %v5282_v16  ;;  %3670 = vmatpush1.bf16.msra.mxu1 %v5285_v17  ;;  %v5372_v16 = vld [vmem:[%s7327_s1 + $0xbc0] ss:$16 sps:$4 sm:$0xff]   ;;  %v5375_v17 = vld [vmem:[%s7327_s1 + $0xbc8] ss:$16 sps:$4 sm:$0xff]  }
 0x140   :  { %3352 = vmatprep.subr.bf16.mxu0 %v5290_v18  ;;  %3680 = vmatprep.subr.bf16.mxu1 %v5293_v20  ;;  %v5380_v18 = vld [vmem:[%s7327_s1 + $0xbe4] ss:$16 sps:$4 sm:$0xff]   ;;  %v5378_v20 = vld [vmem:[%s7327_s1 + $0xbe0] ss:$16 sps:$4 sm:$0xff]  }
 0x142   :  { %3344 = vmatmul.mubr.bf16.vlgmr.msra.gmra.mrb[0].mxu0 %v45_v22  ;;  %3672 = vmatmul.mubr.bf16.vlgmr.msra.gmra.mrb[0].mxu1 %v45_v22  ;;  %v31_v22 = vld [vmem:[%s7328_s0 + $0x50] sm:$0xff] }
 0x143   :  { %3353 = vmatpush1.bf16.msra.mxu0 %v5288_v23  ;;  %3681 = vmatpush1.bf16.msra.mxu1 %v5291_v24  ;;  %v5386_v23 = vld [vmem:[%s7327_s1 + $0xc04] ss:$16 sps:$4 sm:$0xff]   ;;  %v5389_v24 = vld [vmem:[%s7327_s1 + $0xc0c] ss:$16 sps:$4 sm:$0xff]  }
 0x144   :  { %3354 = vmatprep.subr.bf16.mxu0 %v5296_v25  ;;  %3682 = vmatprep.subr.bf16.mxu1 %v5299_v26  ;;  %v47_v25 = vpack.c.bf16 %v31_v22, %v31_v22  ;;  %v34_v26 = vld [vmem:[%s7328_s0 + $0x68] sm:$0xff]  ;;  %v5476_v22 = vld [vmem:[%s7327_s1 + $0xde4] ss:$16 sps:$4 sm:$0xff]  }
 0x145   :  { %3384 = vmatprep.mubr.bf16.mxu0 %v48_v27  ;;  %3712 = vmatprep.mubr.bf16.mxu1 %v48_v27  ;;  %v5384_v27 = vld [vmem:[%s7327_s1 + $0xc00] ss:$16 sps:$4 sm:$0xff]  }
 0x147   :  { %3355 = vmatpush1.bf16.msra.mxu0 %v5294_v28  ;;  %3683 = vmatpush1.bf16.msra.mxu1 %v5297_v29  ;;  %v5387_v28 = vld [vmem:[%s7327_s1 + $0xc08] ss:$16 sps:$4 sm:$0xff]   ;;  %v5392_v29 = vld [vmem:[%s7327_s1 + $0xc24] ss:$16 sps:$4 sm:$0xff]  }
 0x148   :  { %3356 = vmatprep.subr.bf16.mxu0 %v5302_v30  ;;  %3684 = vmatprep.subr.bf16.mxu1 %v5305_v31  ;;  %v5395_v30 = vld [vmem:[%s7327_s1 + $0xc2c] ss:$16 sps:$4 sm:$0xff]   ;;  %v50_v31 = vpack.c.bf16 %v34_v26, %v34_v26  ;;  %v33_v26 = vld [vmem:[%s7328_s0 + $0x60] sm:$0xff] }
 0x14b   :  { %3357 = vmatpush1.bf16.msra.mxu0 %v5300_v32  ;;  %3685 = vmatpush1.bf16.msra.mxu1 %v5303_v33  ;;  %v5390_v32 = vld [vmem:[%s7327_s1 + $0xc20] ss:$16 sps:$4 sm:$0xff]   ;;  %v5393_v33 = vld [vmem:[%s7327_s1 + $0xc28] ss:$16 sps:$4 sm:$0xff]  }
 0x14c   :  { %3358 = vmatprep.subr.bf16.mxu0 %v5308_v34  ;;  %3686 = vmatprep.subr.bf16.mxu1 %v5311_v35  ;;  %v5398_v34 = vld [vmem:[%s7327_s1 + $0xc44] ss:$16 sps:$4 sm:$0xff]   ;;  %v5401_v35 = vld [vmem:[%s7327_s1 + $0xc4c] ss:$16 sps:$4 sm:$0xff]  }
 0x14f   :  { %3359 = vmatpush1.bf16.msra.mxu0 %v5306_v36  ;;  %3687 = vmatpush1.bf16.msra.mxu1 %v5309_v37  ;;  %v5396_v36 = vld [vmem:[%s7327_s1 + $0xc40] ss:$16 sps:$4 sm:$0xff]   ;;  %v5399_v37 = vld [vmem:[%s7327_s1 + $0xc48] ss:$16 sps:$4 sm:$0xff]  }
 0x150   :  { %3360 = vmatprep.subr.bf16.mxu0 %v5314_v38  ;;  %3688 = vmatprep.subr.bf16.mxu1 %v5317_v39  ;;  %v5404_v38 = vld [vmem:[%s7327_s1 + $0xc64] ss:$16 sps:$4 sm:$0xff]   ;;  %v5407_v39 = vld [vmem:[%s7327_s1 + $0xc6c] ss:$16 sps:$4 sm:$0xff]  }
 0x153   :  { %3361 = vmatpush1.bf16.msra.mxu0 %v5312_v40  ;;  %3689 = vmatpush1.bf16.msra.mxu1 %v5315_v41  ;;  %v5402_v40 = vld [vmem:[%s7327_s1 + $0xc60] ss:$16 sps:$4 sm:$0xff]   ;;  %v5405_v41 = vld [vmem:[%s7327_s1 + $0xc68] ss:$16 sps:$4 sm:$0xff]  }
 0x154   :  { %3362 = vmatprep.subr.bf16.mxu0 %v5320_v42  ;;  %3690 = vmatprep.subr.bf16.mxu1 %v5323_v43  ;;  %v5410_v42 = vld [vmem:[%s7327_s1 + $0xc84] ss:$16 sps:$4 sm:$0xff]   ;;  %v5413_v43 = vld [vmem:[%s7327_s1 + $0xc8c] ss:$16 sps:$4 sm:$0xff]  }
 0x157   :  { %3363 = vmatpush1.bf16.msra.mxu0 %v5318_v44  ;;  %3691 = vmatpush1.bf16.msra.mxu1 %v5321_v45  ;;  %v5408_v44 = vld [vmem:[%s7327_s1 + $0xc80] ss:$16 sps:$4 sm:$0xff]   ;;  %v5411_v45 = vld [vmem:[%s7327_s1 + $0xc88] ss:$16 sps:$4 sm:$0xff]  }
 0x158   :  { %3364 = vmatprep.subr.bf16.mxu0 %v5326_v46  ;;  %3692 = vmatprep.subr.bf16.mxu1 %v5329_v47  ;;  %v5416_v46 = vld [vmem:[%s7327_s1 + $0xca4] ss:$16 sps:$4 sm:$0xff]   ;;  %v5419_v47 = vld [vmem:[%s7327_s1 + $0xcac] ss:$16 sps:$4 sm:$0xff]  }
 0x15b   :  { %3365 = vmatpush1.bf16.msra.mxu0 %v5324_v48  ;;  %3693 = vmatpush1.bf16.msra.mxu1 %v5327_v49  ;;  %v5414_v48 = vld [vmem:[%s7327_s1 + $0xca0] ss:$16 sps:$4 sm:$0xff]   ;;  %v5417_v49 = vld [vmem:[%s7327_s1 + $0xca8] ss:$16 sps:$4 sm:$0xff]  }
 0x15c   :  { %3366 = vmatprep.subr.bf16.mxu0 %v5332_v50  ;;  %3694 = vmatprep.subr.bf16.mxu1 %v5335_v51  ;;  %v5422_v50 = vld [vmem:[%s7327_s1 + $0xcc4] ss:$16 sps:$4 sm:$0xff]   ;;  %v5425_v51 = vld [vmem:[%s7327_s1 + $0xccc] ss:$16 sps:$4 sm:$0xff]  }
 0x15f   :  { %3367 = vmatpush1.bf16.msra.mxu0 %v5330_v52  ;;  %3695 = vmatpush1.bf16.msra.mxu1 %v5333_v53  ;;  %v5420_v52 = vld [vmem:[%s7327_s1 + $0xcc0] ss:$16 sps:$4 sm:$0xff]   ;;  %v5423_v53 = vld [vmem:[%s7327_s1 + $0xcc8] ss:$16 sps:$4 sm:$0xff]  }
 0x160   :  { %3368 = vmatprep.subr.bf16.mxu0 %v5338_v54  ;;  %3696 = vmatprep.subr.bf16.mxu1 %v5341_v55  ;;  %v5428_v54 = vld [vmem:[%s7327_s1 + $0xce4] ss:$16 sps:$4 sm:$0xff]   ;;  %v5431_v55 = vld [vmem:[%s7327_s1 + $0xcec] ss:$16 sps:$4 sm:$0xff]  }
 0x163   :  { %3369 = vmatpush1.bf16.msra.mxu0 %v5336_v56  ;;  %3697 = vmatpush1.bf16.msra.mxu1 %v5339_v57  ;;  %v5426_v56 = vld [vmem:[%s7327_s1 + $0xce0] ss:$16 sps:$4 sm:$0xff]   ;;  %v5429_v57 = vld [vmem:[%s7327_s1 + $0xce8] ss:$16 sps:$4 sm:$0xff]  }
 0x164   :  { %3370 = vmatprep.subr.bf16.mxu0 %v5344_v58  ;;  %3698 = vmatprep.subr.bf16.mxu1 %v5347_v59  ;;  %v5434_v58 = vld [vmem:[%s7327_s1 + $0xd04] ss:$16 sps:$4 sm:$0xff]   ;;  %v5437_v59 = vld [vmem:[%s7327_s1 + $0xd0c] ss:$16 sps:$4 sm:$0xff]  }
 0x167   :  { %3371 = vmatpush1.bf16.msra.mxu0 %v5342_v60  ;;  %3699 = vmatpush1.bf16.msra.mxu1 %v5345_v61  ;;  %v5432_v60 = vld [vmem:[%s7327_s1 + $0xd00] ss:$16 sps:$4 sm:$0xff]   ;;  %v5435_v61 = vld [vmem:[%s7327_s1 + $0xd08] ss:$16 sps:$4 sm:$0xff]  }
 0x168   :  { %3372 = vmatprep.subr.bf16.mxu0 %v5350_v62  ;;  %3700 = vmatprep.subr.bf16.mxu1 %v5353_v63  ;;  %v5440_v62 = vld [vmem:[%s7327_s1 + $0xd24] ss:$16 sps:$4 sm:$0xff]   ;;  %v5443_v63 = vld [vmem:[%s7327_s1 + $0xd2c] ss:$16 sps:$4 sm:$0xff]  }
 0x16b   :  { %3373 = vmatpush1.bf16.msra.mxu0 %v5348_v0  ;;  %3701 = vmatpush1.bf16.msra.mxu1 %v5351_v1  ;;  %v5438_v0 = vld [vmem:[%s7327_s1 + $0xd20] ss:$16 sps:$4 sm:$0xff]   ;;  %v5441_v1 = vld [vmem:[%s7327_s1 + $0xd28] ss:$16 sps:$4 sm:$0xff]  }
 0x16c   :  { %3374 = vmatprep.subr.bf16.mxu0 %v5356_v2  ;;  %3702 = vmatprep.subr.bf16.mxu1 %v5359_v3  ;;  %v5446_v2 = vld [vmem:[%s7327_s1 + $0xd44] ss:$16 sps:$4 sm:$0xff]   ;;  %v5449_v3 = vld [vmem:[%s7327_s1 + $0xd4c] ss:$16 sps:$4 sm:$0xff]  }
 0x16f   :  { %3375 = vmatpush1.bf16.msra.mxu0 %v5354_v4  ;;  %3703 = vmatpush1.bf16.msra.mxu1 %v5357_v5  ;;  %v5444_v4 = vld [vmem:[%s7327_s1 + $0xd40] ss:$16 sps:$4 sm:$0xff]   ;;  %v5447_v5 = vld [vmem:[%s7327_s1 + $0xd48] ss:$16 sps:$4 sm:$0xff]  }
 0x170   :  { %3376 = vmatprep.subr.bf16.mxu0 %v5362_v6  ;;  %3704 = vmatprep.subr.bf16.mxu1 %v5365_v7  ;;  %v5452_v6 = vld [vmem:[%s7327_s1 + $0xd64] ss:$16 sps:$4 sm:$0xff]   ;;  %v5455_v7 = vld [vmem:[%s7327_s1 + $0xd6c] ss:$16 sps:$4 sm:$0xff]  }
 0x173   :  { %3377 = vmatpush1.bf16.msra.mxu0 %v5360_v8  ;;  %3705 = vmatpush1.bf16.msra.mxu1 %v5363_v9  ;;  %v5450_v8 = vld [vmem:[%s7327_s1 + $0xd60] ss:$16 sps:$4 sm:$0xff]   ;;  %v5453_v9 = vld [vmem:[%s7327_s1 + $0xd68] ss:$16 sps:$4 sm:$0xff]  }
 0x174   :  { %3378 = vmatprep.subr.bf16.mxu0 %v5368_v10  ;;  %3706 = vmatprep.subr.bf16.mxu1 %v5371_v11  ;;  %v5458_v10 = vld [vmem:[%s7327_s1 + $0xd84] ss:$16 sps:$4 sm:$0xff]   ;;  %v5461_v11 = vld [vmem:[%s7327_s1 + $0xd8c] ss:$16 sps:$4 sm:$0xff]  }
 0x177   :  { %3379 = vmatpush1.bf16.msra.mxu0 %v5366_v12  ;;  %3707 = vmatpush1.bf16.msra.mxu1 %v5369_v13  ;;  %v5456_v12 = vld [vmem:[%s7327_s1 + $0xd80] ss:$16 sps:$4 sm:$0xff]   ;;  %v5459_v13 = vld [vmem:[%s7327_s1 + $0xd88] ss:$16 sps:$4 sm:$0xff]  }
 0x178   :  { %3380 = vmatprep.subr.bf16.mxu0 %v5374_v14  ;;  %3708 = vmatprep.subr.bf16.mxu1 %v5377_v15  ;;  %v5464_v14 = vld [vmem:[%s7327_s1 + $0xda4] ss:$16 sps:$4 sm:$0xff]   ;;  %v5467_v15 = vld [vmem:[%s7327_s1 + $0xdac] ss:$16 sps:$4 sm:$0xff]  }
 0x17b   :  { %3381 = vmatpush1.bf16.msra.mxu0 %v5372_v16  ;;  %3709 = vmatpush1.bf16.msra.mxu1 %v5375_v17  ;;  %v5462_v16 = vld [vmem:[%s7327_s1 + $0xda0] ss:$16 sps:$4 sm:$0xff]   ;;  %v5465_v17 = vld [vmem:[%s7327_s1 + $0xda8] ss:$16 sps:$4 sm:$0xff]  }
 0x17c   :  { %3382 = vmatprep.subr.bf16.mxu0 %v5380_v18  ;;  %3710 = vmatprep.subr.bf16.mxu1 %v5383_v19  ;;  %v5470_v18 = vld [vmem:[%s7327_s1 + $0xdc4] ss:$16 sps:$4 sm:$0xff]   ;;  %v5473_v19 = vld [vmem:[%s7327_s1 + $0xdcc] ss:$16 sps:$4 sm:$0xff]  }
 0x17f   :  { %3383 = vmatpush1.bf16.msra.mxu0 %v5378_v20  ;;  %3711 = vmatpush1.bf16.msra.mxu1 %v5381_v21  ;;  %v5468_v20 = vld [vmem:[%s7327_s1 + $0xdc0] ss:$16 sps:$4 sm:$0xff]   ;;  %v5471_v21 = vld [vmem:[%s7327_s1 + $0xdc8] ss:$16 sps:$4 sm:$0xff]  }
 0x180   :  { %3393 = vmatprep.subr.bf16.mxu0 %v5386_v23  ;;  %3721 = vmatprep.subr.bf16.mxu1 %v5389_v24  ;;  %v5479_v23 = vld [vmem:[%s7327_s1 + $0xdec] ss:$16 sps:$4 sm:$0xff]   ;;  %v5474_v24 = vld [vmem:[%s7327_s1 + $0xde0] ss:$16 sps:$4 sm:$0xff]  }
 0x182   :  { %3385 = vmatmul.mubr.bf16.vlgmr.msra.gmra.mrb[0].mxu0 %v47_v25  ;;  %3713 = vmatmul.mubr.bf16.vlgmr.msra.gmra.mrb[0].mxu1 %v47_v25  ;;  %v5477_v25 = vld [vmem:[%s7327_s1 + $0xde8] ss:$16 sps:$4 sm:$0xff]  }
 0x183   :  { %3394 = vmatpush1.bf16.msra.mxu0 %v5384_v27  ;;  %3722 = vmatpush1.bf16.msra.mxu1 %v5387_v28  ;;  %v5482_v27 = vld [vmem:[%s7327_s1 + $0xe04] ss:$16 sps:$4 sm:$0xff]   ;;  %v5485_v28 = vld [vmem:[%s7327_s1 + $0xe0c] ss:$16 sps:$4 sm:$0xff]  }
 0x184   :  { %3395 = vmatprep.subr.bf16.mxu0 %v5392_v29  ;;  %3723 = vmatprep.subr.bf16.mxu1 %v5395_v30  ;;  %v49_v29 = vpack.c.bf16 %v33_v26, %v33_v26  ;;  %v36_v30 = vld [vmem:[%s7328_s0 + $0x78] sm:$0xff]  ;;  %v5572_v26 = vld [vmem:[%s7327_s1 + $0xfe4] ss:$16 sps:$4 sm:$0xff]  }
 0x185   :  { %3425 = vmatprep.mubr.bf16.mxu0 %v50_v31  ;;  %3753 = vmatprep.mubr.bf16.mxu1 %v50_v31  ;;  %v5480_v31 = vld [vmem:[%s7327_s1 + $0xe00] ss:$16 sps:$4 sm:$0xff]  }
 0x187   :  { %3396 = vmatpush1.bf16.msra.mxu0 %v5390_v32  ;;  %3724 = vmatpush1.bf16.msra.mxu1 %v5393_v33  ;;  %v5483_v32 = vld [vmem:[%s7327_s1 + $0xe08] ss:$16 sps:$4 sm:$0xff]   ;;  %v5488_v33 = vld [vmem:[%s7327_s1 + $0xe24] ss:$16 sps:$4 sm:$0xff]  }
 0x188   :  { %3397 = vmatprep.subr.bf16.mxu0 %v5398_v34  ;;  %3725 = vmatprep.subr.bf16.mxu1 %v5401_v35  ;;  %v5491_v34 = vld [vmem:[%s7327_s1 + $0xe2c] ss:$16 sps:$4 sm:$0xff]   ;;  %v52_v35 = vpack.c.bf16 %v36_v30, %v36_v30  ;;  %v35_v30 = vld [vmem:[%s7328_s0 + $0x70] sm:$0xff] }
 0x18b   :  { %3398 = vmatpush1.bf16.msra.mxu0 %v5396_v36  ;;  %3726 = vmatpush1.bf16.msra.mxu1 %v5399_v37  ;;  %v5486_v36 = vld [vmem:[%s7327_s1 + $0xe20] ss:$16 sps:$4 sm:$0xff]   ;;  %v5489_v37 = vld [vmem:[%s7327_s1 + $0xe28] ss:$16 sps:$4 sm:$0xff]  }
 0x18c   :  { %3399 = vmatprep.subr.bf16.mxu0 %v5404_v38  ;;  %3727 = vmatprep.subr.bf16.mxu1 %v5407_v39  ;;  %v5494_v38 = vld [vmem:[%s7327_s1 + $0xe44] ss:$16 sps:$4 sm:$0xff]   ;;  %v5497_v39 = vld [vmem:[%s7327_s1 + $0xe4c] ss:$16 sps:$4 sm:$0xff]  }
 0x18f   :  { %3400 = vmatpush1.bf16.msra.mxu0 %v5402_v40  ;;  %3728 = vmatpush1.bf16.msra.mxu1 %v5405_v41  ;;  %v5492_v40 = vld [vmem:[%s7327_s1 + $0xe40] ss:$16 sps:$4 sm:$0xff]   ;;  %v5495_v41 = vld [vmem:[%s7327_s1 + $0xe48] ss:$16 sps:$4 sm:$0xff]  }
 0x190   :  { %3401 = vmatprep.subr.bf16.mxu0 %v5410_v42  ;;  %3729 = vmatprep.subr.bf16.mxu1 %v5413_v43  ;;  %v5500_v42 = vld [vmem:[%s7327_s1 + $0xe64] ss:$16 sps:$4 sm:$0xff]   ;;  %v5503_v43 = vld [vmem:[%s7327_s1 + $0xe6c] ss:$16 sps:$4 sm:$0xff]  }
 0x193   :  { %3402 = vmatpush1.bf16.msra.mxu0 %v5408_v44  ;;  %3730 = vmatpush1.bf16.msra.mxu1 %v5411_v45  ;;  %v5498_v44 = vld [vmem:[%s7327_s1 + $0xe60] ss:$16 sps:$4 sm:$0xff]   ;;  %v5501_v45 = vld [vmem:[%s7327_s1 + $0xe68] ss:$16 sps:$4 sm:$0xff]  }
 0x194   :  { %3403 = vmatprep.subr.bf16.mxu0 %v5416_v46  ;;  %3731 = vmatprep.subr.bf16.mxu1 %v5419_v47  ;;  %v5506_v46 = vld [vmem:[%s7327_s1 + $0xe84] ss:$16 sps:$4 sm:$0xff]   ;;  %v5509_v47 = vld [vmem:[%s7327_s1 + $0xe8c] ss:$16 sps:$4 sm:$0xff]  }
 0x197   :  { %3404 = vmatpush1.bf16.msra.mxu0 %v5414_v48  ;;  %3732 = vmatpush1.bf16.msra.mxu1 %v5417_v49  ;;  %v5504_v48 = vld [vmem:[%s7327_s1 + $0xe80] ss:$16 sps:$4 sm:$0xff]   ;;  %v5507_v49 = vld [vmem:[%s7327_s1 + $0xe88] ss:$16 sps:$4 sm:$0xff]  }
 0x198   :  { %3405 = vmatprep.subr.bf16.mxu0 %v5422_v50  ;;  %3733 = vmatprep.subr.bf16.mxu1 %v5425_v51  ;;  %v5512_v50 = vld [vmem:[%s7327_s1 + $0xea4] ss:$16 sps:$4 sm:$0xff]   ;;  %v5515_v51 = vld [vmem:[%s7327_s1 + $0xeac] ss:$16 sps:$4 sm:$0xff]  }
 0x19b   :  { %3406 = vmatpush1.bf16.msra.mxu0 %v5420_v52  ;;  %3734 = vmatpush1.bf16.msra.mxu1 %v5423_v53  ;;  %v5510_v52 = vld [vmem:[%s7327_s1 + $0xea0] ss:$16 sps:$4 sm:$0xff]   ;;  %v5513_v53 = vld [vmem:[%s7327_s1 + $0xea8] ss:$16 sps:$4 sm:$0xff]  }
 0x19c   :  { %3407 = vmatprep.subr.bf16.mxu0 %v5428_v54  ;;  %3735 = vmatprep.subr.bf16.mxu1 %v5431_v55  ;;  %v5518_v54 = vld [vmem:[%s7327_s1 + $0xec4] ss:$16 sps:$4 sm:$0xff]   ;;  %v5521_v55 = vld [vmem:[%s7327_s1 + $0xecc] ss:$16 sps:$4 sm:$0xff]  }
 0x19f   :  { %3408 = vmatpush1.bf16.msra.mxu0 %v5426_v56  ;;  %3736 = vmatpush1.bf16.msra.mxu1 %v5429_v57  ;;  %v5516_v56 = vld [vmem:[%s7327_s1 + $0xec0] ss:$16 sps:$4 sm:$0xff]   ;;  %v5519_v57 = vld [vmem:[%s7327_s1 + $0xec8] ss:$16 sps:$4 sm:$0xff]  }
 0x1a0   :  { %3409 = vmatprep.subr.bf16.mxu0 %v5434_v58  ;;  %3737 = vmatprep.subr.bf16.mxu1 %v5437_v59  ;;  %v5524_v58 = vld [vmem:[%s7327_s1 + $0xee4] ss:$16 sps:$4 sm:$0xff]   ;;  %v5527_v59 = vld [vmem:[%s7327_s1 + $0xeec] ss:$16 sps:$4 sm:$0xff]  }
 0x1a3   :  { %3410 = vmatpush1.bf16.msra.mxu0 %v5432_v60  ;;  %3738 = vmatpush1.bf16.msra.mxu1 %v5435_v61  ;;  %v5522_v60 = vld [vmem:[%s7327_s1 + $0xee0] ss:$16 sps:$4 sm:$0xff]   ;;  %v5525_v61 = vld [vmem:[%s7327_s1 + $0xee8] ss:$16 sps:$4 sm:$0xff]  }
 0x1a4   :  { %3411 = vmatprep.subr.bf16.mxu0 %v5440_v62  ;;  %3739 = vmatprep.subr.bf16.mxu1 %v5443_v63  ;;  %v5530_v62 = vld [vmem:[%s7327_s1 + $0xf04] ss:$16 sps:$4 sm:$0xff]   ;;  %v5533_v63 = vld [vmem:[%s7327_s1 + $0xf0c] ss:$16 sps:$4 sm:$0xff]  }
 0x1a7   :  { %3412 = vmatpush1.bf16.msra.mxu0 %v5438_v0  ;;  %3740 = vmatpush1.bf16.msra.mxu1 %v5441_v1  ;;  %v5528_v0 = vld [vmem:[%s7327_s1 + $0xf00] ss:$16 sps:$4 sm:$0xff]   ;;  %v5531_v1 = vld [vmem:[%s7327_s1 + $0xf08] ss:$16 sps:$4 sm:$0xff]  }
 0x1a8   :  { %3413 = vmatprep.subr.bf16.mxu0 %v5446_v2  ;;  %3741 = vmatprep.subr.bf16.mxu1 %v5449_v3  ;;  %v5536_v2 = vld [vmem:[%s7327_s1 + $0xf24] ss:$16 sps:$4 sm:$0xff]   ;;  %v5539_v3 = vld [vmem:[%s7327_s1 + $0xf2c] ss:$16 sps:$4 sm:$0xff]  }
 0x1ab   :  { %3414 = vmatpush1.bf16.msra.mxu0 %v5444_v4  ;;  %3742 = vmatpush1.bf16.msra.mxu1 %v5447_v5  ;;  %v5534_v4 = vld [vmem:[%s7327_s1 + $0xf20] ss:$16 sps:$4 sm:$0xff]   ;;  %v5537_v5 = vld [vmem:[%s7327_s1 + $0xf28] ss:$16 sps:$4 sm:$0xff]  }
 0x1ac   :  { %3415 = vmatprep.subr.bf16.mxu0 %v5452_v6  ;;  %3743 = vmatprep.subr.bf16.mxu1 %v5455_v7  ;;  %v5542_v6 = vld [vmem:[%s7327_s1 + $0xf44] ss:$16 sps:$4 sm:$0xff]   ;;  %v5545_v7 = vld [vmem:[%s7327_s1 + $0xf4c] ss:$16 sps:$4 sm:$0xff]  }
 0x1af   :  { %3416 = vmatpush1.bf16.msra.mxu0 %v5450_v8  ;;  %3744 = vmatpush1.bf16.msra.mxu1 %v5453_v9  ;;  %v5540_v8 = vld [vmem:[%s7327_s1 + $0xf40] ss:$16 sps:$4 sm:$0xff]   ;;  %v5543_v9 = vld [vmem:[%s7327_s1 + $0xf48] ss:$16 sps:$4 sm:$0xff]  }
 0x1b0   :  { %3417 = vmatprep.subr.bf16.mxu0 %v5458_v10  ;;  %3745 = vmatprep.subr.bf16.mxu1 %v5461_v11  ;;  %v5548_v10 = vld [vmem:[%s7327_s1 + $0xf64] ss:$16 sps:$4 sm:$0xff]   ;;  %v5551_v11 = vld [vmem:[%s7327_s1 + $0xf6c] ss:$16 sps:$4 sm:$0xff]  }
 0x1b3   :  { %3418 = vmatpush1.bf16.msra.mxu0 %v5456_v12  ;;  %3746 = vmatpush1.bf16.msra.mxu1 %v5459_v13  ;;  %v5546_v12 = vld [vmem:[%s7327_s1 + $0xf60] ss:$16 sps:$4 sm:$0xff]   ;;  %v5549_v13 = vld [vmem:[%s7327_s1 + $0xf68] ss:$16 sps:$4 sm:$0xff]  }
 0x1b4   :  { %3419 = vmatprep.subr.bf16.mxu0 %v5464_v14  ;;  %3747 = vmatprep.subr.bf16.mxu1 %v5467_v15  ;;  %v5554_v14 = vld [vmem:[%s7327_s1 + $0xf84] ss:$16 sps:$4 sm:$0xff]   ;;  %v5557_v15 = vld [vmem:[%s7327_s1 + $0xf8c] ss:$16 sps:$4 sm:$0xff]  }
 0x1b7   :  { %3420 = vmatpush1.bf16.msra.mxu0 %v5462_v16  ;;  %3748 = vmatpush1.bf16.msra.mxu1 %v5465_v17  ;;  %v5552_v16 = vld [vmem:[%s7327_s1 + $0xf80] ss:$16 sps:$4 sm:$0xff]   ;;  %v5555_v17 = vld [vmem:[%s7327_s1 + $0xf88] ss:$16 sps:$4 sm:$0xff]  }
 0x1b8   :  { %3421 = vmatprep.subr.bf16.mxu0 %v5470_v18  ;;  %3749 = vmatprep.subr.bf16.mxu1 %v5473_v19  ;;  %v5560_v18 = vld [vmem:[%s7327_s1 + $0xfa4] ss:$16 sps:$4 sm:$0xff]   ;;  %v5563_v19 = vld [vmem:[%s7327_s1 + $0xfac] ss:$16 sps:$4 sm:$0xff]  }
 0x1bb   :  { %3422 = vmatpush1.bf16.msra.mxu0 %v5468_v20  ;;  %3750 = vmatpush1.bf16.msra.mxu1 %v5471_v21  ;;  %v5558_v20 = vld [vmem:[%s7327_s1 + $0xfa0] ss:$16 sps:$4 sm:$0xff]   ;;  %v5561_v21 = vld [vmem:[%s7327_s1 + $0xfa8] ss:$16 sps:$4 sm:$0xff]  }
 0x1bc   :  { %3423 = vmatprep.subr.bf16.mxu0 %v5476_v22  ;;  %3751 = vmatprep.subr.bf16.mxu1 %v5479_v23  ;;  %v5566_v22 = vld [vmem:[%s7327_s1 + $0xfc4] ss:$16 sps:$4 sm:$0xff]   ;;  %v5569_v23 = vld [vmem:[%s7327_s1 + $0xfcc] ss:$16 sps:$4 sm:$0xff]  }
 0x1bf   :  { %3424 = vmatpush1.bf16.msra.mxu0 %v5474_v24  ;;  %3752 = vmatpush1.bf16.msra.mxu1 %v5477_v25  ;;  %v5564_v24 = vld [vmem:[%s7327_s1 + $0xfc0] ss:$16 sps:$4 sm:$0xff]   ;;  %v5567_v25 = vld [vmem:[%s7327_s1 + $0xfc8] ss:$16 sps:$4 sm:$0xff]  }
 0x1c0   :  { %3434 = vmatprep.subr.bf16.mxu0 %v5482_v27  ;;  %3762 = vmatprep.subr.bf16.mxu1 %v5485_v28  ;;  %v5575_v27 = vld [vmem:[%s7327_s1 + $0xfec] ss:$16 sps:$4 sm:$0xff]   ;;  %v5570_v28 = vld [vmem:[%s7327_s1 + $0xfe0] ss:$16 sps:$4 sm:$0xff]  }
 0x1c2   :  { %3426 = vmatmul.mubr.bf16.vlgmr.msra.gmra.mrb[0].mxu0 %v49_v29  ;;  %3754 = vmatmul.mubr.bf16.vlgmr.msra.gmra.mrb[0].mxu1 %v49_v29  ;;  %v5573_v29 = vld [vmem:[%s7327_s1 + $0xfe8] ss:$16 sps:$4 sm:$0xff]  }
 0x1c3   :  { %3435 = vmatpush1.bf16.msra.mxu0 %v5480_v31  ;;  %3763 = vmatpush1.bf16.msra.mxu1 %v5483_v32  ;;  %v5576_v31 = vld [vmem:[%s7329_s3 + $0x40] sm:$0xff]  }
 0x1c4   :  { %3436 = vmatprep.subr.bf16.mxu0 %v5488_v33  ;;  %3764 = vmatprep.subr.bf16.mxu1 %v5491_v34  ;;  %v5577_v32 = vld [vmem:[%s7329_s3 + $0xc0] sm:$0xff]   ;;  %v51_v33 = vpack.c.bf16 %v35_v30, %v35_v30 }
 0x1c5   :  { %3466 = vmatprep.mubr.bf16.mxu0 %v52_v35  ;;  %3794 = vmatprep.mubr.bf16.mxu1 %v52_v35  ;;  %v5578_v34 = vld [vmem:[%s7329_s3] sm:$0xff]  }
 0x1c6   :  { %v5579_v35 = vld [vmem:[%s7329_s3 + $0x80] sm:$0xff]  }
 0x1c7   :  { %3437 = vmatpush1.bf16.msra.mxu0 %v5486_v36  ;;  %3765 = vmatpush1.bf16.msra.mxu1 %v5489_v37  ;;  %v5580_v36 = vld [vmem:[%s7329_s3 + $0x48] sm:$0xff]  }
 0x1c8   :  { %3438 = vmatprep.subr.bf16.mxu0 %v5494_v38  ;;  %3766 = vmatprep.subr.bf16.mxu1 %v5497_v39  ;;  %v5581_v37 = vld [vmem:[%s7329_s3 + $0xc8] sm:$0xff]  }
 0x1c9   :  { %v5582_v38 = vld [vmem:[%s7329_s3 + $0x8] sm:$0xff]  }
 0x1ca   :  { %v5583_v39 = vld [vmem:[%s7329_s3 + $0x88] sm:$0xff]  }
 0x1cb   :  { %3439 = vmatpush1.bf16.msra.mxu0 %v5492_v40  ;;  %3767 = vmatpush1.bf16.msra.mxu1 %v5495_v41  ;;  %v5584_v40 = vld [vmem:[%s7329_s3 + $0x50] sm:$0xff]  }
 0x1cc   :  { %3440 = vmatprep.subr.bf16.mxu0 %v5500_v42  ;;  %3768 = vmatprep.subr.bf16.mxu1 %v5503_v43  ;;  %v5585_v41 = vld [vmem:[%s7329_s3 + $0xd0] sm:$0xff]  }
 0x1cd   :  { %v5586_v42 = vld [vmem:[%s7329_s3 + $0x10] sm:$0xff]  }
 0x1ce   :  { %v5587_v43 = vld [vmem:[%s7329_s3 + $0x90] sm:$0xff]  }
 0x1cf   :  { %3441 = vmatpush1.bf16.msra.mxu0 %v5498_v44  ;;  %3769 = vmatpush1.bf16.msra.mxu1 %v5501_v45  ;;  %v5588_v44 = vld [vmem:[%s7329_s3 + $0x58] sm:$0xff]  }
 0x1d0   :  { %3442 = vmatprep.subr.bf16.mxu0 %v5506_v46  ;;  %3770 = vmatprep.subr.bf16.mxu1 %v5509_v47  ;;  %v5589_v45 = vld [vmem:[%s7329_s3 + $0xd8] sm:$0xff]  }
 0x1d1   :  { %v5590_v46 = vld [vmem:[%s7329_s3 + $0x18] sm:$0xff]  }
 0x1d2   :  { %v5591_v47 = vld [vmem:[%s7329_s3 + $0x98] sm:$0xff]  }
 0x1d3   :  { %3443 = vmatpush1.bf16.msra.mxu0 %v5504_v48  ;;  %3771 = vmatpush1.bf16.msra.mxu1 %v5507_v49  ;;  %v5592_v48 = vld [vmem:[%s7329_s3 + $0x60] sm:$0xff]  }
 0x1d4   :  { %3444 = vmatprep.subr.bf16.mxu0 %v5512_v50  ;;  %3772 = vmatprep.subr.bf16.mxu1 %v5515_v51  ;;  %v5593_v49 = vld [vmem:[%s7329_s3 + $0xe0] sm:$0xff]  }
 0x1d5   :  { %v5594_v50 = vld [vmem:[%s7329_s3 + $0x20] sm:$0xff]  }
 0x1d6   :  { %v5595_v51 = vld [vmem:[%s7329_s3 + $0xa0] sm:$0xff]  }
 0x1d7   :  { %3445 = vmatpush1.bf16.msra.mxu0 %v5510_v52  ;;  %3773 = vmatpush1.bf16.msra.mxu1 %v5513_v53  ;;  %v5596_v52 = vld [vmem:[%s7329_s3 + $0x68] sm:$0xff]  }
 0x1d8   :  { %3446 = vmatprep.subr.bf16.mxu0 %v5518_v54  ;;  %3774 = vmatprep.subr.bf16.mxu1 %v5521_v55  ;;  %v5597_v53 = vld [vmem:[%s7329_s3 + $0xe8] sm:$0xff]  }
 0x1d9   :  { %v5598_v54 = vld [vmem:[%s7329_s3 + $0x28] sm:$0xff]  }
 0x1da   :  { %v5599_v55 = vld [vmem:[%s7329_s3 + $0xa8] sm:$0xff]  }
 0x1db   :  { %3447 = vmatpush1.bf16.msra.mxu0 %v5516_v56  ;;  %3775 = vmatpush1.bf16.msra.mxu1 %v5519_v57  ;;  %v5600_v56 = vld [vmem:[%s7329_s3 + $0x70] sm:$0xff]  }
 0x1dc   :  { %3448 = vmatprep.subr.bf16.mxu0 %v5524_v58  ;;  %3776 = vmatprep.subr.bf16.mxu1 %v5527_v59  ;;  %v5601_v57 = vld [vmem:[%s7329_s3 + $0xf0] sm:$0xff]  }
 0x1dd   :  { %v5602_v58 = vld [vmem:[%s7329_s3 + $0x30] sm:$0xff]  }
 0x1de   :  { %v5603_v59 = vld [vmem:[%s7329_s3 + $0xb0] sm:$0xff]  }
 0x1df   :  { %3449 = vmatpush1.bf16.msra.mxu0 %v5522_v60  ;;  %3777 = vmatpush1.bf16.msra.mxu1 %v5525_v61  ;;  %v5604_v60 = vld [vmem:[%s7329_s3 + $0x78] sm:$0xff]  }
 0x1e0   :  { %3450 = vmatprep.subr.bf16.mxu0 %v5530_v62  ;;  %3778 = vmatprep.subr.bf16.mxu1 %v5533_v63  ;;  %v5605_v61 = vld [vmem:[%s7329_s3 + $0xf8] sm:$0xff]  }
 0x1e1   :  { %v5606_v62 = vld [vmem:[%s7329_s3 + $0x38] sm:$0xff]  }
 0x1e2   :  { %v5607_v63 = vld [vmem:[%s7329_s3 + $0xb8] sm:$0xff]  }
 0x1e3   :  { %3451 = vmatpush1.bf16.msra.mxu0 %v5528_v0  ;;  %3779 = vmatpush1.bf16.msra.mxu1 %v5531_v1  ;;  %v567_v0 = vlaneseq }
 0x1e4   :  { %3452 = vmatprep.subr.bf16.mxu0 %v5536_v2  ;;  %3780 = vmatprep.subr.bf16.mxu1 %v5539_v3 }
 0x1e5   :  { %v568_v1 = vshrl.u32 %v567_v0, 7 }
 0x1e7   :  { %3453 = vmatpush1.bf16.msra.mxu0 %v5534_v4  ;;  %3781 = vmatpush1.bf16.msra.mxu1 %v5537_v5  ;;  %v569_v2 = vsub.s32 0, %v568_v1  ;;  %v577_v3 = vsub.s32 2, %v568_v1  ;;  %v565_v4 = vld [vmem:[%s7330_s2] sm:$0xf]  ;;  %v573_v5 = vsub.s32 1, %v568_v1 }
 0x1e8   :  { %3454 = vmatprep.subr.bf16.mxu0 %v5542_v6  ;;  %3782 = vmatprep.subr.bf16.mxu1 %v5545_v7  ;;  %v581_v6 = vsub.s32 3, %v568_v1 }
 0x1e9   :  { %v570_v7 = vrot.slane %v565_v4, %v569_v2 }
 0x1eb   :  { %3455 = vmatpush1.bf16.msra.mxu0 %v5540_v8  ;;  %3783 = vmatpush1.bf16.msra.mxu1 %v5543_v9  ;;  %v578_v8 = vrot.slane %v565_v4, %v577_v3  ;;  %v574_v9 = vrot.slane %v565_v4, %v573_v5 }
 0x1ec   :  { %3456 = vmatprep.subr.bf16.mxu0 %v5548_v10  ;;  %3784 = vmatprep.subr.bf16.mxu1 %v5551_v11  ;;  %v582_v10 = vrot.slane %v565_v4, %v581_v6 }
 0x1ef   :  { %3457 = vmatpush1.bf16.msra.mxu0 %v5546_v12  ;;  %3785 = vmatpush1.bf16.msra.mxu1 %v5549_v13 }
 0x1f0   :  { %3458 = vmatprep.subr.bf16.mxu0 %v5554_v14  ;;  %3786 = vmatprep.subr.bf16.mxu1 %v5557_v15 }
 0x1f3   :  { %3459 = vmatpush1.bf16.msra.mxu0 %v5552_v16  ;;  %3787 = vmatpush1.bf16.msra.mxu1 %v5555_v17 }
 0x1f4   :  { %3460 = vmatprep.subr.bf16.mxu0 %v5560_v18  ;;  %3788 = vmatprep.subr.bf16.mxu1 %v5563_v19 }
 0x1f7   :  { %3461 = vmatpush1.bf16.msra.mxu0 %v5558_v20  ;;  %3789 = vmatpush1.bf16.msra.mxu1 %v5561_v21 }
 0x1f8   :  { %3462 = vmatprep.subr.bf16.mxu0 %v5566_v22  ;;  %3790 = vmatprep.subr.bf16.mxu1 %v5569_v23 }
 0x1fb   :  { %3463 = vmatpush1.bf16.msra.mxu0 %v5564_v24  ;;  %3791 = vmatpush1.bf16.msra.mxu1 %v5567_v25 }
 0x1fc   :  { %3464 = vmatprep.subr.bf16.mxu0 %v5572_v26  ;;  %3792 = vmatprep.subr.bf16.mxu1 %v5575_v27 }
 0x1ff   :  { %3465 = vmatpush1.bf16.msra.mxu0 %v5570_v28  ;;  %3793 = vmatpush1.bf16.msra.mxu1 %v5573_v29 }
 0x200   :  { %4704 = vmatprep.subr.bf16.mxu0 %v5576_v31  ;;  %4726 = vmatprep.subr.bf16.mxu1 %v5577_v32 }
 0x202   :  { %3467 = vmatmul.mubr.bf16.vlgmr.msra.gmra.mrb[0].mxu0 %v51_v33  ;;  %3795 = vmatmul.mubr.bf16.vlgmr.msra.gmra.mrb[0].mxu1 %v51_v33  ;;  %v4671_v33 = vld [vmem:[%s7331_s4] ss:$0 sm:$0xff] }
 0x203   :  { %4705 = vmatpush3.bf16.msra.mxu0 %v5578_v34  ;;  %4727 = vmatpush3.bf16.msra.mxu1 %v5579_v35 }
 0x204   :  { %4706 = vmatprep.subr.bf16.mxu0 %v5580_v36  ;;  %4728 = vmatprep.subr.bf16.mxu1 %v5581_v37 }
 0x207   :  { %4707 = vmatpush3.bf16.msra.mxu0 %v5582_v38  ;;  %4729 = vmatpush3.bf16.msra.mxu1 %v5583_v39 }
 0x208   :  { %4708 = vmatprep.subr.bf16.mxu0 %v5584_v40  ;;  %4730 = vmatprep.subr.bf16.mxu1 %v5585_v41 }
 0x20b   :  { %4709 = vmatpush3.bf16.msra.mxu0 %v5586_v42  ;;  %4731 = vmatpush3.bf16.msra.mxu1 %v5587_v43 }
 0x20c   :  { %4710 = vmatprep.subr.bf16.mxu0 %v5588_v44  ;;  %4732 = vmatprep.subr.bf16.mxu1 %v5589_v45 }
 0x20f   :  { %4711 = vmatpush3.bf16.msra.mxu0 %v5590_v46  ;;  %4733 = vmatpush3.bf16.msra.mxu1 %v5591_v47 }
 0x210   :  { %4712 = vmatprep.subr.bf16.mxu0 %v5592_v48  ;;  %4734 = vmatprep.subr.bf16.mxu1 %v5593_v49 }
 0x213   :  { %4713 = vmatpush3.bf16.msra.mxu0 %v5594_v50  ;;  %4735 = vmatpush3.bf16.msra.mxu1 %v5595_v51 }
 0x214   :  { %4714 = vmatprep.subr.bf16.mxu0 %v5596_v52  ;;  %4736 = vmatprep.subr.bf16.mxu1 %v5597_v53 }
 0x217   :  { %4715 = vmatpush3.bf16.msra.mxu0 %v5598_v54  ;;  %4737 = vmatpush3.bf16.msra.mxu1 %v5599_v55 }
 0x218   :  { %4716 = vmatprep.subr.bf16.mxu0 %v5600_v56  ;;  %4738 = vmatprep.subr.bf16.mxu1 %v5601_v57 }
 0x21b   :  { %4717 = vmatpush3.bf16.msra.mxu0 %v5602_v58  ;;  %4739 = vmatpush3.bf16.msra.mxu1 %v5603_v59 }
 0x21c   :  { %4718 = vmatprep.subr.bf16.mxu0 %v5604_v60  ;;  %4740 = vmatprep.subr.bf16.mxu1 %v5605_v61 }
 0x21f   :  { %4719 = vmatpush3.bf16.msra.mxu0 %v5606_v62  ;;  %4741 = vmatpush3.bf16.msra.mxu1 %v5607_v63 }
 0x2d5   :  { %v3468_v11 = vpop.f32.mrb[0].mxu0  ;;  %v3796_v12 = vpop.f32.mrb[0].mxu1 }
 0x2d6   :  { %v4748_v13 = vadd.f32 %v3468_v11, %v570_v7  ;;  %v4750_v14 = vadd.f32 %v3796_v12, %v578_v8  ;;  %v3470_v15 = vpop.f32.mrb[1].mxu0  ;;  %v3798_v16 = vpop.f32.mrb[1].mxu1 }
 0x2d7   :  { %v4749_v17 = vadd.f32 %v3470_v15, %v574_v9  ;;  %v4751_v18 = vadd.f32 %v3798_v16, %v582_v10  ;;  %v3472_v19 = vpop.f32.mrb[2].mxu0  ;;  %v3800_v20 = vpop.f32.mrb[2].mxu1 }
 0x2d8   :  { %v3803_v21 = vmax.f32 %v4748_v13, 0.0  ;;  %v3805_v22 = vmax.f32 %v4750_v14, 0.0  ;;  %v3473_v23 = vpop.f32.mrb[3].mxu0  ;;  %v3801_v24 = vpop.f32.mrb[3].mxu1 }
 0x2d9   :  { %v3804_v25 = vmax.f32 %v4749_v17, 0.0  ;;  %v3806_v26 = vmax.f32 %v4751_v18, 0.0 }
 0x2da   :  { %v3807_v29 = vpack.c.bf16 %v3803_v21, %v3803_v21  ;;  %v3809_v30 = vpack.c.bf16 %v3805_v22, %v3805_v22 }
 0x2db   :  { %v3808_v27 = vpack.c.bf16 %v3804_v25, %v3804_v25  ;;  %v3810_v28 = vpack.c.bf16 %v3806_v26, %v3806_v26 }
 0x2dd   :  { %4106 = vmatprep.mubr.bf16.mxu0 %v3808_v27  ;;  %4146 = vmatprep.mubr.bf16.mxu1 %v3810_v28 }
 0x2de   :  { %4107 = vmatmul.mubr.bf16.vlgmr.msra.gmra.mrb[4].mxu0 %v3807_v29  ;;  %4147 = vmatmul.mubr.bf16.vlgmr.msra.gmra.mrb[4].mxu1 %v3809_v30 }
 0x3b1   :  { %v4720_v31 = vpop.f32.mrb[4].mxu0  ;;  %v4742_v32 = vpop.f32.mrb[4].mxu1 }
 0x3b2   :  { %v4721_v34 = vpop.f32.mrb[5].mxu0  ;;  %v4743_v35 = vpop.f32.mrb[5].mxu1 }
 0x3b3   :  { %v4722_v36 = vadd.f32 %v4721_v34, %v4720_v31  ;;  %v4744_v37 = vadd.f32 %v4743_v35, %v4742_v32  ;;  %v4723_v38 = vpop.f32.mrb[6].mxu0  ;;  %v4745_v39 = vpop.f32.mrb[6].mxu1 }
 0x3b4   :  { %v4724_v40 = vpop.f32.mrb[7].mxu0  ;;  %v4746_v41 = vpop.f32.mrb[7].mxu1 }
 0x3b5   :  { %v4109_v42 = vadd.f32 %v4722_v36, %v4671_v33 }
 0x3b7   :  { %v4149_v43 = vadd.f32 %v4744_v37, %v4109_v42 }
 0x3b9   :  { %4154 = vst [vmem:[%s7332_s5] sm:$0xff] %v4149_v43 }

</bundles_post_ra>
